<compile_context>
chip_gen: v5e
topology: v5e:2x2
jax: 0.10.0
libtpu: 0.0.40
codegen_flags: <defaults>
</compile_context>

<pallas_src>
import jax
import jax.numpy as jnp
from jax.experimental import pallas as pl
from jax.experimental.pallas import tpu as pltpu


def _seg_head_kernel(x_ref, w1t_ref, w2t_ref, e_ref, o_ref):
    """Fused double-deconv (k=2, s=2) + ReLU head, transposed formulation.

    x_ref  : (1, d, th, W)         NCHW input tile (channels x rows x cols)
    w1t_ref: (4, d, d)             w1t[k1, c, ci] = w1[ci, c, kh1, kw1], k1 = 2*kh1 + kw1
    w2t_ref: (4*cout, d)           w2t[k2*cout + o, c] = w2[c, o, kh2, kw2], k2 = 2*kh2 + kw2
    e_ref  : (4, W, 4W)            lane-interleave permutations: E[s][w, 4*w + s] = 1
    o_ref  : (1, cout, th, 4, 4W)  contiguous view of NCHW output rows 4h..4h+3
    """
    th = x_ref.shape[2]
    w = x_ref.shape[3]
    cout = o_ref.shape[1]

    w2t = w2t_ref[...]                            # (4*cout, d), dense (no zero blocks)

    for j in range(th):                           # static unroll over input rows
        xj = x_ref[0, :, j, :]                    # (d, W)  channels x pixels (lanes)

        # --- two deconvs + ReLU, one first-tap k1 at a time (small live temps) ---
        z = []
        for k1 in range(4):
            y = jnp.dot(w1t_ref[k1], xj, preferred_element_type=jnp.float32)   # (d, W)
            y = jnp.maximum(y, 0.0)               # internal_act = ReLU
            z.append(jnp.dot(w2t, y, preferred_element_type=jnp.float32))      # (4*cout, W)

        # --- assemble the 4x4 upsampled patch rows; interleave columns on the MXU ---
        rows = []
        for r in range(4):                        # output row offset r = 2*kh1 + kh2
            acc = None
            for s in range(4):                    # output col offset s = 2*kw1 + kw2
                k1_rs = 2 * (r // 2) + (s // 2)
                k2_rs = 2 * (r % 2) + (s % 2)
                piece = z[k1_rs][k2_rs * cout:(k2_rs + 1) * cout, :]            # (cout, W)
                # (piece @ E[s])[o, 4*w + s] = piece[o, w]  (exact 0/1 matmul)
                term = jnp.dot(piece, e_ref[s], preferred_element_type=jnp.float32)
                acc = term if acc is None else acc + term
            rows.append(acc)                      # (cout, 4W)

        # one full-minor-tile store per input row: (cout, 4, 4W)
        o_ref[0, :, j, :, :] = jnp.stack(rows, axis=1).astype(o_ref.dtype)


def simple_conv_segmentation_head_pallas(x_nchw, w1, w2):
    """x_nchw: (N, d, H, W); w1: (d, d, 2, 2); w2: (d, cout, 2, 2)
    (PyTorch ConvTranspose2d weight layout: (in_ch, out_ch, kH, kW)).
    Returns (N, cout, 4H, 4W) float32, matching the PyTorch forward."""
    N, d, H, W = x_nchw.shape
    cout = w2.shape[1]

    # ---- fold the 2x2 taps into transposed per-tap matrices (tiny; host) ----
    # tap index k = 2*kh + kw
    # w1t[k1, c, ci] = w1[ci, c, kh1, kw1]
    w1t = jnp.transpose(w1, (2, 3, 1, 0)).reshape(4, d, d).astype(jnp.float32)
    # w2t[k2*cout + o, c] = w2[c, o, kh2, kw2]
    w2t = jnp.transpose(w2, (2, 3, 1, 0)).reshape(4 * cout, d).astype(jnp.float32)
    # Lane-interleave permutation matrices E[s][w, 4*w + s] = 1 (exact 0/1).
    w_idx = jnp.arange(W)
    col = jnp.arange(4 * W)[None, :]
    e_all = jnp.stack(
        [(col == (4 * w_idx + s)[:, None]).astype(jnp.float32) for s in range(4)],
        axis=0)                                                    # (4, W, 4W)

    # ---- tiling: th input rows per grid step ----
    # th must be a multiple of 8 (sublane tiling) or the full H.  8 keeps the
    # static in-kernel unroll short; bigger tiles only buy back ~0.35us/step of
    # grid overhead on a memory-bound op.  No artificial split for tiny inputs.
    th = 8 if H % 8 == 0 else H
    # TODO(synk): for very tall feature maps with H % 8 != 0, switch the
    # in-kernel row loop to lax.fori_loop instead of a static unroll.
    grid = (N, H // th)

    # ---- generation-aware VMEM budget (v7x: 64 MiB/core vs 128 on v5e/v6e) ----
    itemsize = 4
    x_tile = d * th * W * itemsize
    o_tile = cout * th * 16 * W * itemsize
    w_bytes = (4 * d * d + 4 * cout * d + 16 * W * W) * itemsize
    vmem_need = 2 * (x_tile + o_tile) + 2 * w_bytes + (2 << 20)   # tiles dbl-buffered + weights + scratch
    try:
        info = pltpu.get_tpu_info()
        vmem_cap = int(getattr(info, "vmem_capacity_bytes", 64 * 1024 * 1024))
    except Exception:
        vmem_cap = 64 * 1024 * 1024                                # conservative (v7x) floor
    vmem_limit = int(min(max(2 * vmem_need, 16 * 1024 * 1024), 0.75 * vmem_cap))
    vmem_limit = max(vmem_limit, int(vmem_need))

    # Advisory cost hint for XLA's scheduler around the custom call.
    flops = N * H * (8 * d * W * (d + 4 * cout) + 128 * cout * W * W)
    bytes_accessed = itemsize * (N * d * H * W + 16 * N * cout * H * W
                                 + 4 * d * d + 4 * cout * d + 16 * W * W)
    cost = pl.CostEstimate(flops=flops, transcendentals=0,
                           bytes_accessed=bytes_accessed)

    # Output declared as (N, cout, H, 4, 4W): a contiguous (free) view of the
    # NCHW result, so no post-kernel transpose/scatter HBM pass is needed.
    out5 = pl.pallas_call(
        _seg_head_kernel,
        out_shape=jax.ShapeDtypeStruct((N, cout, H, 4, 4 * W), jnp.float32),
        grid_spec=pltpu.PrefetchScalarGridSpec(
            num_scalar_prefetch=0,
            grid=grid,
            in_specs=[
                pl.BlockSpec((1, d, th, W), lambda n, hb: (n, 0, hb, 0)),
                # Constant-index weight/permutation operands: never re-DMA'd.
                pl.BlockSpec((4, d, d), lambda n, hb: (0, 0, 0)),
                pl.BlockSpec((4 * cout, d), lambda n, hb: (0, 0)),
                pl.BlockSpec((4, W, 4 * W), lambda n, hb: (0, 0, 0)),
            ],
            out_specs=pl.BlockSpec((1, cout, th, 4, 4 * W),
                                   lambda n, hb: (n, 0, hb, 0, 0)),
        ),
        compiler_params=pltpu.CompilerParams(
            dimension_semantics=("parallel", "parallel"),
            vmem_limit_bytes=vmem_limit),
        cost_estimate=cost,
    )(x_nchw.astype(jnp.float32), w1t, w2t, e_all)

    # Free (contiguous) view: (N, cout, H, 4, 4W) -> (N, cout, 4H, 4W).
    return out5.reshape(N, cout, 4 * H, 4 * W)


def _reference(x_nchw, w1, w2):
    """Pure-JAX reference of the PyTorch forward (ConvTranspose2d k=2 s=2)."""
    N, d, H, W = x_nchw.shape
    cout = w2.shape[1]
    x = jnp.transpose(x_nchw, (0, 2, 3, 1))                   # (N,H,W,Cin)
    # deconv_1: y[n, 2h+kh, 2w+kw, c] = sum_ci x[n,h,w,ci] * w1[ci,c,kh,kw]
    y = jnp.einsum('nhwi,icab->nhawbc', x, w1)                # (N,H,2,W,2,d)
    y = y.reshape(N, 2 * H, 2 * W, d)
    y = jnp.maximum(y, 0.0)
    # deconv_2: z[n, 2p+a, 2q+b, o] = sum_c y[n,p,q,c] * w2[c,o,a,b]
    z = jnp.einsum('npqc,coab->npaqbo', y, w2)                # (N,2H,2,2W,2,cout)
    z = z.reshape(N, 4 * H, 4 * W, cout)
    return jnp.transpose(z, (0, 3, 1, 2))                     # NCHW


if __name__ == "__main__":
    # Small shapes consistent with the module: d=4 channels, 16x16 spatial, batch 2.
    N, d, H, W = 2, 4, 16, 16
    output_depth = 2

    key = jax.random.PRNGKey(0)
    kx, k1, k2 = jax.random.split(key, 3)
    x = jax.random.normal(kx, (N, d, H, W), dtype=jnp.float32)
    # ConvTranspose2d weight shapes: (in_channels, out_channels, kH, kW)
    w1 = jax.random.normal(k1, (d, d, 2, 2), dtype=jnp.float32) * 0.25
    w2 = jax.random.normal(k2, (d, output_depth, 2, 2), dtype=jnp.float32) * 0.25

    fwd = jax.jit(simple_conv_segmentation_head_pallas)
    out = jax.block_until_ready(fwd(x, w1, w2))

    ref = _reference(x, w1, w2)
    assert out.shape == (N, output_depth, 4 * H, 4 * W), out.shape
    assert jnp.allclose(out, ref, atol=1e-5, rtol=1e-5), float(jnp.max(jnp.abs(out - ref)))

    print("KERNEL_OK")
</pallas_src>

<mosaic_0001>
module attributes {stable_mosaic.version = 11 : i64} {
  func.func @_seg_head_kernel(%arg0: i32, %arg1: i32, %arg2: memref<1x4x8x16xf32, #tpu.memory_space<vmem>>, %arg3: memref<4x4x4xf32, #tpu.memory_space<vmem>>, %arg4: memref<8x4xf32, #tpu.memory_space<vmem>>, %arg5: memref<4x16x64xf32, #tpu.memory_space<vmem>>, %arg6: memref<1x2x8x4x64xf32, #tpu.memory_space<vmem>>) attributes {dimension_semantics = [#tpu.dimension_semantics<parallel>, #tpu.dimension_semantics<parallel>], iteration_bounds = array<i64: 2, 2>, scalar_prefetch = 0 : i64, scratch_operands = 0 : i64, tpu.core_type = #tpu.core_type<tc>, window_params = [{transform_indices = @transform_0, window_bounds = array<i64: 1, 4, 8, 16>}, {pipeline_mode = #tpu.pipeline_mode<synchronous>, transform_indices = @transform_1, window_bounds = array<i64: 4, 4, 4>}, {pipeline_mode = #tpu.pipeline_mode<synchronous>, transform_indices = @transform_2, window_bounds = array<i64: 8, 4>}, {pipeline_mode = #tpu.pipeline_mode<synchronous>, transform_indices = @transform_3, window_bounds = array<i64: 4, 16, 64>}, {transform_indices = @transform_4, window_bounds = array<i64: 1, 2, 8, 4, 64>}]} {
    %c0 = arith.constant 0 : index
    %c0_0 = arith.constant 0 : index
    %0 = vector.load %arg4[%c0, %c0_0] : memref<8x4xf32, #tpu.memory_space<vmem>>, vector<8x4xf32>
    %c0_1 = arith.constant 0 : index
    %c0_2 = arith.constant 0 : index
    %c0_3 = arith.constant 0 : index
    %c0_4 = arith.constant 0 : index
    %1 = vector.load %arg2[%c0_1, %c0_2, %c0_3, %c0_4] : memref<1x4x8x16xf32, #tpu.memory_space<vmem>>, vector<1x4x1x16xf32>
    %2 = vector.shape_cast %1 : vector<1x4x1x16xf32> to vector<4x16xf32>
    %c0_5 = arith.constant 0 : index
    %c0_6 = arith.constant 0 : index
    %c0_7 = arith.constant 0 : index
    %3 = vector.load %arg3[%c0_5, %c0_6, %c0_7] : memref<4x4x4xf32, #tpu.memory_space<vmem>>, vector<1x4x4xf32>
    %4 = vector.shape_cast %3 : vector<1x4x4xf32> to vector<4x4xf32>
    %cst = arith.constant dense<0.000000e+00> : vector<4x16xf32>
    %5 = tpu.matmul %4, %2, %cst {dimension_numbers = #tpu.dot_dimension_numbers<[1], [0], [0], [1], [0, 0, 1, 1], [], []>} : vector<4x4xf32>, vector<4x16xf32>, vector<4x16xf32> -> vector<4x16xf32>
    %cst_8 = arith.constant 0.000000e+00 : f32
    %6 = vector.broadcast %cst_8 : f32 to vector<4x16xf32>
    %7 = arith.maximumf %5, %6 : vector<4x16xf32>
    %cst_9 = arith.constant dense<0.000000e+00> : vector<8x16xf32>
    %8 = tpu.matmul %0, %7, %cst_9 {dimension_numbers = #tpu.dot_dimension_numbers<[1], [0], [0], [1], [0, 0, 1, 1], [], []>} : vector<8x4xf32>, vector<4x16xf32>, vector<8x16xf32> -> vector<8x16xf32>
    %c1 = arith.constant 1 : index
    %c0_10 = arith.constant 0 : index
    %c0_11 = arith.constant 0 : index
    %9 = vector.load %arg3[%c1, %c0_10, %c0_11] : memref<4x4x4xf32, #tpu.memory_space<vmem>>, vector<1x4x4xf32>
    %10 = vector.shape_cast %9 : vector<1x4x4xf32> to vector<4x4xf32>
    %cst_12 = arith.constant dense<0.000000e+00> : vector<4x16xf32>
    %11 = tpu.matmul %10, %2, %cst_12 {dimension_numbers = #tpu.dot_dimension_numbers<[1], [0], [0], [1], [0, 0, 1, 1], [], []>} : vector<4x4xf32>, vector<4x16xf32>, vector<4x16xf32> -> vector<4x16xf32>
    %cst_13 = arith.constant 0.000000e+00 : f32
    %12 = vector.broadcast %cst_13 : f32 to vector<4x16xf32>
    %13 = arith.maximumf %11, %12 : vector<4x16xf32>
    %cst_14 = arith.constant dense<0.000000e+00> : vector<8x16xf32>
    %14 = tpu.matmul %0, %13, %cst_14 {dimension_numbers = #tpu.dot_dimension_numbers<[1], [0], [0], [1], [0, 0, 1, 1], [], []>} : vector<8x4xf32>, vector<4x16xf32>, vector<8x16xf32> -> vector<8x16xf32>
    %c2 = arith.constant 2 : index
    %c0_15 = arith.constant 0 : index
    %c0_16 = arith.constant 0 : index
    %15 = vector.load %arg3[%c2, %c0_15, %c0_16] : memref<4x4x4xf32, #tpu.memory_space<vmem>>, vector<1x4x4xf32>
    %16 = vector.shape_cast %15 : vector<1x4x4xf32> to vector<4x4xf32>
    %cst_17 = arith.constant dense<0.000000e+00> : vector<4x16xf32>
    %17 = tpu.matmul %16, %2, %cst_17 {dimension_numbers = #tpu.dot_dimension_numbers<[1], [0], [0], [1], [0, 0, 1, 1], [], []>} : vector<4x4xf32>, vector<4x16xf32>, vector<4x16xf32> -> vector<4x16xf32>
    %cst_18 = arith.constant 0.000000e+00 : f32
    %18 = vector.broadcast %cst_18 : f32 to vector<4x16xf32>
    %19 = arith.maximumf %17, %18 : vector<4x16xf32>
    %cst_19 = arith.constant dense<0.000000e+00> : vector<8x16xf32>
    %20 = tpu.matmul %0, %19, %cst_19 {dimension_numbers = #tpu.dot_dimension_numbers<[1], [0], [0], [1], [0, 0, 1, 1], [], []>} : vector<8x4xf32>, vector<4x16xf32>, vector<8x16xf32> -> vector<8x16xf32>
    %c3 = arith.constant 3 : index
    %c0_20 = arith.constant 0 : index
    %c0_21 = arith.constant 0 : index
    %21 = vector.load %arg3[%c3, %c0_20, %c0_21] : memref<4x4x4xf32, #tpu.memory_space<vmem>>, vector<1x4x4xf32>
    %22 = vector.shape_cast %21 : vector<1x4x4xf32> to vector<4x4xf32>
    %cst_22 = arith.constant dense<0.000000e+00> : vector<4x16xf32>
    %23 = tpu.matmul %22, %2, %cst_22 {dimension_numbers = #tpu.dot_dimension_numbers<[1], [0], [0], [1], [0, 0, 1, 1], [], []>} : vector<4x4xf32>, vector<4x16xf32>, vector<4x16xf32> -> vector<4x16xf32>
    %cst_23 = arith.constant 0.000000e+00 : f32
    %24 = vector.broadcast %cst_23 : f32 to vector<4x16xf32>
    %25 = arith.maximumf %23, %24 : vector<4x16xf32>
    %cst_24 = arith.constant dense<0.000000e+00> : vector<8x16xf32>
    %26 = tpu.matmul %0, %25, %cst_24 {dimension_numbers = #tpu.dot_dimension_numbers<[1], [0], [0], [1], [0, 0, 1, 1], [], []>} : vector<8x4xf32>, vector<4x16xf32>, vector<8x16xf32> -> vector<8x16xf32>
    %27 = vector.extract_strided_slice %8 {offsets = [0, 0], sizes = [2, 16], strides = [1, 1]} : vector<8x16xf32> to vector<2x16xf32>
    %c0_25 = arith.constant 0 : index
    %c0_26 = arith.constant 0 : index
    %c0_27 = arith.constant 0 : index
    %28 = vector.load %arg5[%c0_25, %c0_26, %c0_27] : memref<4x16x64xf32, #tpu.memory_space<vmem>>, vector<1x16x64xf32>
    %29 = vector.shape_cast %28 : vector<1x16x64xf32> to vector<16x64xf32>
    %cst_28 = arith.constant dense<0.000000e+00> : vector<2x64xf32>
    %30 = tpu.matmul %27, %29, %cst_28 {dimension_numbers = #tpu.dot_dimension_numbers<[1], [0], [0], [1], [0, 0, 1, 1], [], []>} : vector<2x16xf32>, vector<16x64xf32>, vector<2x64xf32> -> vector<2x64xf32>
    %31 = vector.extract_strided_slice %8 {offsets = [2, 0], sizes = [2, 16], strides = [1, 1]} : vector<8x16xf32> to vector<2x16xf32>
    %c1_29 = arith.constant 1 : index
    %c0_30 = arith.constant 0 : index
    %c0_31 = arith.constant 0 : index
    %32 = vector.load %arg5[%c1_29, %c0_30, %c0_31] : memref<4x16x64xf32, #tpu.memory_space<vmem>>, vector<1x16x64xf32>
    %33 = vector.shape_cast %32 : vector<1x16x64xf32> to vector<16x64xf32>
    %cst_32 = arith.constant dense<0.000000e+00> : vector<2x64xf32>
    %34 = tpu.matmul %31, %33, %cst_32 {dimension_numbers = #tpu.dot_dimension_numbers<[1], [0], [0], [1], [0, 0, 1, 1], [], []>} : vector<2x16xf32>, vector<16x64xf32>, vector<2x64xf32> -> vector<2x64xf32>
    %35 = arith.addf %30, %34 : vector<2x64xf32>
    %36 = vector.extract_strided_slice %14 {offsets = [0, 0], sizes = [2, 16], strides = [1, 1]} : vector<8x16xf32> to vector<2x16xf32>
    %c2_33 = arith.constant 2 : index
    %c0_34 = arith.constant 0 : index
    %c0_35 = arith.constant 0 : index
    %37 = vector.load %arg5[%c2_33, %c0_34, %c0_35] : memref<4x16x64xf32, #tpu.memory_space<vmem>>, vector<1x16x64xf32>
    %38 = vector.shape_cast %37 : vector<1x16x64xf32> to vector<16x64xf32>
    %cst_36 = arith.constant dense<0.000000e+00> : vector<2x64xf32>
    %39 = tpu.matmul %36, %38, %cst_36 {dimension_numbers = #tpu.dot_dimension_numbers<[1], [0], [0], [1], [0, 0, 1, 1], [], []>} : vector<2x16xf32>, vector<16x64xf32>, vector<2x64xf32> -> vector<2x64xf32>
    %40 = arith.addf %35, %39 : vector<2x64xf32>
    %41 = vector.extract_strided_slice %14 {offsets = [2, 0], sizes = [2, 16], strides = [1, 1]} : vector<8x16xf32> to vector<2x16xf32>
    %c3_37 = arith.constant 3 : index
    %c0_38 = arith.constant 0 : index
    %c0_39 = arith.constant 0 : index
    %42 = vector.load %arg5[%c3_37, %c0_38, %c0_39] : memref<4x16x64xf32, #tpu.memory_space<vmem>>, vector<1x16x64xf32>
    %43 = vector.shape_cast %42 : vector<1x16x64xf32> to vector<16x64xf32>
    %cst_40 = arith.constant dense<0.000000e+00> : vector<2x64xf32>
    %44 = tpu.matmul %41, %43, %cst_40 {dimension_numbers = #tpu.dot_dimension_numbers<[1], [0], [0], [1], [0, 0, 1, 1], [], []>} : vector<2x16xf32>, vector<16x64xf32>, vector<2x64xf32> -> vector<2x64xf32>
    %45 = arith.addf %40, %44 : vector<2x64xf32>
    %46 = vector.extract_strided_slice %8 {offsets = [4, 0], sizes = [2, 16], strides = [1, 1]} : vector<8x16xf32> to vector<2x16xf32>
    %c0_41 = arith.constant 0 : index
    %c0_42 = arith.constant 0 : index
    %c0_43 = arith.constant 0 : index
    %47 = vector.load %arg5[%c0_41, %c0_42, %c0_43] : memref<4x16x64xf32, #tpu.memory_space<vmem>>, vector<1x16x64xf32>
    %48 = vector.shape_cast %47 : vector<1x16x64xf32> to vector<16x64xf32>
    %cst_44 = arith.constant dense<0.000000e+00> : vector<2x64xf32>
    %49 = tpu.matmul %46, %48, %cst_44 {dimension_numbers = #tpu.dot_dimension_numbers<[1], [0], [0], [1], [0, 0, 1, 1], [], []>} : vector<2x16xf32>, vector<16x64xf32>, vector<2x64xf32> -> vector<2x64xf32>
    %50 = vector.extract_strided_slice %8 {offsets = [6, 0], sizes = [2, 16], strides = [1, 1]} : vector<8x16xf32> to vector<2x16xf32>
    %c1_45 = arith.constant 1 : index
    %c0_46 = arith.constant 0 : index
    %c0_47 = arith.constant 0 : index
    %51 = vector.load %arg5[%c1_45, %c0_46, %c0_47] : memref<4x16x64xf32, #tpu.memory_space<vmem>>, vector<1x16x64xf32>
    %52 = vector.shape_cast %51 : vector<1x16x64xf32> to vector<16x64xf32>
    %cst_48 = arith.constant dense<0.000000e+00> : vector<2x64xf32>
    %53 = tpu.matmul %50, %52, %cst_48 {dimension_numbers = #tpu.dot_dimension_numbers<[1], [0], [0], [1], [0, 0, 1, 1], [], []>} : vector<2x16xf32>, vector<16x64xf32>, vector<2x64xf32> -> vector<2x64xf32>
    %54 = arith.addf %49, %53 : vector<2x64xf32>
    %55 = vector.extract_strided_slice %14 {offsets = [4, 0], sizes = [2, 16], strides = [1, 1]} : vector<8x16xf32> to vector<2x16xf32>
    %c2_49 = arith.constant 2 : index
    %c0_50 = arith.constant 0 : index
    %c0_51 = arith.constant 0 : index
    %56 = vector.load %arg5[%c2_49, %c0_50, %c0_51] : memref<4x16x64xf32, #tpu.memory_space<vmem>>, vector<1x16x64xf32>
    %57 = vector.shape_cast %56 : vector<1x16x64xf32> to vector<16x64xf32>
    %cst_52 = arith.constant dense<0.000000e+00> : vector<2x64xf32>
    %58 = tpu.matmul %55, %57, %cst_52 {dimension_numbers = #tpu.dot_dimension_numbers<[1], [0], [0], [1], [0, 0, 1, 1], [], []>} : vector<2x16xf32>, vector<16x64xf32>, vector<2x64xf32> -> vector<2x64xf32>
    %59 = arith.addf %54, %58 : vector<2x64xf32>
    %60 = vector.extract_strided_slice %14 {offsets = [6, 0], sizes = [2, 16], strides = [1, 1]} : vector<8x16xf32> to vector<2x16xf32>
    %c3_53 = arith.constant 3 : index
    %c0_54 = arith.constant 0 : index
    %c0_55 = arith.constant 0 : index
    %61 = vector.load %arg5[%c3_53, %c0_54, %c0_55] : memref<4x16x64xf32, #tpu.memory_space<vmem>>, vector<1x16x64xf32>
    %62 = vector.shape_cast %61 : vector<1x16x64xf32> to vector<16x64xf32>
    %cst_56 = arith.constant dense<0.000000e+00> : vector<2x64xf32>
    %63 = tpu.matmul %60, %62, %cst_56 {dimension_numbers = #tpu.dot_dimension_numbers<[1], [0], [0], [1], [0, 0, 1, 1], [], []>} : vector<2x16xf32>, vector<16x64xf32>, vector<2x64xf32> -> vector<2x64xf32>
    %64 = arith.addf %59, %63 : vector<2x64xf32>
    %65 = vector.extract_strided_slice %20 {offsets = [0, 0], sizes = [2, 16], strides = [1, 1]} : vector<8x16xf32> to vector<2x16xf32>
    %c0_57 = arith.constant 0 : index
    %c0_58 = arith.constant 0 : index
    %c0_59 = arith.constant 0 : index
    %66 = vector.load %arg5[%c0_57, %c0_58, %c0_59] : memref<4x16x64xf32, #tpu.memory_space<vmem>>, vector<1x16x64xf32>
    %67 = vector.shape_cast %66 : vector<1x16x64xf32> to vector<16x64xf32>
    %cst_60 = arith.constant dense<0.000000e+00> : vector<2x64xf32>
    %68 = tpu.matmul %65, %67, %cst_60 {dimension_numbers = #tpu.dot_dimension_numbers<[1], [0], [0], [1], [0, 0, 1, 1], [], []>} : vector<2x16xf32>, vector<16x64xf32>, vector<2x64xf32> -> vector<2x64xf32>
    %69 = vector.extract_strided_slice %20 {offsets = [2, 0], sizes = [2, 16], strides = [1, 1]} : vector<8x16xf32> to vector<2x16xf32>
    %c1_61 = arith.constant 1 : index
    %c0_62 = arith.constant 0 : index
    %c0_63 = arith.constant 0 : index
    %70 = vector.load %arg5[%c1_61, %c0_62, %c0_63] : memref<4x16x64xf32, #tpu.memory_space<vmem>>, vector<1x16x64xf32>
    %71 = vector.shape_cast %70 : vector<1x16x64xf32> to vector<16x64xf32>
    %cst_64 = arith.constant dense<0.000000e+00> : vector<2x64xf32>
    %72 = tpu.matmul %69, %71, %cst_64 {dimension_numbers = #tpu.dot_dimension_numbers<[1], [0], [0], [1], [0, 0, 1, 1], [], []>} : vector<2x16xf32>, vector<16x64xf32>, vector<2x64xf32> -> vector<2x64xf32>
    %73 = arith.addf %68, %72 : vector<2x64xf32>
    %74 = vector.extract_strided_slice %26 {offsets = [0, 0], sizes = [2, 16], strides = [1, 1]} : vector<8x16xf32> to vector<2x16xf32>
    %c2_65 = arith.constant 2 : index
    %c0_66 = arith.constant 0 : index
    %c0_67 = arith.constant 0 : index
    %75 = vector.load %arg5[%c2_65, %c0_66, %c0_67] : memref<4x16x64xf32, #tpu.memory_space<vmem>>, vector<1x16x64xf32>
    %76 = vector.shape_cast %75 : vector<1x16x64xf32> to vector<16x64xf32>
    %cst_68 = arith.constant dense<0.000000e+00> : vector<2x64xf32>
    %77 = tpu.matmul %74, %76, %cst_68 {dimension_numbers = #tpu.dot_dimension_numbers<[1], [0], [0], [1], [0, 0, 1, 1], [], []>} : vector<2x16xf32>, vector<16x64xf32>, vector<2x64xf32> -> vector<2x64xf32>
    %78 = arith.addf %73, %77 : vector<2x64xf32>
    %79 = vector.extract_strided_slice %26 {offsets = [2, 0], sizes = [2, 16], strides = [1, 1]} : vector<8x16xf32> to vector<2x16xf32>
    %c3_69 = arith.constant 3 : index
    %c0_70 = arith.constant 0 : index
    %c0_71 = arith.constant 0 : index
    %80 = vector.load %arg5[%c3_69, %c0_70, %c0_71] : memref<4x16x64xf32, #tpu.memory_space<vmem>>, vector<1x16x64xf32>
    %81 = vector.shape_cast %80 : vector<1x16x64xf32> to vector<16x64xf32>
    %cst_72 = arith.constant dense<0.000000e+00> : vector<2x64xf32>
    %82 = tpu.matmul %79, %81, %cst_72 {dimension_numbers = #tpu.dot_dimension_numbers<[1], [0], [0], [1], [0, 0, 1, 1], [], []>} : vector<2x16xf32>, vector<16x64xf32>, vector<2x64xf32> -> vector<2x64xf32>
    %83 = arith.addf %78, %82 : vector<2x64xf32>
    %84 = vector.extract_strided_slice %20 {offsets = [4, 0], sizes = [2, 16], strides = [1, 1]} : vector<8x16xf32> to vector<2x16xf32>
    %c0_73 = arith.constant 0 : index
    %c0_74 = arith.constant 0 : index
    %c0_75 = arith.constant 0 : index
    %85 = vector.load %arg5[%c0_73, %c0_74, %c0_75] : memref<4x16x64xf32, #tpu.memory_space<vmem>>, vector<1x16x64xf32>
    %86 = vector.shape_cast %85 : vector<1x16x64xf32> to vector<16x64xf32>
    %cst_76 = arith.constant dense<0.000000e+00> : vector<2x64xf32>
    %87 = tpu.matmul %84, %86, %cst_76 {dimension_numbers = #tpu.dot_dimension_numbers<[1], [0], [0], [1], [0, 0, 1, 1], [], []>} : vector<2x16xf32>, vector<16x64xf32>, vector<2x64xf32> -> vector<2x64xf32>
    %88 = vector.extract_strided_slice %20 {offsets = [6, 0], sizes = [2, 16], strides = [1, 1]} : vector<8x16xf32> to vector<2x16xf32>
    %c1_77 = arith.constant 1 : index
    %c0_78 = arith.constant 0 : index
    %c0_79 = arith.constant 0 : index
    %89 = vector.load %arg5[%c1_77, %c0_78, %c0_79] : memref<4x16x64xf32, #tpu.memory_space<vmem>>, vector<1x16x64xf32>
    %90 = vector.shape_cast %89 : vector<1x16x64xf32> to vector<16x64xf32>
    %cst_80 = arith.constant dense<0.000000e+00> : vector<2x64xf32>
    %91 = tpu.matmul %88, %90, %cst_80 {dimension_numbers = #tpu.dot_dimension_numbers<[1], [0], [0], [1], [0, 0, 1, 1], [], []>} : vector<2x16xf32>, vector<16x64xf32>, vector<2x64xf32> -> vector<2x64xf32>
    %92 = arith.addf %87, %91 : vector<2x64xf32>
    %93 = vector.extract_strided_slice %26 {offsets = [4, 0], sizes = [2, 16], strides = [1, 1]} : vector<8x16xf32> to vector<2x16xf32>
    %c2_81 = arith.constant 2 : index
    %c0_82 = arith.constant 0 : index
    %c0_83 = arith.constant 0 : index
    %94 = vector.load %arg5[%c2_81, %c0_82, %c0_83] : memref<4x16x64xf32, #tpu.memory_space<vmem>>, vector<1x16x64xf32>
    %95 = vector.shape_cast %94 : vector<1x16x64xf32> to vector<16x64xf32>
    %cst_84 = arith.constant dense<0.000000e+00> : vector<2x64xf32>
    %96 = tpu.matmul %93, %95, %cst_84 {dimension_numbers = #tpu.dot_dimension_numbers<[1], [0], [0], [1], [0, 0, 1, 1], [], []>} : vector<2x16xf32>, vector<16x64xf32>, vector<2x64xf32> -> vector<2x64xf32>
    %97 = arith.addf %92, %96 : vector<2x64xf32>
    %98 = vector.extract_strided_slice %26 {offsets = [6, 0], sizes = [2, 16], strides = [1, 1]} : vector<8x16xf32> to vector<2x16xf32>
    %c3_85 = arith.constant 3 : index
    %c0_86 = arith.constant 0 : index
    %c0_87 = arith.constant 0 : index
    %99 = vector.load %arg5[%c3_85, %c0_86, %c0_87] : memref<4x16x64xf32, #tpu.memory_space<vmem>>, vector<1x16x64xf32>
    %100 = vector.shape_cast %99 : vector<1x16x64xf32> to vector<16x64xf32>
    %cst_88 = arith.constant dense<0.000000e+00> : vector<2x64xf32>
    %101 = tpu.matmul %98, %100, %cst_88 {dimension_numbers = #tpu.dot_dimension_numbers<[1], [0], [0], [1], [0, 0, 1, 1], [], []>} : vector<2x16xf32>, vector<16x64xf32>, vector<2x64xf32> -> vector<2x64xf32>
    %102 = arith.addf %97, %101 : vector<2x64xf32>
    %103 = vector.shape_cast %45 : vector<2x64xf32> to vector<2x1x64xf32>
    %104 = vector.shape_cast %64 : vector<2x64xf32> to vector<2x1x64xf32>
    %105 = vector.shape_cast %83 : vector<2x64xf32> to vector<2x1x64xf32>
    %106 = vector.shape_cast %102 : vector<2x64xf32> to vector<2x1x64xf32>
    %107 = tpu.concatenate %103, %104, %105, %106 in 1 : vector<2x1x64xf32>, vector<2x1x64xf32>, vector<2x1x64xf32>, vector<2x1x64xf32> -> vector<2x4x64xf32>
    %c0_89 = arith.constant 0 : index
    %c0_90 = arith.constant 0 : index
    %c0_91 = arith.constant 0 : index
    %c0_92 = arith.constant 0 : index
    %c0_93 = arith.constant 0 : index
    %108 = vector.load %arg6[%c0_89, %c0_90, %c0_91, %c0_92, %c0_93] : memref<1x2x8x4x64xf32, #tpu.memory_space<vmem>>, vector<1x2x1x4x64xf32>
    %109 = vector.shape_cast %108 : vector<1x2x1x4x64xf32> to vector<2x4x64xf32>
    %110 = vector.shape_cast %107 : vector<2x4x64xf32> to vector<1x2x1x4x64xf32>
    tpu.vector_store %arg6[%c0_89, %c0_90, %c0_91, %c0_92, %c0_93], %110 {strides = array<i32>} : memref<1x2x8x4x64xf32, #tpu.memory_space<vmem>>, vector<1x2x1x4x64xf32>,
    %c0_94 = arith.constant 0 : index
    %c0_95 = arith.constant 0 : index
    %c1_96 = arith.constant 1 : index
    %c0_97 = arith.constant 0 : index
    %111 = vector.load %arg2[%c0_94, %c0_95, %c1_96, %c0_97] : memref<1x4x8x16xf32, #tpu.memory_space<vmem>>, vector<1x4x1x16xf32>
    %112 = vector.shape_cast %111 : vector<1x4x1x16xf32> to vector<4x16xf32>
    %c0_98 = arith.constant 0 : index
    %c0_99 = arith.constant 0 : index
    %c0_100 = arith.constant 0 : index
    %113 = vector.load %arg3[%c0_98, %c0_99, %c0_100] : memref<4x4x4xf32, #tpu.memory_space<vmem>>, vector<1x4x4xf32>
    %114 = vector.shape_cast %113 : vector<1x4x4xf32> to vector<4x4xf32>
    %cst_101 = arith.constant dense<0.000000e+00> : vector<4x16xf32>
    %115 = tpu.matmul %114, %112, %cst_101 {dimension_numbers = #tpu.dot_dimension_numbers<[1], [0], [0], [1], [0, 0, 1, 1], [], []>} : vector<4x4xf32>, vector<4x16xf32>, vector<4x16xf32> -> vector<4x16xf32>
    %cst_102 = arith.constant 0.000000e+00 : f32
    %116 = vector.broadcast %cst_102 : f32 to vector<4x16xf32>
    %117 = arith.maximumf %115, %116 : vector<4x16xf32>
    %cst_103 = arith.constant dense<0.000000e+00> : vector<8x16xf32>
    %118 = tpu.matmul %0, %117, %cst_103 {dimension_numbers = #tpu.dot_dimension_numbers<[1], [0], [0], [1], [0, 0, 1, 1], [], []>} : vector<8x4xf32>, vector<4x16xf32>, vector<8x16xf32> -> vector<8x16xf32>
    %c1_104 = arith.constant 1 : index
    %c0_105 = arith.constant 0 : index
    %c0_106 = arith.constant 0 : index
    %119 = vector.load %arg3[%c1_104, %c0_105, %c0_106] : memref<4x4x4xf32, #tpu.memory_space<vmem>>, vector<1x4x4xf32>
    %120 = vector.shape_cast %119 : vector<1x4x4xf32> to vector<4x4xf32>
    %cst_107 = arith.constant dense<0.000000e+00> : vector<4x16xf32>
    %121 = tpu.matmul %120, %112, %cst_107 {dimension_numbers = #tpu.dot_dimension_numbers<[1], [0], [0], [1], [0, 0, 1, 1], [], []>} : vector<4x4xf32>, vector<4x16xf32>, vector<4x16xf32> -> vector<4x16xf32>
    %cst_108 = arith.constant 0.000000e+00 : f32
    %122 = vector.broadcast %cst_108 : f32 to vector<4x16xf32>
    %123 = arith.maximumf %121, %122 : vector<4x16xf32>
    %cst_109 = arith.constant dense<0.000000e+00> : vector<8x16xf32>
    %124 = tpu.matmul %0, %123, %cst_109 {dimension_numbers = #tpu.dot_dimension_numbers<[1], [0], [0], [1], [0, 0, 1, 1], [], []>} : vector<8x4xf32>, vector<4x16xf32>, vector<8x16xf32> -> vector<8x16xf32>
    %c2_110 = arith.constant 2 : index
    %c0_111 = arith.constant 0 : index
    %c0_112 = arith.constant 0 : index
    %125 = vector.load %arg3[%c2_110, %c0_111, %c0_112] : memref<4x4x4xf32, #tpu.memory_space<vmem>>, vector<1x4x4xf32>
    %126 = vector.shape_cast %125 : vector<1x4x4xf32> to vector<4x4xf32>
    %cst_113 = arith.constant dense<0.000000e+00> : vector<4x16xf32>
    %127 = tpu.matmul %126, %112, %cst_113 {dimension_numbers = #tpu.dot_dimension_numbers<[1], [0], [0], [1], [0, 0, 1, 1], [], []>} : vector<4x4xf32>, vector<4x16xf32>, vector<4x16xf32> -> vector<4x16xf32>
    %cst_114 = arith.constant 0.000000e+00 : f32
    %128 = vector.broadcast %cst_114 : f32 to vector<4x16xf32>
    %129 = arith.maximumf %127, %128 : vector<4x16xf32>
    %cst_115 = arith.constant dense<0.000000e+00> : vector<8x16xf32>
    %130 = tpu.matmul %0, %129, %cst_115 {dimension_numbers = #tpu.dot_dimension_numbers<[1], [0], [0], [1], [0, 0, 1, 1], [], []>} : vector<8x4xf32>, vector<4x16xf32>, vector<8x16xf32> -> vector<8x16xf32>
    %c3_116 = arith.constant 3 : index
    %c0_117 = arith.constant 0 : index
    %c0_118 = arith.constant 0 : index
    %131 = vector.load %arg3[%c3_116, %c0_117, %c0_118] : memref<4x4x4xf32, #tpu.memory_space<vmem>>, vector<1x4x4xf32>
    %132 = vector.shape_cast %131 : vector<1x4x4xf32> to vector<4x4xf32>
    %cst_119 = arith.constant dense<0.000000e+00> : vector<4x16xf32>
    %133 = tpu.matmul %132, %112, %cst_119 {dimension_numbers = #tpu.dot_dimension_numbers<[1], [0], [0], [1], [0, 0, 1, 1], [], []>} : vector<4x4xf32>, vector<4x16xf32>, vector<4x16xf32> -> vector<4x16xf32>
    %cst_120 = arith.constant 0.000000e+00 : f32
    %134 = vector.broadcast %cst_120 : f32 to vector<4x16xf32>
    %135 = arith.maximumf %133, %134 : vector<4x16xf32>
    %cst_121 = arith.constant dense<0.000000e+00> : vector<8x16xf32>
    %136 = tpu.matmul %0, %135, %cst_121 {dimension_numbers = #tpu.dot_dimension_numbers<[1], [0], [0], [1], [0, 0, 1, 1], [], []>} : vector<8x4xf32>, vector<4x16xf32>, vector<8x16xf32> -> vector<8x16xf32>
    %137 = vector.extract_strided_slice %118 {offsets = [0, 0], sizes = [2, 16], strides = [1, 1]} : vector<8x16xf32> to vector<2x16xf32>
    %c0_122 = arith.constant 0 : index
    %c0_123 = arith.constant 0 : index
    %c0_124 = arith.constant 0 : index
    %138 = vector.load %arg5[%c0_122, %c0_123, %c0_124] : memref<4x16x64xf32, #tpu.memory_space<vmem>>, vector<1x16x64xf32>
    %139 = vector.shape_cast %138 : vector<1x16x64xf32> to vector<16x64xf32>
    %cst_125 = arith.constant dense<0.000000e+00> : vector<2x64xf32>
    %140 = tpu.matmul %137, %139, %cst_125 {dimension_numbers = #tpu.dot_dimension_numbers<[1], [0], [0], [1], [0, 0, 1, 1], [], []>} : vector<2x16xf32>, vector<16x64xf32>, vector<2x64xf32> -> vector<2x64xf32>
    %141 = vector.extract_strided_slice %118 {offsets = [2, 0], sizes = [2, 16], strides = [1, 1]} : vector<8x16xf32> to vector<2x16xf32>
    %c1_126 = arith.constant 1 : index
    %c0_127 = arith.constant 0 : index
    %c0_128 = arith.constant 0 : index
    %142 = vector.load %arg5[%c1_126, %c0_127, %c0_128] : memref<4x16x64xf32, #tpu.memory_space<vmem>>, vector<1x16x64xf32>
    %143 = vector.shape_cast %142 : vector<1x16x64xf32> to vector<16x64xf32>
    %cst_129 = arith.constant dense<0.000000e+00> : vector<2x64xf32>
    %144 = tpu.matmul %141, %143, %cst_129 {dimension_numbers = #tpu.dot_dimension_numbers<[1], [0], [0], [1], [0, 0, 1, 1], [], []>} : vector<2x16xf32>, vector<16x64xf32>, vector<2x64xf32> -> vector<2x64xf32>
    %145 = arith.addf %140, %144 : vector<2x64xf32>
    %146 = vector.extract_strided_slice %124 {offsets = [0, 0], sizes = [2, 16], strides = [1, 1]} : vector<8x16xf32> to vector<2x16xf32>
    %c2_130 = arith.constant 2 : index
    %c0_131 = arith.constant 0 : index
    %c0_132 = arith.constant 0 : index
    %147 = vector.load %arg5[%c2_130, %c0_131, %c0_132] : memref<4x16x64xf32, #tpu.memory_space<vmem>>, vector<1x16x64xf32>
    %148 = vector.shape_cast %147 : vector<1x16x64xf32> to vector<16x64xf32>
    %cst_133 = arith.constant dense<0.000000e+00> : vector<2x64xf32>
    %149 = tpu.matmul %146, %148, %cst_133 {dimension_numbers = #tpu.dot_dimension_numbers<[1], [0], [0], [1], [0, 0, 1, 1], [], []>} : vector<2x16xf32>, vector<16x64xf32>, vector<2x64xf32> -> vector<2x64xf32>
    %150 = arith.addf %145, %149 : vector<2x64xf32>
    %151 = vector.extract_strided_slice %124 {offsets = [2, 0], sizes = [2, 16], strides = [1, 1]} : vector<8x16xf32> to vector<2x16xf32>
    %c3_134 = arith.constant 3 : index
    %c0_135 = arith.constant 0 : index
    %c0_136 = arith.constant 0 : index
    %152 = vector.load %arg5[%c3_134, %c0_135, %c0_136] : memref<4x16x64xf32, #tpu.memory_space<vmem>>, vector<1x16x64xf32>
    %153 = vector.shape_cast %152 : vector<1x16x64xf32> to vector<16x64xf32>
    %cst_137 = arith.constant dense<0.000000e+00> : vector<2x64xf32>
    %154 = tpu.matmul %151, %153, %cst_137 {dimension_numbers = #tpu.dot_dimension_numbers<[1], [0], [0], [1], [0, 0, 1, 1], [], []>} : vector<2x16xf32>, vector<16x64xf32>, vector<2x64xf32> -> vector<2x64xf32>
    %155 = arith.addf %150, %154 : vector<2x64xf32>
    %156 = vector.extract_strided_slice %118 {offsets = [4, 0], sizes = [2, 16], strides = [1, 1]} : vector<8x16xf32> to vector<2x16xf32>
    %c0_138 = arith.constant 0 : index
    %c0_139 = arith.constant 0 : index
    %c0_140 = arith.constant 0 : index
    %157 = vector.load %arg5[%c0_138, %c0_139, %c0_140] : memref<4x16x64xf32, #tpu.memory_space<vmem>>, vector<1x16x64xf32>
    %158 = vector.shape_cast %157 : vector<1x16x64xf32> to vector<16x64xf32>
    %cst_141 = arith.constant dense<0.000000e+00> : vector<2x64xf32>
    %159 = tpu.matmul %156, %158, %cst_141 {dimension_numbers = #tpu.dot_dimension_numbers<[1], [0], [0], [1], [0, 0, 1, 1], [], []>} : vector<2x16xf32>, vector<16x64xf32>, vector<2x64xf32> -> vector<2x64xf32>
    %160 = vector.extract_strided_slice %118 {offsets = [6, 0], sizes = [2, 16], strides = [1, 1]} : vector<8x16xf32> to vector<2x16xf32>
    %c1_142 = arith.constant 1 : index
    %c0_143 = arith.constant 0 : index
    %c0_144 = arith.constant 0 : index
    %161 = vector.load %arg5[%c1_142, %c0_143, %c0_144] : memref<4x16x64xf32, #tpu.memory_space<vmem>>, vector<1x16x64xf32>
    %162 = vector.shape_cast %161 : vector<1x16x64xf32> to vector<16x64xf32>
    %cst_145 = arith.constant dense<0.000000e+00> : vector<2x64xf32>
    %163 = tpu.matmul %160, %162, %cst_145 {dimension_numbers = #tpu.dot_dimension_numbers<[1], [0], [0], [1], [0, 0, 1, 1], [], []>} : vector<2x16xf32>, vector<16x64xf32>, vector<2x64xf32> -> vector<2x64xf32>
    %164 = arith.addf %159, %163 : vector<2x64xf32>
    %165 = vector.extract_strided_slice %124 {offsets = [4, 0], sizes = [2, 16], strides = [1, 1]} : vector<8x16xf32> to vector<2x16xf32>
    %c2_146 = arith.constant 2 : index
    %c0_147 = arith.constant 0 : index
    %c0_148 = arith.constant 0 : index
    %166 = vector.load %arg5[%c2_146, %c0_147, %c0_148] : memref<4x16x64xf32, #tpu.memory_space<vmem>>, vector<1x16x64xf32>
    %167 = vector.shape_cast %166 : vector<1x16x64xf32> to vector<16x64xf32>
    %cst_149 = arith.constant dense<0.000000e+00> : vector<2x64xf32>
    %168 = tpu.matmul %165, %167, %cst_149 {dimension_numbers = #tpu.dot_dimension_numbers<[1], [0], [0], [1], [0, 0, 1, 1], [], []>} : vector<2x16xf32>, vector<16x64xf32>, vector<2x64xf32> -> vector<2x64xf32>
    %169 = arith.addf %164, %168 : vector<2x64xf32>
    %170 = vector.extract_strided_slice %124 {offsets = [6, 0], sizes = [2, 16], strides = [1, 1]} : vector<8x16xf32> to vector<2x16xf32>
    %c3_150 = arith.constant 3 : index
    %c0_151 = arith.constant 0 : index
    %c0_152 = arith.constant 0 : index
    %171 = vector.load %arg5[%c3_150, %c0_151, %c0_152] : memref<4x16x64xf32, #tpu.memory_space<vmem>>, vector<1x16x64xf32>
    %172 = vector.shape_cast %171 : vector<1x16x64xf32> to vector<16x64xf32>
    %cst_153 = arith.constant dense<0.000000e+00> : vector<2x64xf32>
    %173 = tpu.matmul %170, %172, %cst_153 {dimension_numbers = #tpu.dot_dimension_numbers<[1], [0], [0], [1], [0, 0, 1, 1], [], []>} : vector<2x16xf32>, vector<16x64xf32>, vector<2x64xf32> -> vector<2x64xf32>
    %174 = arith.addf %169, %173 : vector<2x64xf32>
    %175 = vector.extract_strided_slice %130 {offsets = [0, 0], sizes = [2, 16], strides = [1, 1]} : vector<8x16xf32> to vector<2x16xf32>
    %c0_154 = arith.constant 0 : index
    %c0_155 = arith.constant 0 : index
    %c0_156 = arith.constant 0 : index
    %176 = vector.load %arg5[%c0_154, %c0_155, %c0_156] : memref<4x16x64xf32, #tpu.memory_space<vmem>>, vector<1x16x64xf32>
    %177 = vector.shape_cast %176 : vector<1x16x64xf32> to vector<16x64xf32>
    %cst_157 = arith.constant dense<0.000000e+00> : vector<2x64xf32>
    %178 = tpu.matmul %175, %177, %cst_157 {dimension_numbers = #tpu.dot_dimension_numbers<[1], [0], [0], [1], [0, 0, 1, 1], [], []>} : vector<2x16xf32>, vector<16x64xf32>, vector<2x64xf32> -> vector<2x64xf32>
    %179 = vector.extract_strided_slice %130 {offsets = [2, 0], sizes = [2, 16], strides = [1, 1]} : vector<8x16xf32> to vector<2x16xf32>
    %c1_158 = arith.constant 1 : index
    %c0_159 = arith.constant 0 : index
    %c0_160 = arith.constant 0 : index
    %180 = vector.load %arg5[%c1_158, %c0_159, %c0_160] : memref<4x16x64xf32, #tpu.memory_space<vmem>>, vector<1x16x64xf32>
    %181 = vector.shape_cast %180 : vector<1x16x64xf32> to vector<16x64xf32>
    %cst_161 = arith.constant dense<0.000000e+00> : vector<2x64xf32>
    %182 = tpu.matmul %179, %181, %cst_161 {dimension_numbers = #tpu.dot_dimension_numbers<[1], [0], [0], [1], [0, 0, 1, 1], [], []>} : vector<2x16xf32>, vector<16x64xf32>, vector<2x64xf32> -> vector<2x64xf32>
    %183 = arith.addf %178, %182 : vector<2x64xf32>
    %184 = vector.extract_strided_slice %136 {offsets = [0, 0], sizes = [2, 16], strides = [1, 1]} : vector<8x16xf32> to vector<2x16xf32>
    %c2_162 = arith.constant 2 : index
    %c0_163 = arith.constant 0 : index
    %c0_164 = arith.constant 0 : index
    %185 = vector.load %arg5[%c2_162, %c0_163, %c0_164] : memref<4x16x64xf32, #tpu.memory_space<vmem>>, vector<1x16x64xf32>
    %186 = vector.shape_cast %185 : vector<1x16x64xf32> to vector<16x64xf32>
    %cst_165 = arith.constant dense<0.000000e+00> : vector<2x64xf32>
    %187 = tpu.matmul %184, %186, %cst_165 {dimension_numbers = #tpu.dot_dimension_numbers<[1], [0], [0], [1], [0, 0, 1, 1], [], []>} : vector<2x16xf32>, vector<16x64xf32>, vector<2x64xf32> -> vector<2x64xf32>
    %188 = arith.addf %183, %187 : vector<2x64xf32>
    %189 = vector.extract_strided_slice %136 {offsets = [2, 0], sizes = [2, 16], strides = [1, 1]} : vector<8x16xf32> to vector<2x16xf32>
    %c3_166 = arith.constant 3 : index
    %c0_167 = arith.constant 0 : index
    %c0_168 = arith.constant 0 : index
    %190 = vector.load %arg5[%c3_166, %c0_167, %c0_168] : memref<4x16x64xf32, #tpu.memory_space<vmem>>, vector<1x16x64xf32>
    %191 = vector.shape_cast %190 : vector<1x16x64xf32> to vector<16x64xf32>
    %cst_169 = arith.constant dense<0.000000e+00> : vector<2x64xf32>
    %192 = tpu.matmul %189, %191, %cst_169 {dimension_numbers = #tpu.dot_dimension_numbers<[1], [0], [0], [1], [0, 0, 1, 1], [], []>} : vector<2x16xf32>, vector<16x64xf32>, vector<2x64xf32> -> vector<2x64xf32>
    %193 = arith.addf %188, %192 : vector<2x64xf32>
    %194 = vector.extract_strided_slice %130 {offsets = [4, 0], sizes = [2, 16], strides = [1, 1]} : vector<8x16xf32> to vector<2x16xf32>
    %c0_170 = arith.constant 0 : index
    %c0_171 = arith.constant 0 : index
    %c0_172 = arith.constant 0 : index
    %195 = vector.load %arg5[%c0_170, %c0_171, %c0_172] : memref<4x16x64xf32, #tpu.memory_space<vmem>>, vector<1x16x64xf32>
    %196 = vector.shape_cast %195 : vector<1x16x64xf32> to vector<16x64xf32>
    %cst_173 = arith.constant dense<0.000000e+00> : vector<2x64xf32>
    %197 = tpu.matmul %194, %196, %cst_173 {dimension_numbers = #tpu.dot_dimension_numbers<[1], [0], [0], [1], [0, 0, 1, 1], [], []>} : vector<2x16xf32>, vector<16x64xf32>, vector<2x64xf32> -> vector<2x64xf32>
    %198 = vector.extract_strided_slice %130 {offsets = [6, 0], sizes = [2, 16], strides = [1, 1]} : vector<8x16xf32> to vector<2x16xf32>
    %c1_174 = arith.constant 1 : index
    %c0_175 = arith.constant 0 : index
    %c0_176 = arith.constant 0 : index
    %199 = vector.load %arg5[%c1_174, %c0_175, %c0_176] : memref<4x16x64xf32, #tpu.memory_space<vmem>>, vector<1x16x64xf32>
    %200 = vector.shape_cast %199 : vector<1x16x64xf32> to vector<16x64xf32>
    %cst_177 = arith.constant dense<0.000000e+00> : vector<2x64xf32>
    %201 = tpu.matmul %198, %200, %cst_177 {dimension_numbers = #tpu.dot_dimension_numbers<[1], [0], [0], [1], [0, 0, 1, 1], [], []>} : vector<2x16xf32>, vector<16x64xf32>, vector<2x64xf32> -> vector<2x64xf32>
    %202 = arith.addf %197, %201 : vector<2x64xf32>
    %203 = vector.extract_strided_slice %136 {offsets = [4, 0], sizes = [2, 16], strides = [1, 1]} : vector<8x16xf32> to vector<2x16xf32>
    %c2_178 = arith.constant 2 : index
    %c0_179 = arith.constant 0 : index
    %c0_180 = arith.constant 0 : index
    %204 = vector.load %arg5[%c2_178, %c0_179, %c0_180] : memref<4x16x64xf32, #tpu.memory_space<vmem>>, vector<1x16x64xf32>
    %205 = vector.shape_cast %204 : vector<1x16x64xf32> to vector<16x64xf32>
    %cst_181 = arith.constant dense<0.000000e+00> : vector<2x64xf32>
    %206 = tpu.matmul %203, %205, %cst_181 {dimension_numbers = #tpu.dot_dimension_numbers<[1], [0], [0], [1], [0, 0, 1, 1], [], []>} : vector<2x16xf32>, vector<16x64xf32>, vector<2x64xf32> -> vector<2x64xf32>
    %207 = arith.addf %202, %206 : vector<2x64xf32>
    %208 = vector.extract_strided_slice %136 {offsets = [6, 0], sizes = [2, 16], strides = [1, 1]} : vector<8x16xf32> to vector<2x16xf32>
    %c3_182 = arith.constant 3 : index
    %c0_183 = arith.constant 0 : index
    %c0_184 = arith.constant 0 : index
    %209 = vector.load %arg5[%c3_182, %c0_183, %c0_184] : memref<4x16x64xf32, #tpu.memory_space<vmem>>, vector<1x16x64xf32>
    %210 = vector.shape_cast %209 : vector<1x16x64xf32> to vector<16x64xf32>
    %cst_185 = arith.constant dense<0.000000e+00> : vector<2x64xf32>
    %211 = tpu.matmul %208, %210, %cst_185 {dimension_numbers = #tpu.dot_dimension_numbers<[1], [0], [0], [1], [0, 0, 1, 1], [], []>} : vector<2x16xf32>, vector<16x64xf32>, vector<2x64xf32> -> vector<2x64xf32>
    %212 = arith.addf %207, %211 : vector<2x64xf32>
    %213 = vector.shape_cast %155 : vector<2x64xf32> to vector<2x1x64xf32>
    %214 = vector.shape_cast %174 : vector<2x64xf32> to vector<2x1x64xf32>
    %215 = vector.shape_cast %193 : vector<2x64xf32> to vector<2x1x64xf32>
    %216 = vector.shape_cast %212 : vector<2x64xf32> to vector<2x1x64xf32>
    %217 = tpu.concatenate %213, %214, %215, %216 in 1 : vector<2x1x64xf32>, vector<2x1x64xf32>, vector<2x1x64xf32>, vector<2x1x64xf32> -> vector<2x4x64xf32>
    %c0_186 = arith.constant 0 : index
    %c0_187 = arith.constant 0 : index
    %c1_188 = arith.constant 1 : index
    %c0_189 = arith.constant 0 : index
    %c0_190 = arith.constant 0 : index
    %218 = vector.load %arg6[%c0_186, %c0_187, %c1_188, %c0_189, %c0_190] : memref<1x2x8x4x64xf32, #tpu.memory_space<vmem>>, vector<1x2x1x4x64xf32>
    %219 = vector.shape_cast %218 : vector<1x2x1x4x64xf32> to vector<2x4x64xf32>
    %220 = vector.shape_cast %217 : vector<2x4x64xf32> to vector<1x2x1x4x64xf32>
    tpu.vector_store %arg6[%c0_186, %c0_187, %c1_188, %c0_189, %c0_190], %220 {strides = array<i32>} : memref<1x2x8x4x64xf32, #tpu.memory_space<vmem>>, vector<1x2x1x4x64xf32>,
    %c0_191 = arith.constant 0 : index
    %c0_192 = arith.constant 0 : index
    %c2_193 = arith.constant 2 : index
    %c0_194 = arith.constant 0 : index
    %221 = vector.load %arg2[%c0_191, %c0_192, %c2_193, %c0_194] : memref<1x4x8x16xf32, #tpu.memory_space<vmem>>, vector<1x4x1x16xf32>
    %222 = vector.shape_cast %221 : vector<1x4x1x16xf32> to vector<4x16xf32>
    %c0_195 = arith.constant 0 : index
    %c0_196 = arith.constant 0 : index
    %c0_197 = arith.constant 0 : index
    %223 = vector.load %arg3[%c0_195, %c0_196, %c0_197] : memref<4x4x4xf32, #tpu.memory_space<vmem>>, vector<1x4x4xf32>
    %224 = vector.shape_cast %223 : vector<1x4x4xf32> to vector<4x4xf32>
    %cst_198 = arith.constant dense<0.000000e+00> : vector<4x16xf32>
    %225 = tpu.matmul %224, %222, %cst_198 {dimension_numbers = #tpu.dot_dimension_numbers<[1], [0], [0], [1], [0, 0, 1, 1], [], []>} : vector<4x4xf32>, vector<4x16xf32>, vector<4x16xf32> -> vector<4x16xf32>
    %cst_199 = arith.constant 0.000000e+00 : f32
    %226 = vector.broadcast %cst_199 : f32 to vector<4x16xf32>
    %227 = arith.maximumf %225, %226 : vector<4x16xf32>
    %cst_200 = arith.constant dense<0.000000e+00> : vector<8x16xf32>
    %228 = tpu.matmul %0, %227, %cst_200 {dimension_numbers = #tpu.dot_dimension_numbers<[1], [0], [0], [1], [0, 0, 1, 1], [], []>} : vector<8x4xf32>, vector<4x16xf32>, vector<8x16xf32> -> vector<8x16xf32>
    %c1_201 = arith.constant 1 : index
    %c0_202 = arith.constant 0 : index
    %c0_203 = arith.constant 0 : index
    %229 = vector.load %arg3[%c1_201, %c0_202, %c0_203] : memref<4x4x4xf32, #tpu.memory_space<vmem>>, vector<1x4x4xf32>
    %230 = vector.shape_cast %229 : vector<1x4x4xf32> to vector<4x4xf32>
    %cst_204 = arith.constant dense<0.000000e+00> : vector<4x16xf32>
    %231 = tpu.matmul %230, %222, %cst_204 {dimension_numbers = #tpu.dot_dimension_numbers<[1], [0], [0], [1], [0, 0, 1, 1], [], []>} : vector<4x4xf32>, vector<4x16xf32>, vector<4x16xf32> -> vector<4x16xf32>
    %cst_205 = arith.constant 0.000000e+00 : f32
    %232 = vector.broadcast %cst_205 : f32 to vector<4x16xf32>
    %233 = arith.maximumf %231, %232 : vector<4x16xf32>
    %cst_206 = arith.constant dense<0.000000e+00> : vector<8x16xf32>
    %234 = tpu.matmul %0, %233, %cst_206 {dimension_numbers = #tpu.dot_dimension_numbers<[1], [0], [0], [1], [0, 0, 1, 1], [], []>} : vector<8x4xf32>, vector<4x16xf32>, vector<8x16xf32> -> vector<8x16xf32>
    %c2_207 = arith.constant 2 : index
    %c0_208 = arith.constant 0 : index
    %c0_209 = arith.constant 0 : index
    %235 = vector.load %arg3[%c2_207, %c0_208, %c0_209] : memref<4x4x4xf32, #tpu.memory_space<vmem>>, vector<1x4x4xf32>
    %236 = vector.shape_cast %235 : vector<1x4x4xf32> to vector<4x4xf32>
    %cst_210 = arith.constant dense<0.000000e+00> : vector<4x16xf32>
    %237 = tpu.matmul %236, %222, %cst_210 {dimension_numbers = #tpu.dot_dimension_numbers<[1], [0], [0], [1], [0, 0, 1, 1], [], []>} : vector<4x4xf32>, vector<4x16xf32>, vector<4x16xf32> -> vector<4x16xf32>
    %cst_211 = arith.constant 0.000000e+00 : f32
    %238 = vector.broadcast %cst_211 : f32 to vector<4x16xf32>
    %239 = arith.maximumf %237, %238 : vector<4x16xf32>
    %cst_212 = arith.constant dense<0.000000e+00> : vector<8x16xf32>
    %240 = tpu.matmul %0, %239, %cst_212 {dimension_numbers = #tpu.dot_dimension_numbers<[1], [0], [0], [1], [0, 0, 1, 1], [], []>} : vector<8x4xf32>, vector<4x16xf32>, vector<8x16xf32> -> vector<8x16xf32>
    %c3_213 = arith.constant 3 : index
    %c0_214 = arith.constant 0 : index
    %c0_215 = arith.constant 0 : index
    %241 = vector.load %arg3[%c3_213, %c0_214, %c0_215] : memref<4x4x4xf32, #tpu.memory_space<vmem>>, vector<1x4x4xf32>
    %242 = vector.shape_cast %241 : vector<1x4x4xf32> to vector<4x4xf32>
    %cst_216 = arith.constant dense<0.000000e+00> : vector<4x16xf32>
    %243 = tpu.matmul %242, %222, %cst_216 {dimension_numbers = #tpu.dot_dimension_numbers<[1], [0], [0], [1], [0, 0, 1, 1], [], []>} : vector<4x4xf32>, vector<4x16xf32>, vector<4x16xf32> -> vector<4x16xf32>
    %cst_217 = arith.constant 0.000000e+00 : f32
    %244 = vector.broadcast %cst_217 : f32 to vector<4x16xf32>
    %245 = arith.maximumf %243, %244 : vector<4x16xf32>
    %cst_218 = arith.constant dense<0.000000e+00> : vector<8x16xf32>
    %246 = tpu.matmul %0, %245, %cst_218 {dimension_numbers = #tpu.dot_dimension_numbers<[1], [0], [0], [1], [0, 0, 1, 1], [], []>} : vector<8x4xf32>, vector<4x16xf32>, vector<8x16xf32> -> vector<8x16xf32>
    %247 = vector.extract_strided_slice %228 {offsets = [0, 0], sizes = [2, 16], strides = [1, 1]} : vector<8x16xf32> to vector<2x16xf32>
    %c0_219 = arith.constant 0 : index
    %c0_220 = arith.constant 0 : index
    %c0_221 = arith.constant 0 : index
    %248 = vector.load %arg5[%c0_219, %c0_220, %c0_221] : memref<4x16x64xf32, #tpu.memory_space<vmem>>, vector<1x16x64xf32>
    %249 = vector.shape_cast %248 : vector<1x16x64xf32> to vector<16x64xf32>
    %cst_222 = arith.constant dense<0.000000e+00> : vector<2x64xf32>
    %250 = tpu.matmul %247, %249, %cst_222 {dimension_numbers = #tpu.dot_dimension_numbers<[1], [0], [0], [1], [0, 0, 1, 1], [], []>} : vector<2x16xf32>, vector<16x64xf32>, vector<2x64xf32> -> vector<2x64xf32>
    %251 = vector.extract_strided_slice %228 {offsets = [2, 0], sizes = [2, 16], strides = [1, 1]} : vector<8x16xf32> to vector<2x16xf32>
    %c1_223 = arith.constant 1 : index
    %c0_224 = arith.constant 0 : index
    %c0_225 = arith.constant 0 : index
    %252 = vector.load %arg5[%c1_223, %c0_224, %c0_225] : memref<4x16x64xf32, #tpu.memory_space<vmem>>, vector<1x16x64xf32>
    %253 = vector.shape_cast %252 : vector<1x16x64xf32> to vector<16x64xf32>
    %cst_226 = arith.constant dense<0.000000e+00> : vector<2x64xf32>
    %254 = tpu.matmul %251, %253, %cst_226 {dimension_numbers = #tpu.dot_dimension_numbers<[1], [0], [0], [1], [0, 0, 1, 1], [], []>} : vector<2x16xf32>, vector<16x64xf32>, vector<2x64xf32> -> vector<2x64xf32>
    %255 = arith.addf %250, %254 : vector<2x64xf32>
    %256 = vector.extract_strided_slice %234 {offsets = [0, 0], sizes = [2, 16], strides = [1, 1]} : vector<8x16xf32> to vector<2x16xf32>
    %c2_227 = arith.constant 2 : index
    %c0_228 = arith.constant 0 : index
    %c0_229 = arith.constant 0 : index
    %257 = vector.load %arg5[%c2_227, %c0_228, %c0_229] : memref<4x16x64xf32, #tpu.memory_space<vmem>>, vector<1x16x64xf32>
    %258 = vector.shape_cast %257 : vector<1x16x64xf32> to vector<16x64xf32>
    %cst_230 = arith.constant dense<0.000000e+00> : vector<2x64xf32>
    %259 = tpu.matmul %256, %258, %cst_230 {dimension_numbers = #tpu.dot_dimension_numbers<[1], [0], [0], [1], [0, 0, 1, 1], [], []>} : vector<2x16xf32>, vector<16x64xf32>, vector<2x64xf32> -> vector<2x64xf32>
    %260 = arith.addf %255, %259 : vector<2x64xf32>
    %261 = vector.extract_strided_slice %234 {offsets = [2, 0], sizes = [2, 16], strides = [1, 1]} : vector<8x16xf32> to vector<2x16xf32>
    %c3_231 = arith.constant 3 : index
    %c0_232 = arith.constant 0 : index
    %c0_233 = arith.constant 0 : index
    %262 = vector.load %arg5[%c3_231, %c0_232, %c0_233] : memref<4x16x64xf32, #tpu.memory_space<vmem>>, vector<1x16x64xf32>
    %263 = vector.shape_cast %262 : vector<1x16x64xf32> to vector<16x64xf32>
    %cst_234 = arith.constant dense<0.000000e+00> : vector<2x64xf32>
    %264 = tpu.matmul %261, %263, %cst_234 {dimension_numbers = #tpu.dot_dimension_numbers<[1], [0], [0], [1], [0, 0, 1, 1], [], []>} : vector<2x16xf32>, vector<16x64xf32>, vector<2x64xf32> -> vector<2x64xf32>
    %265 = arith.addf %260, %264 : vector<2x64xf32>
    %266 = vector.extract_strided_slice %228 {offsets = [4, 0], sizes = [2, 16], strides = [1, 1]} : vector<8x16xf32> to vector<2x16xf32>
    %c0_235 = arith.constant 0 : index
    %c0_236 = arith.constant 0 : index
    %c0_237 = arith.constant 0 : index
    %267 = vector.load %arg5[%c0_235, %c0_236, %c0_237] : memref<4x16x64xf32, #tpu.memory_space<vmem>>, vector<1x16x64xf32>
    %268 = vector.shape_cast %267 : vector<1x16x64xf32> to vector<16x64xf32>
    %cst_238 = arith.constant dense<0.000000e+00> : vector<2x64xf32>
    %269 = tpu.matmul %266, %268, %cst_238 {dimension_numbers = #tpu.dot_dimension_numbers<[1], [0], [0], [1], [0, 0, 1, 1], [], []>} : vector<2x16xf32>, vector<16x64xf32>, vector<2x64xf32> -> vector<2x64xf32>
    %270 = vector.extract_strided_slice %228 {offsets = [6, 0], sizes = [2, 16], strides = [1, 1]} : vector<8x16xf32> to vector<2x16xf32>
    %c1_239 = arith.constant 1 : index
    %c0_240 = arith.constant 0 : index
    %c0_241 = arith.constant 0 : index
    %271 = vector.load %arg5[%c1_239, %c0_240, %c0_241] : memref<4x16x64xf32, #tpu.memory_space<vmem>>, vector<1x16x64xf32>
    %272 = vector.shape_cast %271 : vector<1x16x64xf32> to vector<16x64xf32>
    %cst_242 = arith.constant dense<0.000000e+00> : vector<2x64xf32>
    %273 = tpu.matmul %270, %272, %cst_242 {dimension_numbers = #tpu.dot_dimension_numbers<[1], [0], [0], [1], [0, 0, 1, 1], [], []>} : vector<2x16xf32>, vector<16x64xf32>, vector<2x64xf32> -> vector<2x64xf32>
    %274 = arith.addf %269, %273 : vector<2x64xf32>
    %275 = vector.extract_strided_slice %234 {offsets = [4, 0], sizes = [2, 16], strides = [1, 1]} : vector<8x16xf32> to vector<2x16xf32>
    %c2_243 = arith.constant 2 : index
    %c0_244 = arith.constant 0 : index
    %c0_245 = arith.constant 0 : index
    %276 = vector.load %arg5[%c2_243, %c0_244, %c0_245] : memref<4x16x64xf32, #tpu.memory_space<vmem>>, vector<1x16x64xf32>
    %277 = vector.shape_cast %276 : vector<1x16x64xf32> to vector<16x64xf32>
    %cst_246 = arith.constant dense<0.000000e+00> : vector<2x64xf32>
    %278 = tpu.matmul %275, %277, %cst_246 {dimension_numbers = #tpu.dot_dimension_numbers<[1], [0], [0], [1], [0, 0, 1, 1], [], []>} : vector<2x16xf32>, vector<16x64xf32>, vector<2x64xf32> -> vector<2x64xf32>
    %279 = arith.addf %274, %278 : vector<2x64xf32>
    %280 = vector.extract_strided_slice %234 {offsets = [6, 0], sizes = [2, 16], strides = [1, 1]} : vector<8x16xf32> to vector<2x16xf32>
    %c3_247 = arith.constant 3 : index
    %c0_248 = arith.constant 0 : index
    %c0_249 = arith.constant 0 : index
    %281 = vector.load %arg5[%c3_247, %c0_248, %c0_249] : memref<4x16x64xf32, #tpu.memory_space<vmem>>, vector<1x16x64xf32>
    %282 = vector.shape_cast %281 : vector<1x16x64xf32> to vector<16x64xf32>
    %cst_250 = arith.constant dense<0.000000e+00> : vector<2x64xf32>
    %283 = tpu.matmul %280, %282, %cst_250 {dimension_numbers = #tpu.dot_dimension_numbers<[1], [0], [0], [1], [0, 0, 1, 1], [], []>} : vector<2x16xf32>, vector<16x64xf32>, vector<2x64xf32> -> vector<2x64xf32>
    %284 = arith.addf %279, %283 : vector<2x64xf32>
    %285 = vector.extract_strided_slice %240 {offsets = [0, 0], sizes = [2, 16], strides = [1, 1]} : vector<8x16xf32> to vector<2x16xf32>
    %c0_251 = arith.constant 0 : index
    %c0_252 = arith.constant 0 : index
    %c0_253 = arith.constant 0 : index
    %286 = vector.load %arg5[%c0_251, %c0_252, %c0_253] : memref<4x16x64xf32, #tpu.memory_space<vmem>>, vector<1x16x64xf32>
    %287 = vector.shape_cast %286 : vector<1x16x64xf32> to vector<16x64xf32>
    %cst_254 = arith.constant dense<0.000000e+00> : vector<2x64xf32>
    %288 = tpu.matmul %285, %287, %cst_254 {dimension_numbers = #tpu.dot_dimension_numbers<[1], [0], [0], [1], [0, 0, 1, 1], [], []>} : vector<2x16xf32>, vector<16x64xf32>, vector<2x64xf32> -> vector<2x64xf32>
    %289 = vector.extract_strided_slice %240 {offsets = [2, 0], sizes = [2, 16], strides = [1, 1]} : vector<8x16xf32> to vector<2x16xf32>
    %c1_255 = arith.constant 1 : index
    %c0_256 = arith.constant 0 : index
    %c0_257 = arith.constant 0 : index
    %290 = vector.load %arg5[%c1_255, %c0_256, %c0_257] : memref<4x16x64xf32, #tpu.memory_space<vmem>>, vector<1x16x64xf32>
    %291 = vector.shape_cast %290 : vector<1x16x64xf32> to vector<16x64xf32>
    %cst_258 = arith.constant dense<0.000000e+00> : vector<2x64xf32>
    %292 = tpu.matmul %289, %291, %cst_258 {dimension_numbers = #tpu.dot_dimension_numbers<[1], [0], [0], [1], [0, 0, 1, 1], [], []>} : vector<2x16xf32>, vector<16x64xf32>, vector<2x64xf32> -> vector<2x64xf32>
    %293 = arith.addf %288, %292 : vector<2x64xf32>
    %294 = vector.extract_strided_slice %246 {offsets = [0, 0], sizes = [2, 16], strides = [1, 1]} : vector<8x16xf32> to vector<2x16xf32>
    %c2_259 = arith.constant 2 : index
    %c0_260 = arith.constant 0 : index
    %c0_261 = arith.constant 0 : index
    %295 = vector.load %arg5[%c2_259, %c0_260, %c0_261] : memref<4x16x64xf32, #tpu.memory_space<vmem>>, vector<1x16x64xf32>
    %296 = vector.shape_cast %295 : vector<1x16x64xf32> to vector<16x64xf32>
    %cst_262 = arith.constant dense<0.000000e+00> : vector<2x64xf32>
    %297 = tpu.matmul %294, %296, %cst_262 {dimension_numbers = #tpu.dot_dimension_numbers<[1], [0], [0], [1], [0, 0, 1, 1], [], []>} : vector<2x16xf32>, vector<16x64xf32>, vector<2x64xf32> -> vector<2x64xf32>
    %298 = arith.addf %293, %297 : vector<2x64xf32>
    %299 = vector.extract_strided_slice %246 {offsets = [2, 0], sizes = [2, 16], strides = [1, 1]} : vector<8x16xf32> to vector<2x16xf32>
    %c3_263 = arith.constant 3 : index
    %c0_264 = arith.constant 0 : index
    %c0_265 = arith.constant 0 : index
    %300 = vector.load %arg5[%c3_263, %c0_264, %c0_265] : memref<4x16x64xf32, #tpu.memory_space<vmem>>, vector<1x16x64xf32>
    %301 = vector.shape_cast %300 : vector<1x16x64xf32> to vector<16x64xf32>
    %cst_266 = arith.constant dense<0.000000e+00> : vector<2x64xf32>
    %302 = tpu.matmul %299, %301, %cst_266 {dimension_numbers = #tpu.dot_dimension_numbers<[1], [0], [0], [1], [0, 0, 1, 1], [], []>} : vector<2x16xf32>, vector<16x64xf32>, vector<2x64xf32> -> vector<2x64xf32>
    %303 = arith.addf %298, %302 : vector<2x64xf32>
    %304 = vector.extract_strided_slice %240 {offsets = [4, 0], sizes = [2, 16], strides = [1, 1]} : vector<8x16xf32> to vector<2x16xf32>
    %c0_267 = arith.constant 0 : index
    %c0_268 = arith.constant 0 : index
    %c0_269 = arith.constant 0 : index
    %305 = vector.load %arg5[%c0_267, %c0_268, %c0_269] : memref<4x16x64xf32, #tpu.memory_space<vmem>>, vector<1x16x64xf32>
    %306 = vector.shape_cast %305 : vector<1x16x64xf32> to vector<16x64xf32>
    %cst_270 = arith.constant dense<0.000000e+00> : vector<2x64xf32>
    %307 = tpu.matmul %304, %306, %cst_270 {dimension_numbers = #tpu.dot_dimension_numbers<[1], [0], [0], [1], [0, 0, 1, 1], [], []>} : vector<2x16xf32>, vector<16x64xf32>, vector<2x64xf32> -> vector<2x64xf32>
    %308 = vector.extract_strided_slice %240 {offsets = [6, 0], sizes = [2, 16], strides = [1, 1]} : vector<8x16xf32> to vector<2x16xf32>
    %c1_271 = arith.constant 1 : index
    %c0_272 = arith.constant 0 : index
    %c0_273 = arith.constant 0 : index
    %309 = vector.load %arg5[%c1_271, %c0_272, %c0_273] : memref<4x16x64xf32, #tpu.memory_space<vmem>>, vector<1x16x64xf32>
    %310 = vector.shape_cast %309 : vector<1x16x64xf32> to vector<16x64xf32>
    %cst_274 = arith.constant dense<0.000000e+00> : vector<2x64xf32>
    %311 = tpu.matmul %308, %310, %cst_274 {dimension_numbers = #tpu.dot_dimension_numbers<[1], [0], [0], [1], [0, 0, 1, 1], [], []>} : vector<2x16xf32>, vector<16x64xf32>, vector<2x64xf32> -> vector<2x64xf32>
    %312 = arith.addf %307, %311 : vector<2x64xf32>
    %313 = vector.extract_strided_slice %246 {offsets = [4, 0], sizes = [2, 16], strides = [1, 1]} : vector<8x16xf32> to vector<2x16xf32>
    %c2_275 = arith.constant 2 : index
    %c0_276 = arith.constant 0 : index
    %c0_277 = arith.constant 0 : index
    %314 = vector.load %arg5[%c2_275, %c0_276, %c0_277] : memref<4x16x64xf32, #tpu.memory_space<vmem>>, vector<1x16x64xf32>
    %315 = vector.shape_cast %314 : vector<1x16x64xf32> to vector<16x64xf32>
    %cst_278 = arith.constant dense<0.000000e+00> : vector<2x64xf32>
    %316 = tpu.matmul %313, %315, %cst_278 {dimension_numbers = #tpu.dot_dimension_numbers<[1], [0], [0], [1], [0, 0, 1, 1], [], []>} : vector<2x16xf32>, vector<16x64xf32>, vector<2x64xf32> -> vector<2x64xf32>
    %317 = arith.addf %312, %316 : vector<2x64xf32>
    %318 = vector.extract_strided_slice %246 {offsets = [6, 0], sizes = [2, 16], strides = [1, 1]} : vector<8x16xf32> to vector<2x16xf32>
    %c3_279 = arith.constant 3 : index
    %c0_280 = arith.constant 0 : index
    %c0_281 = arith.constant 0 : index
    %319 = vector.load %arg5[%c3_279, %c0_280, %c0_281] : memref<4x16x64xf32, #tpu.memory_space<vmem>>, vector<1x16x64xf32>
    %320 = vector.shape_cast %319 : vector<1x16x64xf32> to vector<16x64xf32>
    %cst_282 = arith.constant dense<0.000000e+00> : vector<2x64xf32>
    %321 = tpu.matmul %318, %320, %cst_282 {dimension_numbers = #tpu.dot_dimension_numbers<[1], [0], [0], [1], [0, 0, 1, 1], [], []>} : vector<2x16xf32>, vector<16x64xf32>, vector<2x64xf32> -> vector<2x64xf32>
    %322 = arith.addf %317, %321 : vector<2x64xf32>
    %323 = vector.shape_cast %265 : vector<2x64xf32> to vector<2x1x64xf32>
    %324 = vector.shape_cast %284 : vector<2x64xf32> to vector<2x1x64xf32>
    %325 = vector.shape_cast %303 : vector<2x64xf32> to vector<2x1x64xf32>
    %326 = vector.shape_cast %322 : vector<2x64xf32> to vector<2x1x64xf32>
    %327 = tpu.concatenate %323, %324, %325, %326 in 1 : vector<2x1x64xf32>, vector<2x1x64xf32>, vector<2x1x64xf32>, vector<2x1x64xf32> -> vector<2x4x64xf32>
    %c0_283 = arith.constant 0 : index
    %c0_284 = arith.constant 0 : index
    %c2_285 = arith.constant 2 : index
    %c0_286 = arith.constant 0 : index
    %c0_287 = arith.constant 0 : index
    %328 = vector.load %arg6[%c0_283, %c0_284, %c2_285, %c0_286, %c0_287] : memref<1x2x8x4x64xf32, #tpu.memory_space<vmem>>, vector<1x2x1x4x64xf32>
    %329 = vector.shape_cast %328 : vector<1x2x1x4x64xf32> to vector<2x4x64xf32>
    %330 = vector.shape_cast %327 : vector<2x4x64xf32> to vector<1x2x1x4x64xf32>
    tpu.vector_store %arg6[%c0_283, %c0_284, %c2_285, %c0_286, %c0_287], %330 {strides = array<i32>} : memref<1x2x8x4x64xf32, #tpu.memory_space<vmem>>, vector<1x2x1x4x64xf32>,
    %c0_288 = arith.constant 0 : index
    %c0_289 = arith.constant 0 : index
    %c3_290 = arith.constant 3 : index
    %c0_291 = arith.constant 0 : index
    %331 = vector.load %arg2[%c0_288, %c0_289, %c3_290, %c0_291] : memref<1x4x8x16xf32, #tpu.memory_space<vmem>>, vector<1x4x1x16xf32>
    %332 = vector.shape_cast %331 : vector<1x4x1x16xf32> to vector<4x16xf32>
    %c0_292 = arith.constant 0 : index
    %c0_293 = arith.constant 0 : index
    %c0_294 = arith.constant 0 : index
    %333 = vector.load %arg3[%c0_292, %c0_293, %c0_294] : memref<4x4x4xf32, #tpu.memory_space<vmem>>, vector<1x4x4xf32>
    %334 = vector.shape_cast %333 : vector<1x4x4xf32> to vector<4x4xf32>
    %cst_295 = arith.constant dense<0.000000e+00> : vector<4x16xf32>
    %335 = tpu.matmul %334, %332, %cst_295 {dimension_numbers = #tpu.dot_dimension_numbers<[1], [0], [0], [1], [0, 0, 1, 1], [], []>} : vector<4x4xf32>, vector<4x16xf32>, vector<4x16xf32> -> vector<4x16xf32>
    %cst_296 = arith.constant 0.000000e+00 : f32
    %336 = vector.broadcast %cst_296 : f32 to vector<4x16xf32>
    %337 = arith.maximumf %335, %336 : vector<4x16xf32>
    %cst_297 = arith.constant dense<0.000000e+00> : vector<8x16xf32>
    %338 = tpu.matmul %0, %337, %cst_297 {dimension_numbers = #tpu.dot_dimension_numbers<[1], [0], [0], [1], [0, 0, 1, 1], [], []>} : vector<8x4xf32>, vector<4x16xf32>, vector<8x16xf32> -> vector<8x16xf32>
    %c1_298 = arith.constant 1 : index
    %c0_299 = arith.constant 0 : index
    %c0_300 = arith.constant 0 : index
    %339 = vector.load %arg3[%c1_298, %c0_299, %c0_300] : memref<4x4x4xf32, #tpu.memory_space<vmem>>, vector<1x4x4xf32>
    %340 = vector.shape_cast %339 : vector<1x4x4xf32> to vector<4x4xf32>
    %cst_301 = arith.constant dense<0.000000e+00> : vector<4x16xf32>
    %341 = tpu.matmul %340, %332, %cst_301 {dimension_numbers = #tpu.dot_dimension_numbers<[1], [0], [0], [1], [0, 0, 1, 1], [], []>} : vector<4x4xf32>, vector<4x16xf32>, vector<4x16xf32> -> vector<4x16xf32>
    %cst_302 = arith.constant 0.000000e+00 : f32
    %342 = vector.broadcast %cst_302 : f32 to vector<4x16xf32>
    %343 = arith.maximumf %341, %342 : vector<4x16xf32>
    %cst_303 = arith.constant dense<0.000000e+00> : vector<8x16xf32>
    %344 = tpu.matmul %0, %343, %cst_303 {dimension_numbers = #tpu.dot_dimension_numbers<[1], [0], [0], [1], [0, 0, 1, 1], [], []>} : vector<8x4xf32>, vector<4x16xf32>, vector<8x16xf32> -> vector<8x16xf32>
    %c2_304 = arith.constant 2 : index
    %c0_305 = arith.constant 0 : index
    %c0_306 = arith.constant 0 : index
    %345 = vector.load %arg3[%c2_304, %c0_305, %c0_306] : memref<4x4x4xf32, #tpu.memory_space<vmem>>, vector<1x4x4xf32>
    %346 = vector.shape_cast %345 : vector<1x4x4xf32> to vector<4x4xf32>
    %cst_307 = arith.constant dense<0.000000e+00> : vector<4x16xf32>
    %347 = tpu.matmul %346, %332, %cst_307 {dimension_numbers = #tpu.dot_dimension_numbers<[1], [0], [0], [1], [0, 0, 1, 1], [], []>} : vector<4x4xf32>, vector<4x16xf32>, vector<4x16xf32> -> vector<4x16xf32>
    %cst_308 = arith.constant 0.000000e+00 : f32
    %348 = vector.broadcast %cst_308 : f32 to vector<4x16xf32>
    %349 = arith.maximumf %347, %348 : vector<4x16xf32>
    %cst_309 = arith.constant dense<0.000000e+00> : vector<8x16xf32>
    %350 = tpu.matmul %0, %349, %cst_309 {dimension_numbers = #tpu.dot_dimension_numbers<[1], [0], [0], [1], [0, 0, 1, 1], [], []>} : vector<8x4xf32>, vector<4x16xf32>, vector<8x16xf32> -> vector<8x16xf32>
    %c3_310 = arith.constant 3 : index
    %c0_311 = arith.constant 0 : index
    %c0_312 = arith.constant 0 : index
    %351 = vector.load %arg3[%c3_310, %c0_311, %c0_312] : memref<4x4x4xf32, #tpu.memory_space<vmem>>, vector<1x4x4xf32>
    %352 = vector.shape_cast %351 : vector<1x4x4xf32> to vector<4x4xf32>
    %cst_313 = arith.constant dense<0.000000e+00> : vector<4x16xf32>
    %353 = tpu.matmul %352, %332, %cst_313 {dimension_numbers = #tpu.dot_dimension_numbers<[1], [0], [0], [1], [0, 0, 1, 1], [], []>} : vector<4x4xf32>, vector<4x16xf32>, vector<4x16xf32> -> vector<4x16xf32>
    %cst_314 = arith.constant 0.000000e+00 : f32
    %354 = vector.broadcast %cst_314 : f32 to vector<4x16xf32>
    %355 = arith.maximumf %353, %354 : vector<4x16xf32>
    %cst_315 = arith.constant dense<0.000000e+00> : vector<8x16xf32>
    %356 = tpu.matmul %0, %355, %cst_315 {dimension_numbers = #tpu.dot_dimension_numbers<[1], [0], [0], [1], [0, 0, 1, 1], [], []>} : vector<8x4xf32>, vector<4x16xf32>, vector<8x16xf32> -> vector<8x16xf32>
    %357 = vector.extract_strided_slice %338 {offsets = [0, 0], sizes = [2, 16], strides = [1, 1]} : vector<8x16xf32> to vector<2x16xf32>
    %c0_316 = arith.constant 0 : index
    %c0_317 = arith.constant 0 : index
    %c0_318 = arith.constant 0 : index
    %358 = vector.load %arg5[%c0_316, %c0_317, %c0_318] : memref<4x16x64xf32, #tpu.memory_space<vmem>>, vector<1x16x64xf32>
    %359 = vector.shape_cast %358 : vector<1x16x64xf32> to vector<16x64xf32>
    %cst_319 = arith.constant dense<0.000000e+00> : vector<2x64xf32>
    %360 = tpu.matmul %357, %359, %cst_319 {dimension_numbers = #tpu.dot_dimension_numbers<[1], [0], [0], [1], [0, 0, 1, 1], [], []>} : vector<2x16xf32>, vector<16x64xf32>, vector<2x64xf32> -> vector<2x64xf32>
    %361 = vector.extract_strided_slice %338 {offsets = [2, 0], sizes = [2, 16], strides = [1, 1]} : vector<8x16xf32> to vector<2x16xf32>
    %c1_320 = arith.constant 1 : index
    %c0_321 = arith.constant 0 : index
    %c0_322 = arith.constant 0 : index
    %362 = vector.load %arg5[%c1_320, %c0_321, %c0_322] : memref<4x16x64xf32, #tpu.memory_space<vmem>>, vector<1x16x64xf32>
    %363 = vector.shape_cast %362 : vector<1x16x64xf32> to vector<16x64xf32>
    %cst_323 = arith.constant dense<0.000000e+00> : vector<2x64xf32>
    %364 = tpu.matmul %361, %363, %cst_323 {dimension_numbers = #tpu.dot_dimension_numbers<[1], [0], [0], [1], [0, 0, 1, 1], [], []>} : vector<2x16xf32>, vector<16x64xf32>, vector<2x64xf32> -> vector<2x64xf32>
    %365 = arith.addf %360, %364 : vector<2x64xf32>
    %366 = vector.extract_strided_slice %344 {offsets = [0, 0], sizes = [2, 16], strides = [1, 1]} : vector<8x16xf32> to vector<2x16xf32>
    %c2_324 = arith.constant 2 : index
    %c0_325 = arith.constant 0 : index
    %c0_326 = arith.constant 0 : index
    %367 = vector.load %arg5[%c2_324, %c0_325, %c0_326] : memref<4x16x64xf32, #tpu.memory_space<vmem>>, vector<1x16x64xf32>
    %368 = vector.shape_cast %367 : vector<1x16x64xf32> to vector<16x64xf32>
    %cst_327 = arith.constant dense<0.000000e+00> : vector<2x64xf32>
    %369 = tpu.matmul %366, %368, %cst_327 {dimension_numbers = #tpu.dot_dimension_numbers<[1], [0], [0], [1], [0, 0, 1, 1], [], []>} : vector<2x16xf32>, vector<16x64xf32>, vector<2x64xf32> -> vector<2x64xf32>
    %370 = arith.addf %365, %369 : vector<2x64xf32>
    %371 = vector.extract_strided_slice %344 {offsets = [2, 0], sizes = [2, 16], strides = [1, 1]} : vector<8x16xf32> to vector<2x16xf32>
    %c3_328 = arith.constant 3 : index
    %c0_329 = arith.constant 0 : index
    %c0_330 = arith.constant 0 : index
    %372 = vector.load %arg5[%c3_328, %c0_329, %c0_330] : memref<4x16x64xf32, #tpu.memory_space<vmem>>, vector<1x16x64xf32>
    %373 = vector.shape_cast %372 : vector<1x16x64xf32> to vector<16x64xf32>
    %cst_331 = arith.constant dense<0.000000e+00> : vector<2x64xf32>
    %374 = tpu.matmul %371, %373, %cst_331 {dimension_numbers = #tpu.dot_dimension_numbers<[1], [0], [0], [1], [0, 0, 1, 1], [], []>} : vector<2x16xf32>, vector<16x64xf32>, vector<2x64xf32> -> vector<2x64xf32>
    %375 = arith.addf %370, %374 : vector<2x64xf32>
    %376 = vector.extract_strided_slice %338 {offsets = [4, 0], sizes = [2, 16], strides = [1, 1]} : vector<8x16xf32> to vector<2x16xf32>
    %c0_332 = arith.constant 0 : index
    %c0_333 = arith.constant 0 : index
    %c0_334 = arith.constant 0 : index
    %377 = vector.load %arg5[%c0_332, %c0_333, %c0_334] : memref<4x16x64xf32, #tpu.memory_space<vmem>>, vector<1x16x64xf32>
    %378 = vector.shape_cast %377 : vector<1x16x64xf32> to vector<16x64xf32>
    %cst_335 = arith.constant dense<0.000000e+00> : vector<2x64xf32>
    %379 = tpu.matmul %376, %378, %cst_335 {dimension_numbers = #tpu.dot_dimension_numbers<[1], [0], [0], [1], [0, 0, 1, 1], [], []>} : vector<2x16xf32>, vector<16x64xf32>, vector<2x64xf32> -> vector<2x64xf32>
    %380 = vector.extract_strided_slice %338 {offsets = [6, 0], sizes = [2, 16], strides = [1, 1]} : vector<8x16xf32> to vector<2x16xf32>
    %c1_336 = arith.constant 1 : index
    %c0_337 = arith.constant 0 : index
    %c0_338 = arith.constant 0 : index
    %381 = vector.load %arg5[%c1_336, %c0_337, %c0_338] : memref<4x16x64xf32, #tpu.memory_space<vmem>>, vector<1x16x64xf32>
    %382 = vector.shape_cast %381 : vector<1x16x64xf32> to vector<16x64xf32>
    %cst_339 = arith.constant dense<0.000000e+00> : vector<2x64xf32>
    %383 = tpu.matmul %380, %382, %cst_339 {dimension_numbers = #tpu.dot_dimension_numbers<[1], [0], [0], [1], [0, 0, 1, 1], [], []>} : vector<2x16xf32>, vector<16x64xf32>, vector<2x64xf32> -> vector<2x64xf32>
    %384 = arith.addf %379, %383 : vector<2x64xf32>
    %385 = vector.extract_strided_slice %344 {offsets = [4, 0], sizes = [2, 16], strides = [1, 1]} : vector<8x16xf32> to vector<2x16xf32>
    %c2_340 = arith.constant 2 : index
    %c0_341 = arith.constant 0 : index
    %c0_342 = arith.constant 0 : index
    %386 = vector.load %arg5[%c2_340, %c0_341, %c0_342] : memref<4x16x64xf32, #tpu.memory_space<vmem>>, vector<1x16x64xf32>
    %387 = vector.shape_cast %386 : vector<1x16x64xf32> to vector<16x64xf32>
    %cst_343 = arith.constant dense<0.000000e+00> : vector<2x64xf32>
    %388 = tpu.matmul %385, %387, %cst_343 {dimension_numbers = #tpu.dot_dimension_numbers<[1], [0], [0], [1], [0, 0, 1, 1], [], []>} : vector<2x16xf32>, vector<16x64xf32>, vector<2x64xf32> -> vector<2x64xf32>
    %389 = arith.addf %384, %388 : vector<2x64xf32>
    %390 = vector.extract_strided_slice %344 {offsets = [6, 0], sizes = [2, 16], strides = [1, 1]} : vector<8x16xf32> to vector<2x16xf32>
    %c3_344 = arith.constant 3 : index
    %c0_345 = arith.constant 0 : index
    %c0_346 = arith.constant 0 : index
    %391 = vector.load %arg5[%c3_344, %c0_345, %c0_346] : memref<4x16x64xf32, #tpu.memory_space<vmem>>, vector<1x16x64xf32>
    %392 = vector.shape_cast %391 : vector<1x16x64xf32> to vector<16x64xf32>
    %cst_347 = arith.constant dense<0.000000e+00> : vector<2x64xf32>
    %393 = tpu.matmul %390, %392, %cst_347 {dimension_numbers = #tpu.dot_dimension_numbers<[1], [0], [0], [1], [0, 0, 1, 1], [], []>} : vector<2x16xf32>, vector<16x64xf32>, vector<2x64xf32> -> vector<2x64xf32>
    %394 = arith.addf %389, %393 : vector<2x64xf32>
    %395 = vector.extract_strided_slice %350 {offsets = [0, 0], sizes = [2, 16], strides = [1, 1]} : vector<8x16xf32> to vector<2x16xf32>
    %c0_348 = arith.constant 0 : index
    %c0_349 = arith.constant 0 : index
    %c0_350 = arith.constant 0 : index
    %396 = vector.load %arg5[%c0_348, %c0_349, %c0_350] : memref<4x16x64xf32, #tpu.memory_space<vmem>>, vector<1x16x64xf32>
    %397 = vector.shape_cast %396 : vector<1x16x64xf32> to vector<16x64xf32>
    %cst_351 = arith.constant dense<0.000000e+00> : vector<2x64xf32>
    %398 = tpu.matmul %395, %397, %cst_351 {dimension_numbers = #tpu.dot_dimension_numbers<[1], [0], [0], [1], [0, 0, 1, 1], [], []>} : vector<2x16xf32>, vector<16x64xf32>, vector<2x64xf32> -> vector<2x64xf32>
    %399 = vector.extract_strided_slice %350 {offsets = [2, 0], sizes = [2, 16], strides = [1, 1]} : vector<8x16xf32> to vector<2x16xf32>
    %c1_352 = arith.constant 1 : index
    %c0_353 = arith.constant 0 : index
    %c0_354 = arith.constant 0 : index
    %400 = vector.load %arg5[%c1_352, %c0_353, %c0_354] : memref<4x16x64xf32, #tpu.memory_space<vmem>>, vector<1x16x64xf32>
    %401 = vector.shape_cast %400 : vector<1x16x64xf32> to vector<16x64xf32>
    %cst_355 = arith.constant dense<0.000000e+00> : vector<2x64xf32>
    %402 = tpu.matmul %399, %401, %cst_355 {dimension_numbers = #tpu.dot_dimension_numbers<[1], [0], [0], [1], [0, 0, 1, 1], [], []>} : vector<2x16xf32>, vector<16x64xf32>, vector<2x64xf32> -> vector<2x64xf32>
    %403 = arith.addf %398, %402 : vector<2x64xf32>
    %404 = vector.extract_strided_slice %356 {offsets = [0, 0], sizes = [2, 16], strides = [1, 1]} : vector<8x16xf32> to vector<2x16xf32>
    %c2_356 = arith.constant 2 : index
    %c0_357 = arith.constant 0 : index
    %c0_358 = arith.constant 0 : index
    %405 = vector.load %arg5[%c2_356, %c0_357, %c0_358] : memref<4x16x64xf32, #tpu.memory_space<vmem>>, vector<1x16x64xf32>
    %406 = vector.shape_cast %405 : vector<1x16x64xf32> to vector<16x64xf32>
    %cst_359 = arith.constant dense<0.000000e+00> : vector<2x64xf32>
    %407 = tpu.matmul %404, %406, %cst_359 {dimension_numbers = #tpu.dot_dimension_numbers<[1], [0], [0], [1], [0, 0, 1, 1], [], []>} : vector<2x16xf32>, vector<16x64xf32>, vector<2x64xf32> -> vector<2x64xf32>
    %408 = arith.addf %403, %407 : vector<2x64xf32>
    %409 = vector.extract_strided_slice %356 {offsets = [2, 0], sizes = [2, 16], strides = [1, 1]} : vector<8x16xf32> to vector<2x16xf32>
    %c3_360 = arith.constant 3 : index
    %c0_361 = arith.constant 0 : index
    %c0_362 = arith.constant 0 : index
    %410 = vector.load %arg5[%c3_360, %c0_361, %c0_362] : memref<4x16x64xf32, #tpu.memory_space<vmem>>, vector<1x16x64xf32>
    %411 = vector.shape_cast %410 : vector<1x16x64xf32> to vector<16x64xf32>
    %cst_363 = arith.constant dense<0.000000e+00> : vector<2x64xf32>
    %412 = tpu.matmul %409, %411, %cst_363 {dimension_numbers = #tpu.dot_dimension_numbers<[1], [0], [0], [1], [0, 0, 1, 1], [], []>} : vector<2x16xf32>, vector<16x64xf32>, vector<2x64xf32> -> vector<2x64xf32>
    %413 = arith.addf %408, %412 : vector<2x64xf32>
    %414 = vector.extract_strided_slice %350 {offsets = [4, 0], sizes = [2, 16], strides = [1, 1]} : vector<8x16xf32> to vector<2x16xf32>
    %c0_364 = arith.constant 0 : index
    %c0_365 = arith.constant 0 : index
    %c0_366 = arith.constant 0 : index
    %415 = vector.load %arg5[%c0_364, %c0_365, %c0_366] : memref<4x16x64xf32, #tpu.memory_space<vmem>>, vector<1x16x64xf32>
    %416 = vector.shape_cast %415 : vector<1x16x64xf32> to vector<16x64xf32>
    %cst_367 = arith.constant dense<0.000000e+00> : vector<2x64xf32>
    %417 = tpu.matmul %414, %416, %cst_367 {dimension_numbers = #tpu.dot_dimension_numbers<[1], [0], [0], [1], [0, 0, 1, 1], [], []>} : vector<2x16xf32>, vector<16x64xf32>, vector<2x64xf32> -> vector<2x64xf32>
    %418 = vector.extract_strided_slice %350 {offsets = [6, 0], sizes = [2, 16], strides = [1, 1]} : vector<8x16xf32> to vector<2x16xf32>
    %c1_368 = arith.constant 1 : index
    %c0_369 = arith.constant 0 : index
    %c0_370 = arith.constant 0 : index
    %419 = vector.load %arg5[%c1_368, %c0_369, %c0_370] : memref<4x16x64xf32, #tpu.memory_space<vmem>>, vector<1x16x64xf32>
    %420 = vector.shape_cast %419 : vector<1x16x64xf32> to vector<16x64xf32>
    %cst_371 = arith.constant dense<0.000000e+00> : vector<2x64xf32>
    %421 = tpu.matmul %418, %420, %cst_371 {dimension_numbers = #tpu.dot_dimension_numbers<[1], [0], [0], [1], [0, 0, 1, 1], [], []>} : vector<2x16xf32>, vector<16x64xf32>, vector<2x64xf32> -> vector<2x64xf32>
    %422 = arith.addf %417, %421 : vector<2x64xf32>
    %423 = vector.extract_strided_slice %356 {offsets = [4, 0], sizes = [2, 16], strides = [1, 1]} : vector<8x16xf32> to vector<2x16xf32>
    %c2_372 = arith.constant 2 : index
    %c0_373 = arith.constant 0 : index
    %c0_374 = arith.constant 0 : index
    %424 = vector.load %arg5[%c2_372, %c0_373, %c0_374] : memref<4x16x64xf32, #tpu.memory_space<vmem>>, vector<1x16x64xf32>
    %425 = vector.shape_cast %424 : vector<1x16x64xf32> to vector<16x64xf32>
    %cst_375 = arith.constant dense<0.000000e+00> : vector<2x64xf32>
    %426 = tpu.matmul %423, %425, %cst_375 {dimension_numbers = #tpu.dot_dimension_numbers<[1], [0], [0], [1], [0, 0, 1, 1], [], []>} : vector<2x16xf32>, vector<16x64xf32>, vector<2x64xf32> -> vector<2x64xf32>
    %427 = arith.addf %422, %426 : vector<2x64xf32>
    %428 = vector.extract_strided_slice %356 {offsets = [6, 0], sizes = [2, 16], strides = [1, 1]} : vector<8x16xf32> to vector<2x16xf32>
    %c3_376 = arith.constant 3 : index
    %c0_377 = arith.constant 0 : index
    %c0_378 = arith.constant 0 : index
    %429 = vector.load %arg5[%c3_376, %c0_377, %c0_378] : memref<4x16x64xf32, #tpu.memory_space<vmem>>, vector<1x16x64xf32>
    %430 = vector.shape_cast %429 : vector<1x16x64xf32> to vector<16x64xf32>
    %cst_379 = arith.constant dense<0.000000e+00> : vector<2x64xf32>
    %431 = tpu.matmul %428, %430, %cst_379 {dimension_numbers = #tpu.dot_dimension_numbers<[1], [0], [0], [1], [0, 0, 1, 1], [], []>} : vector<2x16xf32>, vector<16x64xf32>, vector<2x64xf32> -> vector<2x64xf32>
    %432 = arith.addf %427, %431 : vector<2x64xf32>
    %433 = vector.shape_cast %375 : vector<2x64xf32> to vector<2x1x64xf32>
    %434 = vector.shape_cast %394 : vector<2x64xf32> to vector<2x1x64xf32>
    %435 = vector.shape_cast %413 : vector<2x64xf32> to vector<2x1x64xf32>
    %436 = vector.shape_cast %432 : vector<2x64xf32> to vector<2x1x64xf32>
    %437 = tpu.concatenate %433, %434, %435, %436 in 1 : vector<2x1x64xf32>, vector<2x1x64xf32>, vector<2x1x64xf32>, vector<2x1x64xf32> -> vector<2x4x64xf32>
    %c0_380 = arith.constant 0 : index
    %c0_381 = arith.constant 0 : index
    %c3_382 = arith.constant 3 : index
    %c0_383 = arith.constant 0 : index
    %c0_384 = arith.constant 0 : index
    %438 = vector.load %arg6[%c0_380, %c0_381, %c3_382, %c0_383, %c0_384] : memref<1x2x8x4x64xf32, #tpu.memory_space<vmem>>, vector<1x2x1x4x64xf32>
    %439 = vector.shape_cast %438 : vector<1x2x1x4x64xf32> to vector<2x4x64xf32>
    %440 = vector.shape_cast %437 : vector<2x4x64xf32> to vector<1x2x1x4x64xf32>
    tpu.vector_store %arg6[%c0_380, %c0_381, %c3_382, %c0_383, %c0_384], %440 {strides = array<i32>} : memref<1x2x8x4x64xf32, #tpu.memory_space<vmem>>, vector<1x2x1x4x64xf32>,
    %c0_385 = arith.constant 0 : index
    %c0_386 = arith.constant 0 : index
    %c4 = arith.constant 4 : index
    %c0_387 = arith.constant 0 : index
    %441 = vector.load %arg2[%c0_385, %c0_386, %c4, %c0_387] : memref<1x4x8x16xf32, #tpu.memory_space<vmem>>, vector<1x4x1x16xf32>
    %442 = vector.shape_cast %441 : vector<1x4x1x16xf32> to vector<4x16xf32>
    %c0_388 = arith.constant 0 : index
    %c0_389 = arith.constant 0 : index
    %c0_390 = arith.constant 0 : index
    %443 = vector.load %arg3[%c0_388, %c0_389, %c0_390] : memref<4x4x4xf32, #tpu.memory_space<vmem>>, vector<1x4x4xf32>
    %444 = vector.shape_cast %443 : vector<1x4x4xf32> to vector<4x4xf32>
    %cst_391 = arith.constant dense<0.000000e+00> : vector<4x16xf32>
    %445 = tpu.matmul %444, %442, %cst_391 {dimension_numbers = #tpu.dot_dimension_numbers<[1], [0], [0], [1], [0, 0, 1, 1], [], []>} : vector<4x4xf32>, vector<4x16xf32>, vector<4x16xf32> -> vector<4x16xf32>
    %cst_392 = arith.constant 0.000000e+00 : f32
    %446 = vector.broadcast %cst_392 : f32 to vector<4x16xf32>
    %447 = arith.maximumf %445, %446 : vector<4x16xf32>
    %cst_393 = arith.constant dense<0.000000e+00> : vector<8x16xf32>
    %448 = tpu.matmul %0, %447, %cst_393 {dimension_numbers = #tpu.dot_dimension_numbers<[1], [0], [0], [1], [0, 0, 1, 1], [], []>} : vector<8x4xf32>, vector<4x16xf32>, vector<8x16xf32> -> vector<8x16xf32>
    %c1_394 = arith.constant 1 : index
    %c0_395 = arith.constant 0 : index
    %c0_396 = arith.constant 0 : index
    %449 = vector.load %arg3[%c1_394, %c0_395, %c0_396] : memref<4x4x4xf32, #tpu.memory_space<vmem>>, vector<1x4x4xf32>
    %450 = vector.shape_cast %449 : vector<1x4x4xf32> to vector<4x4xf32>
    %cst_397 = arith.constant dense<0.000000e+00> : vector<4x16xf32>
    %451 = tpu.matmul %450, %442, %cst_397 {dimension_numbers = #tpu.dot_dimension_numbers<[1], [0], [0], [1], [0, 0, 1, 1], [], []>} : vector<4x4xf32>, vector<4x16xf32>, vector<4x16xf32> -> vector<4x16xf32>
    %cst_398 = arith.constant 0.000000e+00 : f32
    %452 = vector.broadcast %cst_398 : f32 to vector<4x16xf32>
    %453 = arith.maximumf %451, %452 : vector<4x16xf32>
    %cst_399 = arith.constant dense<0.000000e+00> : vector<8x16xf32>
    %454 = tpu.matmul %0, %453, %cst_399 {dimension_numbers = #tpu.dot_dimension_numbers<[1], [0], [0], [1], [0, 0, 1, 1], [], []>} : vector<8x4xf32>, vector<4x16xf32>, vector<8x16xf32> -> vector<8x16xf32>
    %c2_400 = arith.constant 2 : index
    %c0_401 = arith.constant 0 : index
    %c0_402 = arith.constant 0 : index
    %455 = vector.load %arg3[%c2_400, %c0_401, %c0_402] : memref<4x4x4xf32, #tpu.memory_space<vmem>>, vector<1x4x4xf32>
    %456 = vector.shape_cast %455 : vector<1x4x4xf32> to vector<4x4xf32>
    %cst_403 = arith.constant dense<0.000000e+00> : vector<4x16xf32>
    %457 = tpu.matmul %456, %442, %cst_403 {dimension_numbers = #tpu.dot_dimension_numbers<[1], [0], [0], [1], [0, 0, 1, 1], [], []>} : vector<4x4xf32>, vector<4x16xf32>, vector<4x16xf32> -> vector<4x16xf32>
    %cst_404 = arith.constant 0.000000e+00 : f32
    %458 = vector.broadcast %cst_404 : f32 to vector<4x16xf32>
    %459 = arith.maximumf %457, %458 : vector<4x16xf32>
    %cst_405 = arith.constant dense<0.000000e+00> : vector<8x16xf32>
    %460 = tpu.matmul %0, %459, %cst_405 {dimension_numbers = #tpu.dot_dimension_numbers<[1], [0], [0], [1], [0, 0, 1, 1], [], []>} : vector<8x4xf32>, vector<4x16xf32>, vector<8x16xf32> -> vector<8x16xf32>
    %c3_406 = arith.constant 3 : index
    %c0_407 = arith.constant 0 : index
    %c0_408 = arith.constant 0 : index
    %461 = vector.load %arg3[%c3_406, %c0_407, %c0_408] : memref<4x4x4xf32, #tpu.memory_space<vmem>>, vector<1x4x4xf32>
    %462 = vector.shape_cast %461 : vector<1x4x4xf32> to vector<4x4xf32>
    %cst_409 = arith.constant dense<0.000000e+00> : vector<4x16xf32>
    %463 = tpu.matmul %462, %442, %cst_409 {dimension_numbers = #tpu.dot_dimension_numbers<[1], [0], [0], [1], [0, 0, 1, 1], [], []>} : vector<4x4xf32>, vector<4x16xf32>, vector<4x16xf32> -> vector<4x16xf32>
    %cst_410 = arith.constant 0.000000e+00 : f32
    %464 = vector.broadcast %cst_410 : f32 to vector<4x16xf32>
    %465 = arith.maximumf %463, %464 : vector<4x16xf32>
    %cst_411 = arith.constant dense<0.000000e+00> : vector<8x16xf32>
    %466 = tpu.matmul %0, %465, %cst_411 {dimension_numbers = #tpu.dot_dimension_numbers<[1], [0], [0], [1], [0, 0, 1, 1], [], []>} : vector<8x4xf32>, vector<4x16xf32>, vector<8x16xf32> -> vector<8x16xf32>
    %467 = vector.extract_strided_slice %448 {offsets = [0, 0], sizes = [2, 16], strides = [1, 1]} : vector<8x16xf32> to vector<2x16xf32>
    %c0_412 = arith.constant 0 : index
    %c0_413 = arith.constant 0 : index
    %c0_414 = arith.constant 0 : index
    %468 = vector.load %arg5[%c0_412, %c0_413, %c0_414] : memref<4x16x64xf32, #tpu.memory_space<vmem>>, vector<1x16x64xf32>
    %469 = vector.shape_cast %468 : vector<1x16x64xf32> to vector<16x64xf32>
    %cst_415 = arith.constant dense<0.000000e+00> : vector<2x64xf32>
    %470 = tpu.matmul %467, %469, %cst_415 {dimension_numbers = #tpu.dot_dimension_numbers<[1], [0], [0], [1], [0, 0, 1, 1], [], []>} : vector<2x16xf32>, vector<16x64xf32>, vector<2x64xf32> -> vector<2x64xf32>
    %471 = vector.extract_strided_slice %448 {offsets = [2, 0], sizes = [2, 16], strides = [1, 1]} : vector<8x16xf32> to vector<2x16xf32>
    %c1_416 = arith.constant 1 : index
    %c0_417 = arith.constant 0 : index
    %c0_418 = arith.constant 0 : index
    %472 = vector.load %arg5[%c1_416, %c0_417, %c0_418] : memref<4x16x64xf32, #tpu.memory_space<vmem>>, vector<1x16x64xf32>
    %473 = vector.shape_cast %472 : vector<1x16x64xf32> to vector<16x64xf32>
    %cst_419 = arith.constant dense<0.000000e+00> : vector<2x64xf32>
    %474 = tpu.matmul %471, %473, %cst_419 {dimension_numbers = #tpu.dot_dimension_numbers<[1], [0], [0], [1], [0, 0, 1, 1], [], []>} : vector<2x16xf32>, vector<16x64xf32>, vector<2x64xf32> -> vector<2x64xf32>
    %475 = arith.addf %470, %474 : vector<2x64xf32>
    %476 = vector.extract_strided_slice %454 {offsets = [0, 0], sizes = [2, 16], strides = [1, 1]} : vector<8x16xf32> to vector<2x16xf32>
    %c2_420 = arith.constant 2 : index
    %c0_421 = arith.constant 0 : index
    %c0_422 = arith.constant 0 : index
    %477 = vector.load %arg5[%c2_420, %c0_421, %c0_422] : memref<4x16x64xf32, #tpu.memory_space<vmem>>, vector<1x16x64xf32>
    %478 = vector.shape_cast %477 : vector<1x16x64xf32> to vector<16x64xf32>
    %cst_423 = arith.constant dense<0.000000e+00> : vector<2x64xf32>
    %479 = tpu.matmul %476, %478, %cst_423 {dimension_numbers = #tpu.dot_dimension_numbers<[1], [0], [0], [1], [0, 0, 1, 1], [], []>} : vector<2x16xf32>, vector<16x64xf32>, vector<2x64xf32> -> vector<2x64xf32>
    %480 = arith.addf %475, %479 : vector<2x64xf32>
    %481 = vector.extract_strided_slice %454 {offsets = [2, 0], sizes = [2, 16], strides = [1, 1]} : vector<8x16xf32> to vector<2x16xf32>
    %c3_424 = arith.constant 3 : index
    %c0_425 = arith.constant 0 : index
    %c0_426 = arith.constant 0 : index
    %482 = vector.load %arg5[%c3_424, %c0_425, %c0_426] : memref<4x16x64xf32, #tpu.memory_space<vmem>>, vector<1x16x64xf32>
    %483 = vector.shape_cast %482 : vector<1x16x64xf32> to vector<16x64xf32>
    %cst_427 = arith.constant dense<0.000000e+00> : vector<2x64xf32>
    %484 = tpu.matmul %481, %483, %cst_427 {dimension_numbers = #tpu.dot_dimension_numbers<[1], [0], [0], [1], [0, 0, 1, 1], [], []>} : vector<2x16xf32>, vector<16x64xf32>, vector<2x64xf32> -> vector<2x64xf32>
    %485 = arith.addf %480, %484 : vector<2x64xf32>
    %486 = vector.extract_strided_slice %448 {offsets = [4, 0], sizes = [2, 16], strides = [1, 1]} : vector<8x16xf32> to vector<2x16xf32>
    %c0_428 = arith.constant 0 : index
    %c0_429 = arith.constant 0 : index
    %c0_430 = arith.constant 0 : index
    %487 = vector.load %arg5[%c0_428, %c0_429, %c0_430] : memref<4x16x64xf32, #tpu.memory_space<vmem>>, vector<1x16x64xf32>
    %488 = vector.shape_cast %487 : vector<1x16x64xf32> to vector<16x64xf32>
    %cst_431 = arith.constant dense<0.000000e+00> : vector<2x64xf32>
    %489 = tpu.matmul %486, %488, %cst_431 {dimension_numbers = #tpu.dot_dimension_numbers<[1], [0], [0], [1], [0, 0, 1, 1], [], []>} : vector<2x16xf32>, vector<16x64xf32>, vector<2x64xf32> -> vector<2x64xf32>
    %490 = vector.extract_strided_slice %448 {offsets = [6, 0], sizes = [2, 16], strides = [1, 1]} : vector<8x16xf32> to vector<2x16xf32>
    %c1_432 = arith.constant 1 : index
    %c0_433 = arith.constant 0 : index
    %c0_434 = arith.constant 0 : index
    %491 = vector.load %arg5[%c1_432, %c0_433, %c0_434] : memref<4x16x64xf32, #tpu.memory_space<vmem>>, vector<1x16x64xf32>
    %492 = vector.shape_cast %491 : vector<1x16x64xf32> to vector<16x64xf32>
    %cst_435 = arith.constant dense<0.000000e+00> : vector<2x64xf32>
    %493 = tpu.matmul %490, %492, %cst_435 {dimension_numbers = #tpu.dot_dimension_numbers<[1], [0], [0], [1], [0, 0, 1, 1], [], []>} : vector<2x16xf32>, vector<16x64xf32>, vector<2x64xf32> -> vector<2x64xf32>
    %494 = arith.addf %489, %493 : vector<2x64xf32>
    %495 = vector.extract_strided_slice %454 {offsets = [4, 0], sizes = [2, 16], strides = [1, 1]} : vector<8x16xf32> to vector<2x16xf32>
    %c2_436 = arith.constant 2 : index
    %c0_437 = arith.constant 0 : index
    %c0_438 = arith.constant 0 : index
    %496 = vector.load %arg5[%c2_436, %c0_437, %c0_438] : memref<4x16x64xf32, #tpu.memory_space<vmem>>, vector<1x16x64xf32>
    %497 = vector.shape_cast %496 : vector<1x16x64xf32> to vector<16x64xf32>
    %cst_439 = arith.constant dense<0.000000e+00> : vector<2x64xf32>
    %498 = tpu.matmul %495, %497, %cst_439 {dimension_numbers = #tpu.dot_dimension_numbers<[1], [0], [0], [1], [0, 0, 1, 1], [], []>} : vector<2x16xf32>, vector<16x64xf32>, vector<2x64xf32> -> vector<2x64xf32>
    %499 = arith.addf %494, %498 : vector<2x64xf32>
    %500 = vector.extract_strided_slice %454 {offsets = [6, 0], sizes = [2, 16], strides = [1, 1]} : vector<8x16xf32> to vector<2x16xf32>
    %c3_440 = arith.constant 3 : index
    %c0_441 = arith.constant 0 : index
    %c0_442 = arith.constant 0 : index
    %501 = vector.load %arg5[%c3_440, %c0_441, %c0_442] : memref<4x16x64xf32, #tpu.memory_space<vmem>>, vector<1x16x64xf32>
    %502 = vector.shape_cast %501 : vector<1x16x64xf32> to vector<16x64xf32>
    %cst_443 = arith.constant dense<0.000000e+00> : vector<2x64xf32>
    %503 = tpu.matmul %500, %502, %cst_443 {dimension_numbers = #tpu.dot_dimension_numbers<[1], [0], [0], [1], [0, 0, 1, 1], [], []>} : vector<2x16xf32>, vector<16x64xf32>, vector<2x64xf32> -> vector<2x64xf32>
    %504 = arith.addf %499, %503 : vector<2x64xf32>
    %505 = vector.extract_strided_slice %460 {offsets = [0, 0], sizes = [2, 16], strides = [1, 1]} : vector<8x16xf32> to vector<2x16xf32>
    %c0_444 = arith.constant 0 : index
    %c0_445 = arith.constant 0 : index
    %c0_446 = arith.constant 0 : index
    %506 = vector.load %arg5[%c0_444, %c0_445, %c0_446] : memref<4x16x64xf32, #tpu.memory_space<vmem>>, vector<1x16x64xf32>
    %507 = vector.shape_cast %506 : vector<1x16x64xf32> to vector<16x64xf32>
    %cst_447 = arith.constant dense<0.000000e+00> : vector<2x64xf32>
    %508 = tpu.matmul %505, %507, %cst_447 {dimension_numbers = #tpu.dot_dimension_numbers<[1], [0], [0], [1], [0, 0, 1, 1], [], []>} : vector<2x16xf32>, vector<16x64xf32>, vector<2x64xf32> -> vector<2x64xf32>
    %509 = vector.extract_strided_slice %460 {offsets = [2, 0], sizes = [2, 16], strides = [1, 1]} : vector<8x16xf32> to vector<2x16xf32>
    %c1_448 = arith.constant 1 : index
    %c0_449 = arith.constant 0 : index
    %c0_450 = arith.constant 0 : index
    %510 = vector.load %arg5[%c1_448, %c0_449, %c0_450] : memref<4x16x64xf32, #tpu.memory_space<vmem>>, vector<1x16x64xf32>
    %511 = vector.shape_cast %510 : vector<1x16x64xf32> to vector<16x64xf32>
    %cst_451 = arith.constant dense<0.000000e+00> : vector<2x64xf32>
    %512 = tpu.matmul %509, %511, %cst_451 {dimension_numbers = #tpu.dot_dimension_numbers<[1], [0], [0], [1], [0, 0, 1, 1], [], []>} : vector<2x16xf32>, vector<16x64xf32>, vector<2x64xf32> -> vector<2x64xf32>
    %513 = arith.addf %508, %512 : vector<2x64xf32>
    %514 = vector.extract_strided_slice %466 {offsets = [0, 0], sizes = [2, 16], strides = [1, 1]} : vector<8x16xf32> to vector<2x16xf32>
    %c2_452 = arith.constant 2 : index
    %c0_453 = arith.constant 0 : index
    %c0_454 = arith.constant 0 : index
    %515 = vector.load %arg5[%c2_452, %c0_453, %c0_454] : memref<4x16x64xf32, #tpu.memory_space<vmem>>, vector<1x16x64xf32>
    %516 = vector.shape_cast %515 : vector<1x16x64xf32> to vector<16x64xf32>
    %cst_455 = arith.constant dense<0.000000e+00> : vector<2x64xf32>
    %517 = tpu.matmul %514, %516, %cst_455 {dimension_numbers = #tpu.dot_dimension_numbers<[1], [0], [0], [1], [0, 0, 1, 1], [], []>} : vector<2x16xf32>, vector<16x64xf32>, vector<2x64xf32> -> vector<2x64xf32>
    %518 = arith.addf %513, %517 : vector<2x64xf32>
    %519 = vector.extract_strided_slice %466 {offsets = [2, 0], sizes = [2, 16], strides = [1, 1]} : vector<8x16xf32> to vector<2x16xf32>
    %c3_456 = arith.constant 3 : index
    %c0_457 = arith.constant 0 : index
    %c0_458 = arith.constant 0 : index
    %520 = vector.load %arg5[%c3_456, %c0_457, %c0_458] : memref<4x16x64xf32, #tpu.memory_space<vmem>>, vector<1x16x64xf32>
    %521 = vector.shape_cast %520 : vector<1x16x64xf32> to vector<16x64xf32>
    %cst_459 = arith.constant dense<0.000000e+00> : vector<2x64xf32>
    %522 = tpu.matmul %519, %521, %cst_459 {dimension_numbers = #tpu.dot_dimension_numbers<[1], [0], [0], [1], [0, 0, 1, 1], [], []>} : vector<2x16xf32>, vector<16x64xf32>, vector<2x64xf32> -> vector<2x64xf32>
    %523 = arith.addf %518, %522 : vector<2x64xf32>
    %524 = vector.extract_strided_slice %460 {offsets = [4, 0], sizes = [2, 16], strides = [1, 1]} : vector<8x16xf32> to vector<2x16xf32>
    %c0_460 = arith.constant 0 : index
    %c0_461 = arith.constant 0 : index
    %c0_462 = arith.constant 0 : index
    %525 = vector.load %arg5[%c0_460, %c0_461, %c0_462] : memref<4x16x64xf32, #tpu.memory_space<vmem>>, vector<1x16x64xf32>
    %526 = vector.shape_cast %525 : vector<1x16x64xf32> to vector<16x64xf32>
    %cst_463 = arith.constant dense<0.000000e+00> : vector<2x64xf32>
    %527 = tpu.matmul %524, %526, %cst_463 {dimension_numbers = #tpu.dot_dimension_numbers<[1], [0], [0], [1], [0, 0, 1, 1], [], []>} : vector<2x16xf32>, vector<16x64xf32>, vector<2x64xf32> -> vector<2x64xf32>
    %528 = vector.extract_strided_slice %460 {offsets = [6, 0], sizes = [2, 16], strides = [1, 1]} : vector<8x16xf32> to vector<2x16xf32>
    %c1_464 = arith.constant 1 : index
    %c0_465 = arith.constant 0 : index
    %c0_466 = arith.constant 0 : index
    %529 = vector.load %arg5[%c1_464, %c0_465, %c0_466] : memref<4x16x64xf32, #tpu.memory_space<vmem>>, vector<1x16x64xf32>
    %530 = vector.shape_cast %529 : vector<1x16x64xf32> to vector<16x64xf32>
    %cst_467 = arith.constant dense<0.000000e+00> : vector<2x64xf32>
    %531 = tpu.matmul %528, %530, %cst_467 {dimension_numbers = #tpu.dot_dimension_numbers<[1], [0], [0], [1], [0, 0, 1, 1], [], []>} : vector<2x16xf32>, vector<16x64xf32>, vector<2x64xf32> -> vector<2x64xf32>
    %532 = arith.addf %527, %531 : vector<2x64xf32>
    %533 = vector.extract_strided_slice %466 {offsets = [4, 0], sizes = [2, 16], strides = [1, 1]} : vector<8x16xf32> to vector<2x16xf32>
    %c2_468 = arith.constant 2 : index
    %c0_469 = arith.constant 0 : index
    %c0_470 = arith.constant 0 : index
    %534 = vector.load %arg5[%c2_468, %c0_469, %c0_470] : memref<4x16x64xf32, #tpu.memory_space<vmem>>, vector<1x16x64xf32>
    %535 = vector.shape_cast %534 : vector<1x16x64xf32> to vector<16x64xf32>
    %cst_471 = arith.constant dense<0.000000e+00> : vector<2x64xf32>
    %536 = tpu.matmul %533, %535, %cst_471 {dimension_numbers = #tpu.dot_dimension_numbers<[1], [0], [0], [1], [0, 0, 1, 1], [], []>} : vector<2x16xf32>, vector<16x64xf32>, vector<2x64xf32> -> vector<2x64xf32>
    %537 = arith.addf %532, %536 : vector<2x64xf32>
    %538 = vector.extract_strided_slice %466 {offsets = [6, 0], sizes = [2, 16], strides = [1, 1]} : vector<8x16xf32> to vector<2x16xf32>
    %c3_472 = arith.constant 3 : index
    %c0_473 = arith.constant 0 : index
    %c0_474 = arith.constant 0 : index
    %539 = vector.load %arg5[%c3_472, %c0_473, %c0_474] : memref<4x16x64xf32, #tpu.memory_space<vmem>>, vector<1x16x64xf32>
    %540 = vector.shape_cast %539 : vector<1x16x64xf32> to vector<16x64xf32>
    %cst_475 = arith.constant dense<0.000000e+00> : vector<2x64xf32>
    %541 = tpu.matmul %538, %540, %cst_475 {dimension_numbers = #tpu.dot_dimension_numbers<[1], [0], [0], [1], [0, 0, 1, 1], [], []>} : vector<2x16xf32>, vector<16x64xf32>, vector<2x64xf32> -> vector<2x64xf32>
    %542 = arith.addf %537, %541 : vector<2x64xf32>
    %543 = vector.shape_cast %485 : vector<2x64xf32> to vector<2x1x64xf32>
    %544 = vector.shape_cast %504 : vector<2x64xf32> to vector<2x1x64xf32>
    %545 = vector.shape_cast %523 : vector<2x64xf32> to vector<2x1x64xf32>
    %546 = vector.shape_cast %542 : vector<2x64xf32> to vector<2x1x64xf32>
    %547 = tpu.concatenate %543, %544, %545, %546 in 1 : vector<2x1x64xf32>, vector<2x1x64xf32>, vector<2x1x64xf32>, vector<2x1x64xf32> -> vector<2x4x64xf32>
    %c0_476 = arith.constant 0 : index
    %c0_477 = arith.constant 0 : index
    %c4_478 = arith.constant 4 : index
    %c0_479 = arith.constant 0 : index
    %c0_480 = arith.constant 0 : index
    %548 = vector.load %arg6[%c0_476, %c0_477, %c4_478, %c0_479, %c0_480] : memref<1x2x8x4x64xf32, #tpu.memory_space<vmem>>, vector<1x2x1x4x64xf32>
    %549 = vector.shape_cast %548 : vector<1x2x1x4x64xf32> to vector<2x4x64xf32>
    %550 = vector.shape_cast %547 : vector<2x4x64xf32> to vector<1x2x1x4x64xf32>
    tpu.vector_store %arg6[%c0_476, %c0_477, %c4_478, %c0_479, %c0_480], %550 {strides = array<i32>} : memref<1x2x8x4x64xf32, #tpu.memory_space<vmem>>, vector<1x2x1x4x64xf32>,
    %c0_481 = arith.constant 0 : index
    %c0_482 = arith.constant 0 : index
    %c5 = arith.constant 5 : index
    %c0_483 = arith.constant 0 : index
    %551 = vector.load %arg2[%c0_481, %c0_482, %c5, %c0_483] : memref<1x4x8x16xf32, #tpu.memory_space<vmem>>, vector<1x4x1x16xf32>
    %552 = vector.shape_cast %551 : vector<1x4x1x16xf32> to vector<4x16xf32>
    %c0_484 = arith.constant 0 : index
    %c0_485 = arith.constant 0 : index
    %c0_486 = arith.constant 0 : index
    %553 = vector.load %arg3[%c0_484, %c0_485, %c0_486] : memref<4x4x4xf32, #tpu.memory_space<vmem>>, vector<1x4x4xf32>
    %554 = vector.shape_cast %553 : vector<1x4x4xf32> to vector<4x4xf32>
    %cst_487 = arith.constant dense<0.000000e+00> : vector<4x16xf32>
    %555 = tpu.matmul %554, %552, %cst_487 {dimension_numbers = #tpu.dot_dimension_numbers<[1], [0], [0], [1], [0, 0, 1, 1], [], []>} : vector<4x4xf32>, vector<4x16xf32>, vector<4x16xf32> -> vector<4x16xf32>
    %cst_488 = arith.constant 0.000000e+00 : f32
    %556 = vector.broadcast %cst_488 : f32 to vector<4x16xf32>
    %557 = arith.maximumf %555, %556 : vector<4x16xf32>
    %cst_489 = arith.constant dense<0.000000e+00> : vector<8x16xf32>
    %558 = tpu.matmul %0, %557, %cst_489 {dimension_numbers = #tpu.dot_dimension_numbers<[1], [0], [0], [1], [0, 0, 1, 1], [], []>} : vector<8x4xf32>, vector<4x16xf32>, vector<8x16xf32> -> vector<8x16xf32>
    %c1_490 = arith.constant 1 : index
    %c0_491 = arith.constant 0 : index
    %c0_492 = arith.constant 0 : index
    %559 = vector.load %arg3[%c1_490, %c0_491, %c0_492] : memref<4x4x4xf32, #tpu.memory_space<vmem>>, vector<1x4x4xf32>
    %560 = vector.shape_cast %559 : vector<1x4x4xf32> to vector<4x4xf32>
    %cst_493 = arith.constant dense<0.000000e+00> : vector<4x16xf32>
    %561 = tpu.matmul %560, %552, %cst_493 {dimension_numbers = #tpu.dot_dimension_numbers<[1], [0], [0], [1], [0, 0, 1, 1], [], []>} : vector<4x4xf32>, vector<4x16xf32>, vector<4x16xf32> -> vector<4x16xf32>
    %cst_494 = arith.constant 0.000000e+00 : f32
    %562 = vector.broadcast %cst_494 : f32 to vector<4x16xf32>
    %563 = arith.maximumf %561, %562 : vector<4x16xf32>
    %cst_495 = arith.constant dense<0.000000e+00> : vector<8x16xf32>
    %564 = tpu.matmul %0, %563, %cst_495 {dimension_numbers = #tpu.dot_dimension_numbers<[1], [0], [0], [1], [0, 0, 1, 1], [], []>} : vector<8x4xf32>, vector<4x16xf32>, vector<8x16xf32> -> vector<8x16xf32>
    %c2_496 = arith.constant 2 : index
    %c0_497 = arith.constant 0 : index
    %c0_498 = arith.constant 0 : index
    %565 = vector.load %arg3[%c2_496, %c0_497, %c0_498] : memref<4x4x4xf32, #tpu.memory_space<vmem>>, vector<1x4x4xf32>
    %566 = vector.shape_cast %565 : vector<1x4x4xf32> to vector<4x4xf32>
    %cst_499 = arith.constant dense<0.000000e+00> : vector<4x16xf32>
    %567 = tpu.matmul %566, %552, %cst_499 {dimension_numbers = #tpu.dot_dimension_numbers<[1], [0], [0], [1], [0, 0, 1, 1], [], []>} : vector<4x4xf32>, vector<4x16xf32>, vector<4x16xf32> -> vector<4x16xf32>
    %cst_500 = arith.constant 0.000000e+00 : f32
    %568 = vector.broadcast %cst_500 : f32 to vector<4x16xf32>
    %569 = arith.maximumf %567, %568 : vector<4x16xf32>
    %cst_501 = arith.constant dense<0.000000e+00> : vector<8x16xf32>
    %570 = tpu.matmul %0, %569, %cst_501 {dimension_numbers = #tpu.dot_dimension_numbers<[1], [0], [0], [1], [0, 0, 1, 1], [], []>} : vector<8x4xf32>, vector<4x16xf32>, vector<8x16xf32> -> vector<8x16xf32>
    %c3_502 = arith.constant 3 : index
    %c0_503 = arith.constant 0 : index
    %c0_504 = arith.constant 0 : index
    %571 = vector.load %arg3[%c3_502, %c0_503, %c0_504] : memref<4x4x4xf32, #tpu.memory_space<vmem>>, vector<1x4x4xf32>
    %572 = vector.shape_cast %571 : vector<1x4x4xf32> to vector<4x4xf32>
    %cst_505 = arith.constant dense<0.000000e+00> : vector<4x16xf32>
    %573 = tpu.matmul %572, %552, %cst_505 {dimension_numbers = #tpu.dot_dimension_numbers<[1], [0], [0], [1], [0, 0, 1, 1], [], []>} : vector<4x4xf32>, vector<4x16xf32>, vector<4x16xf32> -> vector<4x16xf32>
    %cst_506 = arith.constant 0.000000e+00 : f32
    %574 = vector.broadcast %cst_506 : f32 to vector<4x16xf32>
    %575 = arith.maximumf %573, %574 : vector<4x16xf32>
    %cst_507 = arith.constant dense<0.000000e+00> : vector<8x16xf32>
    %576 = tpu.matmul %0, %575, %cst_507 {dimension_numbers = #tpu.dot_dimension_numbers<[1], [0], [0], [1], [0, 0, 1, 1], [], []>} : vector<8x4xf32>, vector<4x16xf32>, vector<8x16xf32> -> vector<8x16xf32>
    %577 = vector.extract_strided_slice %558 {offsets = [0, 0], sizes = [2, 16], strides = [1, 1]} : vector<8x16xf32> to vector<2x16xf32>
    %c0_508 = arith.constant 0 : index
    %c0_509 = arith.constant 0 : index
    %c0_510 = arith.constant 0 : index
    %578 = vector.load %arg5[%c0_508, %c0_509, %c0_510] : memref<4x16x64xf32, #tpu.memory_space<vmem>>, vector<1x16x64xf32>
    %579 = vector.shape_cast %578 : vector<1x16x64xf32> to vector<16x64xf32>
    %cst_511 = arith.constant dense<0.000000e+00> : vector<2x64xf32>
    %580 = tpu.matmul %577, %579, %cst_511 {dimension_numbers = #tpu.dot_dimension_numbers<[1], [0], [0], [1], [0, 0, 1, 1], [], []>} : vector<2x16xf32>, vector<16x64xf32>, vector<2x64xf32> -> vector<2x64xf32>
    %581 = vector.extract_strided_slice %558 {offsets = [2, 0], sizes = [2, 16], strides = [1, 1]} : vector<8x16xf32> to vector<2x16xf32>
    %c1_512 = arith.constant 1 : index
    %c0_513 = arith.constant 0 : index
    %c0_514 = arith.constant 0 : index
    %582 = vector.load %arg5[%c1_512, %c0_513, %c0_514] : memref<4x16x64xf32, #tpu.memory_space<vmem>>, vector<1x16x64xf32>
    %583 = vector.shape_cast %582 : vector<1x16x64xf32> to vector<16x64xf32>
    %cst_515 = arith.constant dense<0.000000e+00> : vector<2x64xf32>
    %584 = tpu.matmul %581, %583, %cst_515 {dimension_numbers = #tpu.dot_dimension_numbers<[1], [0], [0], [1], [0, 0, 1, 1], [], []>} : vector<2x16xf32>, vector<16x64xf32>, vector<2x64xf32> -> vector<2x64xf32>
    %585 = arith.addf %580, %584 : vector<2x64xf32>
    %586 = vector.extract_strided_slice %564 {offsets = [0, 0], sizes = [2, 16], strides = [1, 1]} : vector<8x16xf32> to vector<2x16xf32>
    %c2_516 = arith.constant 2 : index
    %c0_517 = arith.constant 0 : index
    %c0_518 = arith.constant 0 : index
    %587 = vector.load %arg5[%c2_516, %c0_517, %c0_518] : memref<4x16x64xf32, #tpu.memory_space<vmem>>, vector<1x16x64xf32>
    %588 = vector.shape_cast %587 : vector<1x16x64xf32> to vector<16x64xf32>
    %cst_519 = arith.constant dense<0.000000e+00> : vector<2x64xf32>
    %589 = tpu.matmul %586, %588, %cst_519 {dimension_numbers = #tpu.dot_dimension_numbers<[1], [0], [0], [1], [0, 0, 1, 1], [], []>} : vector<2x16xf32>, vector<16x64xf32>, vector<2x64xf32> -> vector<2x64xf32>
    %590 = arith.addf %585, %589 : vector<2x64xf32>
    %591 = vector.extract_strided_slice %564 {offsets = [2, 0], sizes = [2, 16], strides = [1, 1]} : vector<8x16xf32> to vector<2x16xf32>
    %c3_520 = arith.constant 3 : index
    %c0_521 = arith.constant 0 : index
    %c0_522 = arith.constant 0 : index
    %592 = vector.load %arg5[%c3_520, %c0_521, %c0_522] : memref<4x16x64xf32, #tpu.memory_space<vmem>>, vector<1x16x64xf32>
    %593 = vector.shape_cast %592 : vector<1x16x64xf32> to vector<16x64xf32>
    %cst_523 = arith.constant dense<0.000000e+00> : vector<2x64xf32>
    %594 = tpu.matmul %591, %593, %cst_523 {dimension_numbers = #tpu.dot_dimension_numbers<[1], [0], [0], [1], [0, 0, 1, 1], [], []>} : vector<2x16xf32>, vector<16x64xf32>, vector<2x64xf32> -> vector<2x64xf32>
    %595 = arith.addf %590, %594 : vector<2x64xf32>
    %596 = vector.extract_strided_slice %558 {offsets = [4, 0], sizes = [2, 16], strides = [1, 1]} : vector<8x16xf32> to vector<2x16xf32>
    %c0_524 = arith.constant 0 : index
    %c0_525 = arith.constant 0 : index
    %c0_526 = arith.constant 0 : index
    %597 = vector.load %arg5[%c0_524, %c0_525, %c0_526] : memref<4x16x64xf32, #tpu.memory_space<vmem>>, vector<1x16x64xf32>
    %598 = vector.shape_cast %597 : vector<1x16x64xf32> to vector<16x64xf32>
    %cst_527 = arith.constant dense<0.000000e+00> : vector<2x64xf32>
    %599 = tpu.matmul %596, %598, %cst_527 {dimension_numbers = #tpu.dot_dimension_numbers<[1], [0], [0], [1], [0, 0, 1, 1], [], []>} : vector<2x16xf32>, vector<16x64xf32>, vector<2x64xf32> -> vector<2x64xf32>
    %600 = vector.extract_strided_slice %558 {offsets = [6, 0], sizes = [2, 16], strides = [1, 1]} : vector<8x16xf32> to vector<2x16xf32>
    %c1_528 = arith.constant 1 : index
    %c0_529 = arith.constant 0 : index
    %c0_530 = arith.constant 0 : index
    %601 = vector.load %arg5[%c1_528, %c0_529, %c0_530] : memref<4x16x64xf32, #tpu.memory_space<vmem>>, vector<1x16x64xf32>
    %602 = vector.shape_cast %601 : vector<1x16x64xf32> to vector<16x64xf32>
    %cst_531 = arith.constant dense<0.000000e+00> : vector<2x64xf32>
    %603 = tpu.matmul %600, %602, %cst_531 {dimension_numbers = #tpu.dot_dimension_numbers<[1], [0], [0], [1], [0, 0, 1, 1], [], []>} : vector<2x16xf32>, vector<16x64xf32>, vector<2x64xf32> -> vector<2x64xf32>
    %604 = arith.addf %599, %603 : vector<2x64xf32>
    %605 = vector.extract_strided_slice %564 {offsets = [4, 0], sizes = [2, 16], strides = [1, 1]} : vector<8x16xf32> to vector<2x16xf32>
    %c2_532 = arith.constant 2 : index
    %c0_533 = arith.constant 0 : index
    %c0_534 = arith.constant 0 : index
    %606 = vector.load %arg5[%c2_532, %c0_533, %c0_534] : memref<4x16x64xf32, #tpu.memory_space<vmem>>, vector<1x16x64xf32>
    %607 = vector.shape_cast %606 : vector<1x16x64xf32> to vector<16x64xf32>
    %cst_535 = arith.constant dense<0.000000e+00> : vector<2x64xf32>
    %608 = tpu.matmul %605, %607, %cst_535 {dimension_numbers = #tpu.dot_dimension_numbers<[1], [0], [0], [1], [0, 0, 1, 1], [], []>} : vector<2x16xf32>, vector<16x64xf32>, vector<2x64xf32> -> vector<2x64xf32>
    %609 = arith.addf %604, %608 : vector<2x64xf32>
    %610 = vector.extract_strided_slice %564 {offsets = [6, 0], sizes = [2, 16], strides = [1, 1]} : vector<8x16xf32> to vector<2x16xf32>
    %c3_536 = arith.constant 3 : index
    %c0_537 = arith.constant 0 : index
    %c0_538 = arith.constant 0 : index
    %611 = vector.load %arg5[%c3_536, %c0_537, %c0_538] : memref<4x16x64xf32, #tpu.memory_space<vmem>>, vector<1x16x64xf32>
    %612 = vector.shape_cast %611 : vector<1x16x64xf32> to vector<16x64xf32>
    %cst_539 = arith.constant dense<0.000000e+00> : vector<2x64xf32>
    %613 = tpu.matmul %610, %612, %cst_539 {dimension_numbers = #tpu.dot_dimension_numbers<[1], [0], [0], [1], [0, 0, 1, 1], [], []>} : vector<2x16xf32>, vector<16x64xf32>, vector<2x64xf32> -> vector<2x64xf32>
    %614 = arith.addf %609, %613 : vector<2x64xf32>
    %615 = vector.extract_strided_slice %570 {offsets = [0, 0], sizes = [2, 16], strides = [1, 1]} : vector<8x16xf32> to vector<2x16xf32>
    %c0_540 = arith.constant 0 : index
    %c0_541 = arith.constant 0 : index
    %c0_542 = arith.constant 0 : index
    %616 = vector.load %arg5[%c0_540, %c0_541, %c0_542] : memref<4x16x64xf32, #tpu.memory_space<vmem>>, vector<1x16x64xf32>
    %617 = vector.shape_cast %616 : vector<1x16x64xf32> to vector<16x64xf32>
    %cst_543 = arith.constant dense<0.000000e+00> : vector<2x64xf32>
    %618 = tpu.matmul %615, %617, %cst_543 {dimension_numbers = #tpu.dot_dimension_numbers<[1], [0], [0], [1], [0, 0, 1, 1], [], []>} : vector<2x16xf32>, vector<16x64xf32>, vector<2x64xf32> -> vector<2x64xf32>
    %619 = vector.extract_strided_slice %570 {offsets = [2, 0], sizes = [2, 16], strides = [1, 1]} : vector<8x16xf32> to vector<2x16xf32>
    %c1_544 = arith.constant 1 : index
    %c0_545 = arith.constant 0 : index
    %c0_546 = arith.constant 0 : index
    %620 = vector.load %arg5[%c1_544, %c0_545, %c0_546] : memref<4x16x64xf32, #tpu.memory_space<vmem>>, vector<1x16x64xf32>
    %621 = vector.shape_cast %620 : vector<1x16x64xf32> to vector<16x64xf32>
    %cst_547 = arith.constant dense<0.000000e+00> : vector<2x64xf32>
    %622 = tpu.matmul %619, %621, %cst_547 {dimension_numbers = #tpu.dot_dimension_numbers<[1], [0], [0], [1], [0, 0, 1, 1], [], []>} : vector<2x16xf32>, vector<16x64xf32>, vector<2x64xf32> -> vector<2x64xf32>
    %623 = arith.addf %618, %622 : vector<2x64xf32>
    %624 = vector.extract_strided_slice %576 {offsets = [0, 0], sizes = [2, 16], strides = [1, 1]} : vector<8x16xf32> to vector<2x16xf32>
    %c2_548 = arith.constant 2 : index
    %c0_549 = arith.constant 0 : index
    %c0_550 = arith.constant 0 : index
    %625 = vector.load %arg5[%c2_548, %c0_549, %c0_550] : memref<4x16x64xf32, #tpu.memory_space<vmem>>, vector<1x16x64xf32>
    %626 = vector.shape_cast %625 : vector<1x16x64xf32> to vector<16x64xf32>
    %cst_551 = arith.constant dense<0.000000e+00> : vector<2x64xf32>
    %627 = tpu.matmul %624, %626, %cst_551 {dimension_numbers = #tpu.dot_dimension_numbers<[1], [0], [0], [1], [0, 0, 1, 1], [], []>} : vector<2x16xf32>, vector<16x64xf32>, vector<2x64xf32> -> vector<2x64xf32>
    %628 = arith.addf %623, %627 : vector<2x64xf32>
    %629 = vector.extract_strided_slice %576 {offsets = [2, 0], sizes = [2, 16], strides = [1, 1]} : vector<8x16xf32> to vector<2x16xf32>
    %c3_552 = arith.constant 3 : index
    %c0_553 = arith.constant 0 : index
    %c0_554 = arith.constant 0 : index
    %630 = vector.load %arg5[%c3_552, %c0_553, %c0_554] : memref<4x16x64xf32, #tpu.memory_space<vmem>>, vector<1x16x64xf32>
    %631 = vector.shape_cast %630 : vector<1x16x64xf32> to vector<16x64xf32>
    %cst_555 = arith.constant dense<0.000000e+00> : vector<2x64xf32>
    %632 = tpu.matmul %629, %631, %cst_555 {dimension_numbers = #tpu.dot_dimension_numbers<[1], [0], [0], [1], [0, 0, 1, 1], [], []>} : vector<2x16xf32>, vector<16x64xf32>, vector<2x64xf32> -> vector<2x64xf32>
    %633 = arith.addf %628, %632 : vector<2x64xf32>
    %634 = vector.extract_strided_slice %570 {offsets = [4, 0], sizes = [2, 16], strides = [1, 1]} : vector<8x16xf32> to vector<2x16xf32>
    %c0_556 = arith.constant 0 : index
    %c0_557 = arith.constant 0 : index
    %c0_558 = arith.constant 0 : index
    %635 = vector.load %arg5[%c0_556, %c0_557, %c0_558] : memref<4x16x64xf32, #tpu.memory_space<vmem>>, vector<1x16x64xf32>
    %636 = vector.shape_cast %635 : vector<1x16x64xf32> to vector<16x64xf32>
    %cst_559 = arith.constant dense<0.000000e+00> : vector<2x64xf32>
    %637 = tpu.matmul %634, %636, %cst_559 {dimension_numbers = #tpu.dot_dimension_numbers<[1], [0], [0], [1], [0, 0, 1, 1], [], []>} : vector<2x16xf32>, vector<16x64xf32>, vector<2x64xf32> -> vector<2x64xf32>
    %638 = vector.extract_strided_slice %570 {offsets = [6, 0], sizes = [2, 16], strides = [1, 1]} : vector<8x16xf32> to vector<2x16xf32>
    %c1_560 = arith.constant 1 : index
    %c0_561 = arith.constant 0 : index
    %c0_562 = arith.constant 0 : index
    %639 = vector.load %arg5[%c1_560, %c0_561, %c0_562] : memref<4x16x64xf32, #tpu.memory_space<vmem>>, vector<1x16x64xf32>
    %640 = vector.shape_cast %639 : vector<1x16x64xf32> to vector<16x64xf32>
    %cst_563 = arith.constant dense<0.000000e+00> : vector<2x64xf32>
    %641 = tpu.matmul %638, %640, %cst_563 {dimension_numbers = #tpu.dot_dimension_numbers<[1], [0], [0], [1], [0, 0, 1, 1], [], []>} : vector<2x16xf32>, vector<16x64xf32>, vector<2x64xf32> -> vector<2x64xf32>
    %642 = arith.addf %637, %641 : vector<2x64xf32>
    %643 = vector.extract_strided_slice %576 {offsets = [4, 0], sizes = [2, 16], strides = [1, 1]} : vector<8x16xf32> to vector<2x16xf32>
    %c2_564 = arith.constant 2 : index
    %c0_565 = arith.constant 0 : index
    %c0_566 = arith.constant 0 : index
    %644 = vector.load %arg5[%c2_564, %c0_565, %c0_566] : memref<4x16x64xf32, #tpu.memory_space<vmem>>, vector<1x16x64xf32>
    %645 = vector.shape_cast %644 : vector<1x16x64xf32> to vector<16x64xf32>
    %cst_567 = arith.constant dense<0.000000e+00> : vector<2x64xf32>
    %646 = tpu.matmul %643, %645, %cst_567 {dimension_numbers = #tpu.dot_dimension_numbers<[1], [0], [0], [1], [0, 0, 1, 1], [], []>} : vector<2x16xf32>, vector<16x64xf32>, vector<2x64xf32> -> vector<2x64xf32>
    %647 = arith.addf %642, %646 : vector<2x64xf32>
    %648 = vector.extract_strided_slice %576 {offsets = [6, 0], sizes = [2, 16], strides = [1, 1]} : vector<8x16xf32> to vector<2x16xf32>
    %c3_568 = arith.constant 3 : index
    %c0_569 = arith.constant 0 : index
    %c0_570 = arith.constant 0 : index
    %649 = vector.load %arg5[%c3_568, %c0_569, %c0_570] : memref<4x16x64xf32, #tpu.memory_space<vmem>>, vector<1x16x64xf32>
    %650 = vector.shape_cast %649 : vector<1x16x64xf32> to vector<16x64xf32>
    %cst_571 = arith.constant dense<0.000000e+00> : vector<2x64xf32>
    %651 = tpu.matmul %648, %650, %cst_571 {dimension_numbers = #tpu.dot_dimension_numbers<[1], [0], [0], [1], [0, 0, 1, 1], [], []>} : vector<2x16xf32>, vector<16x64xf32>, vector<2x64xf32> -> vector<2x64xf32>
    %652 = arith.addf %647, %651 : vector<2x64xf32>
    %653 = vector.shape_cast %595 : vector<2x64xf32> to vector<2x1x64xf32>
    %654 = vector.shape_cast %614 : vector<2x64xf32> to vector<2x1x64xf32>
    %655 = vector.shape_cast %633 : vector<2x64xf32> to vector<2x1x64xf32>
    %656 = vector.shape_cast %652 : vector<2x64xf32> to vector<2x1x64xf32>
    %657 = tpu.concatenate %653, %654, %655, %656 in 1 : vector<2x1x64xf32>, vector<2x1x64xf32>, vector<2x1x64xf32>, vector<2x1x64xf32> -> vector<2x4x64xf32>
    %c0_572 = arith.constant 0 : index
    %c0_573 = arith.constant 0 : index
    %c5_574 = arith.constant 5 : index
    %c0_575 = arith.constant 0 : index
    %c0_576 = arith.constant 0 : index
    %658 = vector.load %arg6[%c0_572, %c0_573, %c5_574, %c0_575, %c0_576] : memref<1x2x8x4x64xf32, #tpu.memory_space<vmem>>, vector<1x2x1x4x64xf32>
    %659 = vector.shape_cast %658 : vector<1x2x1x4x64xf32> to vector<2x4x64xf32>
    %660 = vector.shape_cast %657 : vector<2x4x64xf32> to vector<1x2x1x4x64xf32>
    tpu.vector_store %arg6[%c0_572, %c0_573, %c5_574, %c0_575, %c0_576], %660 {strides = array<i32>} : memref<1x2x8x4x64xf32, #tpu.memory_space<vmem>>, vector<1x2x1x4x64xf32>,
    %c0_577 = arith.constant 0 : index
    %c0_578 = arith.constant 0 : index
    %c6 = arith.constant 6 : index
    %c0_579 = arith.constant 0 : index
    %661 = vector.load %arg2[%c0_577, %c0_578, %c6, %c0_579] : memref<1x4x8x16xf32, #tpu.memory_space<vmem>>, vector<1x4x1x16xf32>
    %662 = vector.shape_cast %661 : vector<1x4x1x16xf32> to vector<4x16xf32>
    %c0_580 = arith.constant 0 : index
    %c0_581 = arith.constant 0 : index
    %c0_582 = arith.constant 0 : index
    %663 = vector.load %arg3[%c0_580, %c0_581, %c0_582] : memref<4x4x4xf32, #tpu.memory_space<vmem>>, vector<1x4x4xf32>
    %664 = vector.shape_cast %663 : vector<1x4x4xf32> to vector<4x4xf32>
    %cst_583 = arith.constant dense<0.000000e+00> : vector<4x16xf32>
    %665 = tpu.matmul %664, %662, %cst_583 {dimension_numbers = #tpu.dot_dimension_numbers<[1], [0], [0], [1], [0, 0, 1, 1], [], []>} : vector<4x4xf32>, vector<4x16xf32>, vector<4x16xf32> -> vector<4x16xf32>
    %cst_584 = arith.constant 0.000000e+00 : f32
    %666 = vector.broadcast %cst_584 : f32 to vector<4x16xf32>
    %667 = arith.maximumf %665, %666 : vector<4x16xf32>
    %cst_585 = arith.constant dense<0.000000e+00> : vector<8x16xf32>
    %668 = tpu.matmul %0, %667, %cst_585 {dimension_numbers = #tpu.dot_dimension_numbers<[1], [0], [0], [1], [0, 0, 1, 1], [], []>} : vector<8x4xf32>, vector<4x16xf32>, vector<8x16xf32> -> vector<8x16xf32>
    %c1_586 = arith.constant 1 : index
    %c0_587 = arith.constant 0 : index
    %c0_588 = arith.constant 0 : index
    %669 = vector.load %arg3[%c1_586, %c0_587, %c0_588] : memref<4x4x4xf32, #tpu.memory_space<vmem>>, vector<1x4x4xf32>
    %670 = vector.shape_cast %669 : vector<1x4x4xf32> to vector<4x4xf32>
    %cst_589 = arith.constant dense<0.000000e+00> : vector<4x16xf32>
    %671 = tpu.matmul %670, %662, %cst_589 {dimension_numbers = #tpu.dot_dimension_numbers<[1], [0], [0], [1], [0, 0, 1, 1], [], []>} : vector<4x4xf32>, vector<4x16xf32>, vector<4x16xf32> -> vector<4x16xf32>
    %cst_590 = arith.constant 0.000000e+00 : f32
    %672 = vector.broadcast %cst_590 : f32 to vector<4x16xf32>
    %673 = arith.maximumf %671, %672 : vector<4x16xf32>
    %cst_591 = arith.constant dense<0.000000e+00> : vector<8x16xf32>
    %674 = tpu.matmul %0, %673, %cst_591 {dimension_numbers = #tpu.dot_dimension_numbers<[1], [0], [0], [1], [0, 0, 1, 1], [], []>} : vector<8x4xf32>, vector<4x16xf32>, vector<8x16xf32> -> vector<8x16xf32>
    %c2_592 = arith.constant 2 : index
    %c0_593 = arith.constant 0 : index
    %c0_594 = arith.constant 0 : index
    %675 = vector.load %arg3[%c2_592, %c0_593, %c0_594] : memref<4x4x4xf32, #tpu.memory_space<vmem>>, vector<1x4x4xf32>
    %676 = vector.shape_cast %675 : vector<1x4x4xf32> to vector<4x4xf32>
    %cst_595 = arith.constant dense<0.000000e+00> : vector<4x16xf32>
    %677 = tpu.matmul %676, %662, %cst_595 {dimension_numbers = #tpu.dot_dimension_numbers<[1], [0], [0], [1], [0, 0, 1, 1], [], []>} : vector<4x4xf32>, vector<4x16xf32>, vector<4x16xf32> -> vector<4x16xf32>
    %cst_596 = arith.constant 0.000000e+00 : f32
    %678 = vector.broadcast %cst_596 : f32 to vector<4x16xf32>
    %679 = arith.maximumf %677, %678 : vector<4x16xf32>
    %cst_597 = arith.constant dense<0.000000e+00> : vector<8x16xf32>
    %680 = tpu.matmul %0, %679, %cst_597 {dimension_numbers = #tpu.dot_dimension_numbers<[1], [0], [0], [1], [0, 0, 1, 1], [], []>} : vector<8x4xf32>, vector<4x16xf32>, vector<8x16xf32> -> vector<8x16xf32>
    %c3_598 = arith.constant 3 : index
    %c0_599 = arith.constant 0 : index
    %c0_600 = arith.constant 0 : index
    %681 = vector.load %arg3[%c3_598, %c0_599, %c0_600] : memref<4x4x4xf32, #tpu.memory_space<vmem>>, vector<1x4x4xf32>
    %682 = vector.shape_cast %681 : vector<1x4x4xf32> to vector<4x4xf32>
    %cst_601 = arith.constant dense<0.000000e+00> : vector<4x16xf32>
    %683 = tpu.matmul %682, %662, %cst_601 {dimension_numbers = #tpu.dot_dimension_numbers<[1], [0], [0], [1], [0, 0, 1, 1], [], []>} : vector<4x4xf32>, vector<4x16xf32>, vector<4x16xf32> -> vector<4x16xf32>
    %cst_602 = arith.constant 0.000000e+00 : f32
    %684 = vector.broadcast %cst_602 : f32 to vector<4x16xf32>
    %685 = arith.maximumf %683, %684 : vector<4x16xf32>
    %cst_603 = arith.constant dense<0.000000e+00> : vector<8x16xf32>
    %686 = tpu.matmul %0, %685, %cst_603 {dimension_numbers = #tpu.dot_dimension_numbers<[1], [0], [0], [1], [0, 0, 1, 1], [], []>} : vector<8x4xf32>, vector<4x16xf32>, vector<8x16xf32> -> vector<8x16xf32>
    %687 = vector.extract_strided_slice %668 {offsets = [0, 0], sizes = [2, 16], strides = [1, 1]} : vector<8x16xf32> to vector<2x16xf32>
    %c0_604 = arith.constant 0 : index
    %c0_605 = arith.constant 0 : index
    %c0_606 = arith.constant 0 : index
    %688 = vector.load %arg5[%c0_604, %c0_605, %c0_606] : memref<4x16x64xf32, #tpu.memory_space<vmem>>, vector<1x16x64xf32>
    %689 = vector.shape_cast %688 : vector<1x16x64xf32> to vector<16x64xf32>
    %cst_607 = arith.constant dense<0.000000e+00> : vector<2x64xf32>
    %690 = tpu.matmul %687, %689, %cst_607 {dimension_numbers = #tpu.dot_dimension_numbers<[1], [0], [0], [1], [0, 0, 1, 1], [], []>} : vector<2x16xf32>, vector<16x64xf32>, vector<2x64xf32> -> vector<2x64xf32>
    %691 = vector.extract_strided_slice %668 {offsets = [2, 0], sizes = [2, 16], strides = [1, 1]} : vector<8x16xf32> to vector<2x16xf32>
    %c1_608 = arith.constant 1 : index
    %c0_609 = arith.constant 0 : index
    %c0_610 = arith.constant 0 : index
    %692 = vector.load %arg5[%c1_608, %c0_609, %c0_610] : memref<4x16x64xf32, #tpu.memory_space<vmem>>, vector<1x16x64xf32>
    %693 = vector.shape_cast %692 : vector<1x16x64xf32> to vector<16x64xf32>
    %cst_611 = arith.constant dense<0.000000e+00> : vector<2x64xf32>
    %694 = tpu.matmul %691, %693, %cst_611 {dimension_numbers = #tpu.dot_dimension_numbers<[1], [0], [0], [1], [0, 0, 1, 1], [], []>} : vector<2x16xf32>, vector<16x64xf32>, vector<2x64xf32> -> vector<2x64xf32>
    %695 = arith.addf %690, %694 : vector<2x64xf32>
    %696 = vector.extract_strided_slice %674 {offsets = [0, 0], sizes = [2, 16], strides = [1, 1]} : vector<8x16xf32> to vector<2x16xf32>
    %c2_612 = arith.constant 2 : index
    %c0_613 = arith.constant 0 : index
    %c0_614 = arith.constant 0 : index
    %697 = vector.load %arg5[%c2_612, %c0_613, %c0_614] : memref<4x16x64xf32, #tpu.memory_space<vmem>>, vector<1x16x64xf32>
    %698 = vector.shape_cast %697 : vector<1x16x64xf32> to vector<16x64xf32>
    %cst_615 = arith.constant dense<0.000000e+00> : vector<2x64xf32>
    %699 = tpu.matmul %696, %698, %cst_615 {dimension_numbers = #tpu.dot_dimension_numbers<[1], [0], [0], [1], [0, 0, 1, 1], [], []>} : vector<2x16xf32>, vector<16x64xf32>, vector<2x64xf32> -> vector<2x64xf32>
    %700 = arith.addf %695, %699 : vector<2x64xf32>
    %701 = vector.extract_strided_slice %674 {offsets = [2, 0], sizes = [2, 16], strides = [1, 1]} : vector<8x16xf32> to vector<2x16xf32>
    %c3_616 = arith.constant 3 : index
    %c0_617 = arith.constant 0 : index
    %c0_618 = arith.constant 0 : index
    %702 = vector.load %arg5[%c3_616, %c0_617, %c0_618] : memref<4x16x64xf32, #tpu.memory_space<vmem>>, vector<1x16x64xf32>
    %703 = vector.shape_cast %702 : vector<1x16x64xf32> to vector<16x64xf32>
    %cst_619 = arith.constant dense<0.000000e+00> : vector<2x64xf32>
    %704 = tpu.matmul %701, %703, %cst_619 {dimension_numbers = #tpu.dot_dimension_numbers<[1], [0], [0], [1], [0, 0, 1, 1], [], []>} : vector<2x16xf32>, vector<16x64xf32>, vector<2x64xf32> -> vector<2x64xf32>
    %705 = arith.addf %700, %704 : vector<2x64xf32>
    %706 = vector.extract_strided_slice %668 {offsets = [4, 0], sizes = [2, 16], strides = [1, 1]} : vector<8x16xf32> to vector<2x16xf32>
    %c0_620 = arith.constant 0 : index
    %c0_621 = arith.constant 0 : index
    %c0_622 = arith.constant 0 : index
    %707 = vector.load %arg5[%c0_620, %c0_621, %c0_622] : memref<4x16x64xf32, #tpu.memory_space<vmem>>, vector<1x16x64xf32>
    %708 = vector.shape_cast %707 : vector<1x16x64xf32> to vector<16x64xf32>
    %cst_623 = arith.constant dense<0.000000e+00> : vector<2x64xf32>
    %709 = tpu.matmul %706, %708, %cst_623 {dimension_numbers = #tpu.dot_dimension_numbers<[1], [0], [0], [1], [0, 0, 1, 1], [], []>} : vector<2x16xf32>, vector<16x64xf32>, vector<2x64xf32> -> vector<2x64xf32>
    %710 = vector.extract_strided_slice %668 {offsets = [6, 0], sizes = [2, 16], strides = [1, 1]} : vector<8x16xf32> to vector<2x16xf32>
    %c1_624 = arith.constant 1 : index
    %c0_625 = arith.constant 0 : index
    %c0_626 = arith.constant 0 : index
    %711 = vector.load %arg5[%c1_624, %c0_625, %c0_626] : memref<4x16x64xf32, #tpu.memory_space<vmem>>, vector<1x16x64xf32>
    %712 = vector.shape_cast %711 : vector<1x16x64xf32> to vector<16x64xf32>
    %cst_627 = arith.constant dense<0.000000e+00> : vector<2x64xf32>
    %713 = tpu.matmul %710, %712, %cst_627 {dimension_numbers = #tpu.dot_dimension_numbers<[1], [0], [0], [1], [0, 0, 1, 1], [], []>} : vector<2x16xf32>, vector<16x64xf32>, vector<2x64xf32> -> vector<2x64xf32>
    %714 = arith.addf %709, %713 : vector<2x64xf32>
    %715 = vector.extract_strided_slice %674 {offsets = [4, 0], sizes = [2, 16], strides = [1, 1]} : vector<8x16xf32> to vector<2x16xf32>
    %c2_628 = arith.constant 2 : index
    %c0_629 = arith.constant 0 : index
    %c0_630 = arith.constant 0 : index
    %716 = vector.load %arg5[%c2_628, %c0_629, %c0_630] : memref<4x16x64xf32, #tpu.memory_space<vmem>>, vector<1x16x64xf32>
    %717 = vector.shape_cast %716 : vector<1x16x64xf32> to vector<16x64xf32>
    %cst_631 = arith.constant dense<0.000000e+00> : vector<2x64xf32>
    %718 = tpu.matmul %715, %717, %cst_631 {dimension_numbers = #tpu.dot_dimension_numbers<[1], [0], [0], [1], [0, 0, 1, 1], [], []>} : vector<2x16xf32>, vector<16x64xf32>, vector<2x64xf32> -> vector<2x64xf32>
    %719 = arith.addf %714, %718 : vector<2x64xf32>
    %720 = vector.extract_strided_slice %674 {offsets = [6, 0], sizes = [2, 16], strides = [1, 1]} : vector<8x16xf32> to vector<2x16xf32>
    %c3_632 = arith.constant 3 : index
    %c0_633 = arith.constant 0 : index
    %c0_634 = arith.constant 0 : index
    %721 = vector.load %arg5[%c3_632, %c0_633, %c0_634] : memref<4x16x64xf32, #tpu.memory_space<vmem>>, vector<1x16x64xf32>
    %722 = vector.shape_cast %721 : vector<1x16x64xf32> to vector<16x64xf32>
    %cst_635 = arith.constant dense<0.000000e+00> : vector<2x64xf32>
    %723 = tpu.matmul %720, %722, %cst_635 {dimension_numbers = #tpu.dot_dimension_numbers<[1], [0], [0], [1], [0, 0, 1, 1], [], []>} : vector<2x16xf32>, vector<16x64xf32>, vector<2x64xf32> -> vector<2x64xf32>
    %724 = arith.addf %719, %723 : vector<2x64xf32>
    %725 = vector.extract_strided_slice %680 {offsets = [0, 0], sizes = [2, 16], strides = [1, 1]} : vector<8x16xf32> to vector<2x16xf32>
    %c0_636 = arith.constant 0 : index
    %c0_637 = arith.constant 0 : index
    %c0_638 = arith.constant 0 : index
    %726 = vector.load %arg5[%c0_636, %c0_637, %c0_638] : memref<4x16x64xf32, #tpu.memory_space<vmem>>, vector<1x16x64xf32>
    %727 = vector.shape_cast %726 : vector<1x16x64xf32> to vector<16x64xf32>
    %cst_639 = arith.constant dense<0.000000e+00> : vector<2x64xf32>
    %728 = tpu.matmul %725, %727, %cst_639 {dimension_numbers = #tpu.dot_dimension_numbers<[1], [0], [0], [1], [0, 0, 1, 1], [], []>} : vector<2x16xf32>, vector<16x64xf32>, vector<2x64xf32> -> vector<2x64xf32>
    %729 = vector.extract_strided_slice %680 {offsets = [2, 0], sizes = [2, 16], strides = [1, 1]} : vector<8x16xf32> to vector<2x16xf32>
    %c1_640 = arith.constant 1 : index
    %c0_641 = arith.constant 0 : index
    %c0_642 = arith.constant 0 : index
    %730 = vector.load %arg5[%c1_640, %c0_641, %c0_642] : memref<4x16x64xf32, #tpu.memory_space<vmem>>, vector<1x16x64xf32>
    %731 = vector.shape_cast %730 : vector<1x16x64xf32> to vector<16x64xf32>
    %cst_643 = arith.constant dense<0.000000e+00> : vector<2x64xf32>
    %732 = tpu.matmul %729, %731, %cst_643 {dimension_numbers = #tpu.dot_dimension_numbers<[1], [0], [0], [1], [0, 0, 1, 1], [], []>} : vector<2x16xf32>, vector<16x64xf32>, vector<2x64xf32> -> vector<2x64xf32>
    %733 = arith.addf %728, %732 : vector<2x64xf32>
    %734 = vector.extract_strided_slice %686 {offsets = [0, 0], sizes = [2, 16], strides = [1, 1]} : vector<8x16xf32> to vector<2x16xf32>
    %c2_644 = arith.constant 2 : index
    %c0_645 = arith.constant 0 : index
    %c0_646 = arith.constant 0 : index
    %735 = vector.load %arg5[%c2_644, %c0_645, %c0_646] : memref<4x16x64xf32, #tpu.memory_space<vmem>>, vector<1x16x64xf32>
    %736 = vector.shape_cast %735 : vector<1x16x64xf32> to vector<16x64xf32>
    %cst_647 = arith.constant dense<0.000000e+00> : vector<2x64xf32>
    %737 = tpu.matmul %734, %736, %cst_647 {dimension_numbers = #tpu.dot_dimension_numbers<[1], [0], [0], [1], [0, 0, 1, 1], [], []>} : vector<2x16xf32>, vector<16x64xf32>, vector<2x64xf32> -> vector<2x64xf32>
    %738 = arith.addf %733, %737 : vector<2x64xf32>
    %739 = vector.extract_strided_slice %686 {offsets = [2, 0], sizes = [2, 16], strides = [1, 1]} : vector<8x16xf32> to vector<2x16xf32>
    %c3_648 = arith.constant 3 : index
    %c0_649 = arith.constant 0 : index
    %c0_650 = arith.constant 0 : index
    %740 = vector.load %arg5[%c3_648, %c0_649, %c0_650] : memref<4x16x64xf32, #tpu.memory_space<vmem>>, vector<1x16x64xf32>
    %741 = vector.shape_cast %740 : vector<1x16x64xf32> to vector<16x64xf32>
    %cst_651 = arith.constant dense<0.000000e+00> : vector<2x64xf32>
    %742 = tpu.matmul %739, %741, %cst_651 {dimension_numbers = #tpu.dot_dimension_numbers<[1], [0], [0], [1], [0, 0, 1, 1], [], []>} : vector<2x16xf32>, vector<16x64xf32>, vector<2x64xf32> -> vector<2x64xf32>
    %743 = arith.addf %738, %742 : vector<2x64xf32>
    %744 = vector.extract_strided_slice %680 {offsets = [4, 0], sizes = [2, 16], strides = [1, 1]} : vector<8x16xf32> to vector<2x16xf32>
    %c0_652 = arith.constant 0 : index
    %c0_653 = arith.constant 0 : index
    %c0_654 = arith.constant 0 : index
    %745 = vector.load %arg5[%c0_652, %c0_653, %c0_654] : memref<4x16x64xf32, #tpu.memory_space<vmem>>, vector<1x16x64xf32>
    %746 = vector.shape_cast %745 : vector<1x16x64xf32> to vector<16x64xf32>
    %cst_655 = arith.constant dense<0.000000e+00> : vector<2x64xf32>
    %747 = tpu.matmul %744, %746, %cst_655 {dimension_numbers = #tpu.dot_dimension_numbers<[1], [0], [0], [1], [0, 0, 1, 1], [], []>} : vector<2x16xf32>, vector<16x64xf32>, vector<2x64xf32> -> vector<2x64xf32>
    %748 = vector.extract_strided_slice %680 {offsets = [6, 0], sizes = [2, 16], strides = [1, 1]} : vector<8x16xf32> to vector<2x16xf32>
    %c1_656 = arith.constant 1 : index
    %c0_657 = arith.constant 0 : index
    %c0_658 = arith.constant 0 : index
    %749 = vector.load %arg5[%c1_656, %c0_657, %c0_658] : memref<4x16x64xf32, #tpu.memory_space<vmem>>, vector<1x16x64xf32>
    %750 = vector.shape_cast %749 : vector<1x16x64xf32> to vector<16x64xf32>
    %cst_659 = arith.constant dense<0.000000e+00> : vector<2x64xf32>
    %751 = tpu.matmul %748, %750, %cst_659 {dimension_numbers = #tpu.dot_dimension_numbers<[1], [0], [0], [1], [0, 0, 1, 1], [], []>} : vector<2x16xf32>, vector<16x64xf32>, vector<2x64xf32> -> vector<2x64xf32>
    %752 = arith.addf %747, %751 : vector<2x64xf32>
    %753 = vector.extract_strided_slice %686 {offsets = [4, 0], sizes = [2, 16], strides = [1, 1]} : vector<8x16xf32> to vector<2x16xf32>
    %c2_660 = arith.constant 2 : index
    %c0_661 = arith.constant 0 : index
    %c0_662 = arith.constant 0 : index
    %754 = vector.load %arg5[%c2_660, %c0_661, %c0_662] : memref<4x16x64xf32, #tpu.memory_space<vmem>>, vector<1x16x64xf32>
    %755 = vector.shape_cast %754 : vector<1x16x64xf32> to vector<16x64xf32>
    %cst_663 = arith.constant dense<0.000000e+00> : vector<2x64xf32>
    %756 = tpu.matmul %753, %755, %cst_663 {dimension_numbers = #tpu.dot_dimension_numbers<[1], [0], [0], [1], [0, 0, 1, 1], [], []>} : vector<2x16xf32>, vector<16x64xf32>, vector<2x64xf32> -> vector<2x64xf32>
    %757 = arith.addf %752, %756 : vector<2x64xf32>
    %758 = vector.extract_strided_slice %686 {offsets = [6, 0], sizes = [2, 16], strides = [1, 1]} : vector<8x16xf32> to vector<2x16xf32>
    %c3_664 = arith.constant 3 : index
    %c0_665 = arith.constant 0 : index
    %c0_666 = arith.constant 0 : index
    %759 = vector.load %arg5[%c3_664, %c0_665, %c0_666] : memref<4x16x64xf32, #tpu.memory_space<vmem>>, vector<1x16x64xf32>
    %760 = vector.shape_cast %759 : vector<1x16x64xf32> to vector<16x64xf32>
    %cst_667 = arith.constant dense<0.000000e+00> : vector<2x64xf32>
    %761 = tpu.matmul %758, %760, %cst_667 {dimension_numbers = #tpu.dot_dimension_numbers<[1], [0], [0], [1], [0, 0, 1, 1], [], []>} : vector<2x16xf32>, vector<16x64xf32>, vector<2x64xf32> -> vector<2x64xf32>
    %762 = arith.addf %757, %761 : vector<2x64xf32>
    %763 = vector.shape_cast %705 : vector<2x64xf32> to vector<2x1x64xf32>
    %764 = vector.shape_cast %724 : vector<2x64xf32> to vector<2x1x64xf32>
    %765 = vector.shape_cast %743 : vector<2x64xf32> to vector<2x1x64xf32>
    %766 = vector.shape_cast %762 : vector<2x64xf32> to vector<2x1x64xf32>
    %767 = tpu.concatenate %763, %764, %765, %766 in 1 : vector<2x1x64xf32>, vector<2x1x64xf32>, vector<2x1x64xf32>, vector<2x1x64xf32> -> vector<2x4x64xf32>
    %c0_668 = arith.constant 0 : index
    %c0_669 = arith.constant 0 : index
    %c6_670 = arith.constant 6 : index
    %c0_671 = arith.constant 0 : index
    %c0_672 = arith.constant 0 : index
    %768 = vector.load %arg6[%c0_668, %c0_669, %c6_670, %c0_671, %c0_672] : memref<1x2x8x4x64xf32, #tpu.memory_space<vmem>>, vector<1x2x1x4x64xf32>
    %769 = vector.shape_cast %768 : vector<1x2x1x4x64xf32> to vector<2x4x64xf32>
    %770 = vector.shape_cast %767 : vector<2x4x64xf32> to vector<1x2x1x4x64xf32>
    tpu.vector_store %arg6[%c0_668, %c0_669, %c6_670, %c0_671, %c0_672], %770 {strides = array<i32>} : memref<1x2x8x4x64xf32, #tpu.memory_space<vmem>>, vector<1x2x1x4x64xf32>,
    %c0_673 = arith.constant 0 : index
    %c0_674 = arith.constant 0 : index
    %c7 = arith.constant 7 : index
    %c0_675 = arith.constant 0 : index
    %771 = vector.load %arg2[%c0_673, %c0_674, %c7, %c0_675] : memref<1x4x8x16xf32, #tpu.memory_space<vmem>>, vector<1x4x1x16xf32>
    %772 = vector.shape_cast %771 : vector<1x4x1x16xf32> to vector<4x16xf32>
    %c0_676 = arith.constant 0 : index
    %c0_677 = arith.constant 0 : index
    %c0_678 = arith.constant 0 : index
    %773 = vector.load %arg3[%c0_676, %c0_677, %c0_678] : memref<4x4x4xf32, #tpu.memory_space<vmem>>, vector<1x4x4xf32>
    %774 = vector.shape_cast %773 : vector<1x4x4xf32> to vector<4x4xf32>
    %cst_679 = arith.constant dense<0.000000e+00> : vector<4x16xf32>
    %775 = tpu.matmul %774, %772, %cst_679 {dimension_numbers = #tpu.dot_dimension_numbers<[1], [0], [0], [1], [0, 0, 1, 1], [], []>} : vector<4x4xf32>, vector<4x16xf32>, vector<4x16xf32> -> vector<4x16xf32>
    %cst_680 = arith.constant 0.000000e+00 : f32
    %776 = vector.broadcast %cst_680 : f32 to vector<4x16xf32>
    %777 = arith.maximumf %775, %776 : vector<4x16xf32>
    %cst_681 = arith.constant dense<0.000000e+00> : vector<8x16xf32>
    %778 = tpu.matmul %0, %777, %cst_681 {dimension_numbers = #tpu.dot_dimension_numbers<[1], [0], [0], [1], [0, 0, 1, 1], [], []>} : vector<8x4xf32>, vector<4x16xf32>, vector<8x16xf32> -> vector<8x16xf32>
    %c1_682 = arith.constant 1 : index
    %c0_683 = arith.constant 0 : index
    %c0_684 = arith.constant 0 : index
    %779 = vector.load %arg3[%c1_682, %c0_683, %c0_684] : memref<4x4x4xf32, #tpu.memory_space<vmem>>, vector<1x4x4xf32>
    %780 = vector.shape_cast %779 : vector<1x4x4xf32> to vector<4x4xf32>
    %cst_685 = arith.constant dense<0.000000e+00> : vector<4x16xf32>
    %781 = tpu.matmul %780, %772, %cst_685 {dimension_numbers = #tpu.dot_dimension_numbers<[1], [0], [0], [1], [0, 0, 1, 1], [], []>} : vector<4x4xf32>, vector<4x16xf32>, vector<4x16xf32> -> vector<4x16xf32>
    %cst_686 = arith.constant 0.000000e+00 : f32
    %782 = vector.broadcast %cst_686 : f32 to vector<4x16xf32>
    %783 = arith.maximumf %781, %782 : vector<4x16xf32>
    %cst_687 = arith.constant dense<0.000000e+00> : vector<8x16xf32>
    %784 = tpu.matmul %0, %783, %cst_687 {dimension_numbers = #tpu.dot_dimension_numbers<[1], [0], [0], [1], [0, 0, 1, 1], [], []>} : vector<8x4xf32>, vector<4x16xf32>, vector<8x16xf32> -> vector<8x16xf32>
    %c2_688 = arith.constant 2 : index
    %c0_689 = arith.constant 0 : index
    %c0_690 = arith.constant 0 : index
    %785 = vector.load %arg3[%c2_688, %c0_689, %c0_690] : memref<4x4x4xf32, #tpu.memory_space<vmem>>, vector<1x4x4xf32>
    %786 = vector.shape_cast %785 : vector<1x4x4xf32> to vector<4x4xf32>
    %cst_691 = arith.constant dense<0.000000e+00> : vector<4x16xf32>
    %787 = tpu.matmul %786, %772, %cst_691 {dimension_numbers = #tpu.dot_dimension_numbers<[1], [0], [0], [1], [0, 0, 1, 1], [], []>} : vector<4x4xf32>, vector<4x16xf32>, vector<4x16xf32> -> vector<4x16xf32>
    %cst_692 = arith.constant 0.000000e+00 : f32
    %788 = vector.broadcast %cst_692 : f32 to vector<4x16xf32>
    %789 = arith.maximumf %787, %788 : vector<4x16xf32>
    %cst_693 = arith.constant dense<0.000000e+00> : vector<8x16xf32>
    %790 = tpu.matmul %0, %789, %cst_693 {dimension_numbers = #tpu.dot_dimension_numbers<[1], [0], [0], [1], [0, 0, 1, 1], [], []>} : vector<8x4xf32>, vector<4x16xf32>, vector<8x16xf32> -> vector<8x16xf32>
    %c3_694 = arith.constant 3 : index
    %c0_695 = arith.constant 0 : index
    %c0_696 = arith.constant 0 : index
    %791 = vector.load %arg3[%c3_694, %c0_695, %c0_696] : memref<4x4x4xf32, #tpu.memory_space<vmem>>, vector<1x4x4xf32>
    %792 = vector.shape_cast %791 : vector<1x4x4xf32> to vector<4x4xf32>
    %cst_697 = arith.constant dense<0.000000e+00> : vector<4x16xf32>
    %793 = tpu.matmul %792, %772, %cst_697 {dimension_numbers = #tpu.dot_dimension_numbers<[1], [0], [0], [1], [0, 0, 1, 1], [], []>} : vector<4x4xf32>, vector<4x16xf32>, vector<4x16xf32> -> vector<4x16xf32>
    %cst_698 = arith.constant 0.000000e+00 : f32
    %794 = vector.broadcast %cst_698 : f32 to vector<4x16xf32>
    %795 = arith.maximumf %793, %794 : vector<4x16xf32>
    %cst_699 = arith.constant dense<0.000000e+00> : vector<8x16xf32>
    %796 = tpu.matmul %0, %795, %cst_699 {dimension_numbers = #tpu.dot_dimension_numbers<[1], [0], [0], [1], [0, 0, 1, 1], [], []>} : vector<8x4xf32>, vector<4x16xf32>, vector<8x16xf32> -> vector<8x16xf32>
    %797 = vector.extract_strided_slice %778 {offsets = [0, 0], sizes = [2, 16], strides = [1, 1]} : vector<8x16xf32> to vector<2x16xf32>
    %c0_700 = arith.constant 0 : index
    %c0_701 = arith.constant 0 : index
    %c0_702 = arith.constant 0 : index
    %798 = vector.load %arg5[%c0_700, %c0_701, %c0_702] : memref<4x16x64xf32, #tpu.memory_space<vmem>>, vector<1x16x64xf32>
    %799 = vector.shape_cast %798 : vector<1x16x64xf32> to vector<16x64xf32>
    %cst_703 = arith.constant dense<0.000000e+00> : vector<2x64xf32>
    %800 = tpu.matmul %797, %799, %cst_703 {dimension_numbers = #tpu.dot_dimension_numbers<[1], [0], [0], [1], [0, 0, 1, 1], [], []>} : vector<2x16xf32>, vector<16x64xf32>, vector<2x64xf32> -> vector<2x64xf32>
    %801 = vector.extract_strided_slice %778 {offsets = [2, 0], sizes = [2, 16], strides = [1, 1]} : vector<8x16xf32> to vector<2x16xf32>
    %c1_704 = arith.constant 1 : index
    %c0_705 = arith.constant 0 : index
    %c0_706 = arith.constant 0 : index
    %802 = vector.load %arg5[%c1_704, %c0_705, %c0_706] : memref<4x16x64xf32, #tpu.memory_space<vmem>>, vector<1x16x64xf32>
    %803 = vector.shape_cast %802 : vector<1x16x64xf32> to vector<16x64xf32>
    %cst_707 = arith.constant dense<0.000000e+00> : vector<2x64xf32>
    %804 = tpu.matmul %801, %803, %cst_707 {dimension_numbers = #tpu.dot_dimension_numbers<[1], [0], [0], [1], [0, 0, 1, 1], [], []>} : vector<2x16xf32>, vector<16x64xf32>, vector<2x64xf32> -> vector<2x64xf32>
    %805 = arith.addf %800, %804 : vector<2x64xf32>
    %806 = vector.extract_strided_slice %784 {offsets = [0, 0], sizes = [2, 16], strides = [1, 1]} : vector<8x16xf32> to vector<2x16xf32>
    %c2_708 = arith.constant 2 : index
    %c0_709 = arith.constant 0 : index
    %c0_710 = arith.constant 0 : index
    %807 = vector.load %arg5[%c2_708, %c0_709, %c0_710] : memref<4x16x64xf32, #tpu.memory_space<vmem>>, vector<1x16x64xf32>
    %808 = vector.shape_cast %807 : vector<1x16x64xf32> to vector<16x64xf32>
    %cst_711 = arith.constant dense<0.000000e+00> : vector<2x64xf32>
    %809 = tpu.matmul %806, %808, %cst_711 {dimension_numbers = #tpu.dot_dimension_numbers<[1], [0], [0], [1], [0, 0, 1, 1], [], []>} : vector<2x16xf32>, vector<16x64xf32>, vector<2x64xf32> -> vector<2x64xf32>
    %810 = arith.addf %805, %809 : vector<2x64xf32>
    %811 = vector.extract_strided_slice %784 {offsets = [2, 0], sizes = [2, 16], strides = [1, 1]} : vector<8x16xf32> to vector<2x16xf32>
    %c3_712 = arith.constant 3 : index
    %c0_713 = arith.constant 0 : index
    %c0_714 = arith.constant 0 : index
    %812 = vector.load %arg5[%c3_712, %c0_713, %c0_714] : memref<4x16x64xf32, #tpu.memory_space<vmem>>, vector<1x16x64xf32>
    %813 = vector.shape_cast %812 : vector<1x16x64xf32> to vector<16x64xf32>
    %cst_715 = arith.constant dense<0.000000e+00> : vector<2x64xf32>
    %814 = tpu.matmul %811, %813, %cst_715 {dimension_numbers = #tpu.dot_dimension_numbers<[1], [0], [0], [1], [0, 0, 1, 1], [], []>} : vector<2x16xf32>, vector<16x64xf32>, vector<2x64xf32> -> vector<2x64xf32>
    %815 = arith.addf %810, %814 : vector<2x64xf32>
    %816 = vector.extract_strided_slice %778 {offsets = [4, 0], sizes = [2, 16], strides = [1, 1]} : vector<8x16xf32> to vector<2x16xf32>
    %c0_716 = arith.constant 0 : index
    %c0_717 = arith.constant 0 : index
    %c0_718 = arith.constant 0 : index
    %817 = vector.load %arg5[%c0_716, %c0_717, %c0_718] : memref<4x16x64xf32, #tpu.memory_space<vmem>>, vector<1x16x64xf32>
    %818 = vector.shape_cast %817 : vector<1x16x64xf32> to vector<16x64xf32>
    %cst_719 = arith.constant dense<0.000000e+00> : vector<2x64xf32>
    %819 = tpu.matmul %816, %818, %cst_719 {dimension_numbers = #tpu.dot_dimension_numbers<[1], [0], [0], [1], [0, 0, 1, 1], [], []>} : vector<2x16xf32>, vector<16x64xf32>, vector<2x64xf32> -> vector<2x64xf32>
    %820 = vector.extract_strided_slice %778 {offsets = [6, 0], sizes = [2, 16], strides = [1, 1]} : vector<8x16xf32> to vector<2x16xf32>
    %c1_720 = arith.constant 1 : index
    %c0_721 = arith.constant 0 : index
    %c0_722 = arith.constant 0 : index
    %821 = vector.load %arg5[%c1_720, %c0_721, %c0_722] : memref<4x16x64xf32, #tpu.memory_space<vmem>>, vector<1x16x64xf32>
    %822 = vector.shape_cast %821 : vector<1x16x64xf32> to vector<16x64xf32>
    %cst_723 = arith.constant dense<0.000000e+00> : vector<2x64xf32>
    %823 = tpu.matmul %820, %822, %cst_723 {dimension_numbers = #tpu.dot_dimension_numbers<[1], [0], [0], [1], [0, 0, 1, 1], [], []>} : vector<2x16xf32>, vector<16x64xf32>, vector<2x64xf32> -> vector<2x64xf32>
    %824 = arith.addf %819, %823 : vector<2x64xf32>
    %825 = vector.extract_strided_slice %784 {offsets = [4, 0], sizes = [2, 16], strides = [1, 1]} : vector<8x16xf32> to vector<2x16xf32>
    %c2_724 = arith.constant 2 : index
    %c0_725 = arith.constant 0 : index
    %c0_726 = arith.constant 0 : index
    %826 = vector.load %arg5[%c2_724, %c0_725, %c0_726] : memref<4x16x64xf32, #tpu.memory_space<vmem>>, vector<1x16x64xf32>
    %827 = vector.shape_cast %826 : vector<1x16x64xf32> to vector<16x64xf32>
    %cst_727 = arith.constant dense<0.000000e+00> : vector<2x64xf32>
    %828 = tpu.matmul %825, %827, %cst_727 {dimension_numbers = #tpu.dot_dimension_numbers<[1], [0], [0], [1], [0, 0, 1, 1], [], []>} : vector<2x16xf32>, vector<16x64xf32>, vector<2x64xf32> -> vector<2x64xf32>
    %829 = arith.addf %824, %828 : vector<2x64xf32>
    %830 = vector.extract_strided_slice %784 {offsets = [6, 0], sizes = [2, 16], strides = [1, 1]} : vector<8x16xf32> to vector<2x16xf32>
    %c3_728 = arith.constant 3 : index
    %c0_729 = arith.constant 0 : index
    %c0_730 = arith.constant 0 : index
    %831 = vector.load %arg5[%c3_728, %c0_729, %c0_730] : memref<4x16x64xf32, #tpu.memory_space<vmem>>, vector<1x16x64xf32>
    %832 = vector.shape_cast %831 : vector<1x16x64xf32> to vector<16x64xf32>
    %cst_731 = arith.constant dense<0.000000e+00> : vector<2x64xf32>
    %833 = tpu.matmul %830, %832, %cst_731 {dimension_numbers = #tpu.dot_dimension_numbers<[1], [0], [0], [1], [0, 0, 1, 1], [], []>} : vector<2x16xf32>, vector<16x64xf32>, vector<2x64xf32> -> vector<2x64xf32>
    %834 = arith.addf %829, %833 : vector<2x64xf32>
    %835 = vector.extract_strided_slice %790 {offsets = [0, 0], sizes = [2, 16], strides = [1, 1]} : vector<8x16xf32> to vector<2x16xf32>
    %c0_732 = arith.constant 0 : index
    %c0_733 = arith.constant 0 : index
    %c0_734 = arith.constant 0 : index
    %836 = vector.load %arg5[%c0_732, %c0_733, %c0_734] : memref<4x16x64xf32, #tpu.memory_space<vmem>>, vector<1x16x64xf32>
    %837 = vector.shape_cast %836 : vector<1x16x64xf32> to vector<16x64xf32>
    %cst_735 = arith.constant dense<0.000000e+00> : vector<2x64xf32>
    %838 = tpu.matmul %835, %837, %cst_735 {dimension_numbers = #tpu.dot_dimension_numbers<[1], [0], [0], [1], [0, 0, 1, 1], [], []>} : vector<2x16xf32>, vector<16x64xf32>, vector<2x64xf32> -> vector<2x64xf32>
    %839 = vector.extract_strided_slice %790 {offsets = [2, 0], sizes = [2, 16], strides = [1, 1]} : vector<8x16xf32> to vector<2x16xf32>
    %c1_736 = arith.constant 1 : index
    %c0_737 = arith.constant 0 : index
    %c0_738 = arith.constant 0 : index
    %840 = vector.load %arg5[%c1_736, %c0_737, %c0_738] : memref<4x16x64xf32, #tpu.memory_space<vmem>>, vector<1x16x64xf32>
    %841 = vector.shape_cast %840 : vector<1x16x64xf32> to vector<16x64xf32>
    %cst_739 = arith.constant dense<0.000000e+00> : vector<2x64xf32>
    %842 = tpu.matmul %839, %841, %cst_739 {dimension_numbers = #tpu.dot_dimension_numbers<[1], [0], [0], [1], [0, 0, 1, 1], [], []>} : vector<2x16xf32>, vector<16x64xf32>, vector<2x64xf32> -> vector<2x64xf32>
    %843 = arith.addf %838, %842 : vector<2x64xf32>
    %844 = vector.extract_strided_slice %796 {offsets = [0, 0], sizes = [2, 16], strides = [1, 1]} : vector<8x16xf32> to vector<2x16xf32>
    %c2_740 = arith.constant 2 : index
    %c0_741 = arith.constant 0 : index
    %c0_742 = arith.constant 0 : index
    %845 = vector.load %arg5[%c2_740, %c0_741, %c0_742] : memref<4x16x64xf32, #tpu.memory_space<vmem>>, vector<1x16x64xf32>
    %846 = vector.shape_cast %845 : vector<1x16x64xf32> to vector<16x64xf32>
    %cst_743 = arith.constant dense<0.000000e+00> : vector<2x64xf32>
    %847 = tpu.matmul %844, %846, %cst_743 {dimension_numbers = #tpu.dot_dimension_numbers<[1], [0], [0], [1], [0, 0, 1, 1], [], []>} : vector<2x16xf32>, vector<16x64xf32>, vector<2x64xf32> -> vector<2x64xf32>
    %848 = arith.addf %843, %847 : vector<2x64xf32>
    %849 = vector.extract_strided_slice %796 {offsets = [2, 0], sizes = [2, 16], strides = [1, 1]} : vector<8x16xf32> to vector<2x16xf32>
    %c3_744 = arith.constant 3 : index
    %c0_745 = arith.constant 0 : index
    %c0_746 = arith.constant 0 : index
    %850 = vector.load %arg5[%c3_744, %c0_745, %c0_746] : memref<4x16x64xf32, #tpu.memory_space<vmem>>, vector<1x16x64xf32>
    %851 = vector.shape_cast %850 : vector<1x16x64xf32> to vector<16x64xf32>
    %cst_747 = arith.constant dense<0.000000e+00> : vector<2x64xf32>
    %852 = tpu.matmul %849, %851, %cst_747 {dimension_numbers = #tpu.dot_dimension_numbers<[1], [0], [0], [1], [0, 0, 1, 1], [], []>} : vector<2x16xf32>, vector<16x64xf32>, vector<2x64xf32> -> vector<2x64xf32>
    %853 = arith.addf %848, %852 : vector<2x64xf32>
    %854 = vector.extract_strided_slice %790 {offsets = [4, 0], sizes = [2, 16], strides = [1, 1]} : vector<8x16xf32> to vector<2x16xf32>
    %c0_748 = arith.constant 0 : index
    %c0_749 = arith.constant 0 : index
    %c0_750 = arith.constant 0 : index
    %855 = vector.load %arg5[%c0_748, %c0_749, %c0_750] : memref<4x16x64xf32, #tpu.memory_space<vmem>>, vector<1x16x64xf32>
    %856 = vector.shape_cast %855 : vector<1x16x64xf32> to vector<16x64xf32>
    %cst_751 = arith.constant dense<0.000000e+00> : vector<2x64xf32>
    %857 = tpu.matmul %854, %856, %cst_751 {dimension_numbers = #tpu.dot_dimension_numbers<[1], [0], [0], [1], [0, 0, 1, 1], [], []>} : vector<2x16xf32>, vector<16x64xf32>, vector<2x64xf32> -> vector<2x64xf32>
    %858 = vector.extract_strided_slice %790 {offsets = [6, 0], sizes = [2, 16], strides = [1, 1]} : vector<8x16xf32> to vector<2x16xf32>
    %c1_752 = arith.constant 1 : index
    %c0_753 = arith.constant 0 : index
    %c0_754 = arith.constant 0 : index
    %859 = vector.load %arg5[%c1_752, %c0_753, %c0_754] : memref<4x16x64xf32, #tpu.memory_space<vmem>>, vector<1x16x64xf32>
    %860 = vector.shape_cast %859 : vector<1x16x64xf32> to vector<16x64xf32>
    %cst_755 = arith.constant dense<0.000000e+00> : vector<2x64xf32>
    %861 = tpu.matmul %858, %860, %cst_755 {dimension_numbers = #tpu.dot_dimension_numbers<[1], [0], [0], [1], [0, 0, 1, 1], [], []>} : vector<2x16xf32>, vector<16x64xf32>, vector<2x64xf32> -> vector<2x64xf32>
    %862 = arith.addf %857, %861 : vector<2x64xf32>
    %863 = vector.extract_strided_slice %796 {offsets = [4, 0], sizes = [2, 16], strides = [1, 1]} : vector<8x16xf32> to vector<2x16xf32>
    %c2_756 = arith.constant 2 : index
    %c0_757 = arith.constant 0 : index
    %c0_758 = arith.constant 0 : index
    %864 = vector.load %arg5[%c2_756, %c0_757, %c0_758] : memref<4x16x64xf32, #tpu.memory_space<vmem>>, vector<1x16x64xf32>
    %865 = vector.shape_cast %864 : vector<1x16x64xf32> to vector<16x64xf32>
    %cst_759 = arith.constant dense<0.000000e+00> : vector<2x64xf32>
    %866 = tpu.matmul %863, %865, %cst_759 {dimension_numbers = #tpu.dot_dimension_numbers<[1], [0], [0], [1], [0, 0, 1, 1], [], []>} : vector<2x16xf32>, vector<16x64xf32>, vector<2x64xf32> -> vector<2x64xf32>
    %867 = arith.addf %862, %866 : vector<2x64xf32>
    %868 = vector.extract_strided_slice %796 {offsets = [6, 0], sizes = [2, 16], strides = [1, 1]} : vector<8x16xf32> to vector<2x16xf32>
    %c3_760 = arith.constant 3 : index
    %c0_761 = arith.constant 0 : index
    %c0_762 = arith.constant 0 : index
    %869 = vector.load %arg5[%c3_760, %c0_761, %c0_762] : memref<4x16x64xf32, #tpu.memory_space<vmem>>, vector<1x16x64xf32>
    %870 = vector.shape_cast %869 : vector<1x16x64xf32> to vector<16x64xf32>
    %cst_763 = arith.constant dense<0.000000e+00> : vector<2x64xf32>
    %871 = tpu.matmul %868, %870, %cst_763 {dimension_numbers = #tpu.dot_dimension_numbers<[1], [0], [0], [1], [0, 0, 1, 1], [], []>} : vector<2x16xf32>, vector<16x64xf32>, vector<2x64xf32> -> vector<2x64xf32>
    %872 = arith.addf %867, %871 : vector<2x64xf32>
    %873 = vector.shape_cast %815 : vector<2x64xf32> to vector<2x1x64xf32>
    %874 = vector.shape_cast %834 : vector<2x64xf32> to vector<2x1x64xf32>
    %875 = vector.shape_cast %853 : vector<2x64xf32> to vector<2x1x64xf32>
    %876 = vector.shape_cast %872 : vector<2x64xf32> to vector<2x1x64xf32>
    %877 = tpu.concatenate %873, %874, %875, %876 in 1 : vector<2x1x64xf32>, vector<2x1x64xf32>, vector<2x1x64xf32>, vector<2x1x64xf32> -> vector<2x4x64xf32>
    %c0_764 = arith.constant 0 : index
    %c0_765 = arith.constant 0 : index
    %c7_766 = arith.constant 7 : index
    %c0_767 = arith.constant 0 : index
    %c0_768 = arith.constant 0 : index
    %878 = vector.load %arg6[%c0_764, %c0_765, %c7_766, %c0_767, %c0_768] : memref<1x2x8x4x64xf32, #tpu.memory_space<vmem>>, vector<1x2x1x4x64xf32>
    %879 = vector.shape_cast %878 : vector<1x2x1x4x64xf32> to vector<2x4x64xf32>
    %880 = vector.shape_cast %877 : vector<2x4x64xf32> to vector<1x2x1x4x64xf32>
    tpu.vector_store %arg6[%c0_764, %c0_765, %c7_766, %c0_767, %c0_768], %880 {strides = array<i32>} : memref<1x2x8x4x64xf32, #tpu.memory_space<vmem>>, vector<1x2x1x4x64xf32>,
    return
  }
  func.func @transform_0(%arg0: i32, %arg1: i32) -> (i32, i32, i32, i32) {
    %c0_i32 = arith.constant 0 : i32
    %c0_i32_0 = arith.constant 0 : i32
    %c0_i32_1 = arith.constant 0 : i32
    return %arg0, %c0_i32, %arg1, %c0_i32_0 : i32, i32, i32, i32
  }
  func.func @transform_1(%arg0: i32, %arg1: i32) -> (i32, i32, i32) {
    %c0_i32 = arith.constant 0 : i32
    %c0_i32_0 = arith.constant 0 : i32
    %c0_i32_1 = arith.constant 0 : i32
    %c0_i32_2 = arith.constant 0 : i32
    return %c0_i32, %c0_i32_0, %c0_i32_1 : i32, i32, i32
  }
  func.func @transform_2(%arg0: i32, %arg1: i32) -> (i32, i32) {
    %c0_i32 = arith.constant 0 : i32
    %c0_i32_0 = arith.constant 0 : i32
    %c0_i32_1 = arith.constant 0 : i32
    return %c0_i32, %c0_i32_0 : i32, i32
  }
  func.func @transform_3(%arg0: i32, %arg1: i32) -> (i32, i32, i32) {
    %c0_i32 = arith.constant 0 : i32
    %c0_i32_0 = arith.constant 0 : i32
    %c0_i32_1 = arith.constant 0 : i32
    %c0_i32_2 = arith.constant 0 : i32
    return %c0_i32, %c0_i32_0, %c0_i32_1 : i32, i32, i32
  }
  func.func @transform_4(%arg0: i32, %arg1: i32) -> (i32, i32, i32, i32, i32) {
    %c0_i32 = arith.constant 0 : i32
    %c0_i32_0 = arith.constant 0 : i32
    %c0_i32_1 = arith.constant 0 : i32
    %c0_i32_2 = arith.constant 0 : i32
    return %arg0, %c0_i32, %arg1, %c0_i32_0, %c0_i32_1 : i32, i32, i32, i32, i32
  }
}

</mosaic_0001>

<bundles_post_ra>
// kernel: simple_conv_segmentation_head_pallas.1
= control target key start
LH: loop header
LB: loop body
LE: loop exit
PB: predicated region body
PF: predicated region fallthrough
CT: control target
= control target key end

     0   :  { %9 = vsyncpa [#allocation4], 0  ;;  %s6947_s0 = inlined_call_operand.vmem [shape: f32[2,4,16,16], index: 0, kind: input, shape index: {}]   ;;  %s6948_s1 = inlined_call_operand.vmem [shape: f32[4,4,4], index: 1, kind: input, shape index: {}]   ;;  %s6949_s2 = inlined_call_operand.vmem [shape: f32[8,4], index: 2, kind: input, shape index: {}]   ;;  %s6950_s3 = inlined_call_operand.vmem [shape: f32[4,16,64], index: 3, kind: input, shape index: {}]   ;;  %s6951_s4 = inlined_call_operand.hbm [shape: f32[2,2,16,4,64], index: 4, kind: output, shape index: {}]  }
   0x1   :  { %11 = vsyncpa [#allocation4 + $0x1], 0  ;;  %s5931_s15 = smov 0   ;;  %s5933_s16 = smov 0  }
   0x2   :  { %s5935_s17 = smov 0   ;;  %s5937_s18 = smov 0  }
   0x3   :  { %s5939_s19 = smov 0   ;;  %s5941_s20 = smov 0  }
   0x4   :  { %s5943_s21 = smov 0   ;;  %s5945_s22 = smov 0  }
   0x5 LB: > { %s5382_s23 = sadd.s32 4294967295, %s5897_s22   ;;  %s5383_s24 = sadd.s32 4294967294, %s5897_s22   ;;  %s5897_s22 = sphi %s5945_s22, %s17_s22   ;;  %s5893_s21 = sphi %s5943_s21, %s6961_s21   ;;  %s5889_s20 = sphi %s5941_s20, %s6960_s20   ;;  %s5885_s19 = sphi %s5939_s19, %s6959_s19   ;;  %s5881_s18 = sphi %s5937_s18, %s6958_s18   ;;  %s5877_s17 = sphi %s5935_s17, %s6957_s17   ;;  %s5873_s16 = sphi %s5933_s16, %s6956_s16   ;;  %s5869_s15 = sphi %s5931_s15, %s6955_s15  }
   0x6   : > { %s26_s25 = sadd.s32 1, %s5889_s20  ;;  %s29_s26 = sadd.s32 1, %s5893_s21 }
   0x7   : > { %p27_p0 = scmp.ge.s32.totalorder %s26_s25, 2  ;;  %p45_p1 = scmp.ne.s32.totalorder %s5877_s17, %s5873_s16 }
   0x8   : > { %p46_p2 = scmp.eq.s32.totalorder %s5897_s22, 0  ;;  %p140_p5 = scmp.eq.s32.totalorder %s5382_s23, 3 }
   0x9   : > { %s6963_s25 = smov (%p27_p0, %s26_s25), 0  ;;  %s6965_s26 = smov (!%p27_p0, %s29_s26), %s5893_s21 }
   0xa   : > { %s34_s27 = ssub.s32 %s5889_s20, %s6963_s25  ;;  %p5983_p3 = por %p46_p2, %p45_p1 }
   0xb   : > { %p31_p4 = scmp.ge.s32.totalorder %s6965_s26, 2  ;;  %p145_p6 = scmp.ne.s32.totalorder %s5873_s16, %s5869_s15 }
   0xc   : > { %p146_p7 = scmp.eq.s32.totalorder %s5383_s24, 3  ;;  %p5991_p8 = por %p140_p5, %p45_p1 }
   0xd   : > { %s6967_s26 = smov (%p31_p4, %s6965_s26), 0  ;;  %s38_s7 = sadd.s32 1, %s5877_s17 }
   0xe   : > { %p5995_p9 = por %p146_p7, %p145_p6  ;;  %s33_s5 = ssub.s32 %s5893_s21, %s6967_s26 }
   0xf   : > { %s35_s6 = sor.u32 %s34_s27, %s33_s5  ;;  %p5385_p11 = scmp.ge.s32.totalorder %s5897_s22, 4 }
  0x10   : > { %p36_p10 = scmp.eq.s32.totalorder %s35_s6, 0 }
  0x11   : > { %171 = sbr.rel (%p5385_p11) target bundleno = 32 (0x20), region = 28 }
  0x12   : > { %s6003_s8 = scalar_select %p36_p10, %s5877_s17, %s38_s7  }
  0x16   : > { %174 = sbr.rel (!%p5983_p3) target bundleno = 32 (0x20), region = 32  ;;  %s176_s9 = sand.u32 (%p5983_p3), 1, %s5877_s17  }
  0x17   : > { %s5387_s10 = sshll.u32 (%p5983_p3), %s5893_s21, 3  ;;  %s5386_s11 = sshll.u32 (%p5983_p3), %s176_s9, 5 }
  0x18   : > { %s180_s12 = sadd.s32 (%p5983_p3), %s5889_s20, %s5387_s10  ;;  %s178_s27 = scalar_lea.vmem (%p5983_p3), [#allocation2], %s5386_s11 }
  0x19   : > { %s5388_s13 = sshll.u32 (%p5983_p3), %s180_s12, 3 }
  0x1a   : > { %s182_s24 = scalar_lea.vmem (%p5983_p3), %s6947_s0, %s5388_s13 }
  0x1b   : > { %v217_v0 = vld [vmem:[%s182_s24] sm:$0xff]  ;;  %v219_v1 = vld [vmem:[%s182_s24 + $0x10] sm:$0xff] }
  0x1c   : > { %v221_v2 = vld [vmem:[%s182_s24 + $0x20] sm:$0xff]  ;;  %218 = vst [vmem:[%s178_s27] sm:$0xff] %v217_v0  ;;  %v223_v3 = vld [vmem:[%s182_s24 + $0x30] sm:$0xff] }
  0x1d   : > { %220 = vst [vmem:[%s178_s27 + $0x8] sm:$0xff] %v219_v1 }
  0x1e   : > { %222 = vst [vmem:[%s178_s27 + $0x10] sm:$0xff] %v221_v2 }
  0x1f   : > { %224 = vst [vmem:[%s178_s27 + $0x18] sm:$0xff] %v223_v3 }
  0x20 PF: > { %p5389_p12 = scmp.ge.s32.totalorder %s5897_s22, 1  ;;  %p229_p13 = scmp.lt.s32.totalorder %s5897_s22, 5 }
  0x22   : > { %p230_p0 = pnand %p5389_p12, %p229_p13 }
  0x23   : > { %s6017_s28 = sand.u32 (!%p230_p0), 1, %s5873_s16  }
  0x24   : > { %233 = sbr.rel (%p230_p0) target bundleno = 2585 (0xa19), region = 70  ;;  %s5390_s5 = sshll.u32 (!%p230_p0), %s6017_s28, 5 }
  0x25   : > { %s6020_s6 = scalar_lea.vmem (!%p230_p0), [#allocation2], %s5390_s5  ;;  %s5391_s9 = sshll.u32 (!%p230_p0), %s6017_s28, 6 }
  0x26   : > { %s6203_s10 = scalar_lea.vmem (!%p230_p0), [#allocation3], %s5391_s9  ;;  %s5258_s27 = scalar_lea.sflag (!%p230_p0), [#allocation4], %s6017_s28 }
  0x29   : > { %vm273_vm0 = vcmask 1041409   ;;  %v263_v4 = vld [vmem:[%s6020_s6] sm:$0x1]  ;;  %v264_v5 = vld [vmem:[%s6020_s6 + $0x8] sm:$0x1]  ;;  %vm276_vm1 = vcmask 1042434  }
  0x2a   : > { %v265_v6 = vld [vmem:[%s6020_s6 + $0x10] sm:$0x1]  ;;  %v266_v7 = vld [vmem:[%s6020_s6 + $0x18] sm:$0x1]  ;;  %v272_v8 = vrot.slane %v264_v5, 7  ;;  %vm279_vm2 = vcmask 1043459  }
  0x2b   : > { %v275_v9 = vrot.slane %v265_v6, 6  ;;  %v278_v10 = vrot.slane %v266_v7, 5  ;;  %vm285_vm3 = vcmask 1043456   ;;  %vm281_vm4 = vcmask 31744   ;;  %v5396_v13 = vld [vmem:[%s6948_s1 + $0x4] sm:$0xf] }
  0x2c   : > { %v274_v11 = vsel %vm273_vm0, %v272_v8, %v263_v4  ;;  %v267_v14 = vld [vmem:[%s6948_s1] sm:$0xf]  ;;  %v5406_v16 = vld [vmem:[%s6948_s1 + $0xc] sm:$0xf]  ;;  %v5401_v17 = vld [vmem:[%s6948_s1 + $0x8] sm:$0xf] }
  0x2d   : > { %v277_v12 = vsel %vm276_vm1, %v275_v9, %v274_v11  ;;  %v6052_v18 = vld [vmem:[%s6950_s3 + $0x28] sm:$0xff]  ;;  %v6058_v21 = vld [vmem:[%s6949_s2] sm:$0xff]  ;;  %v6080_v29 = vld [vmem:[%s6950_s3 + $0x38] sm:$0xff]  ;;  %vm489_vm5 = vcmask 130048   ;;  %vm891_vm6 = vcmask 1040384   ;;  %vm894_vm7 = vcmask 1041408  }
  0x2e   : > { %v280_v15 = vsel %vm279_vm2, %v278_v10, %v277_v12  ;;  %v6075_v28 = vld [vmem:[%s6950_s3 + $0x20] sm:$0xff]  ;;  %v6087_v30 = vld [vmem:[%s6950_s3 + $0x18] sm:$0xff]  ;;  %v6092_v31 = vld [vmem:[%s6950_s3 + $0x8] sm:$0xff]  ;;  %vm897_vm8 = vcmask 1042432   ;;  %vm900_vm9 = vcmask 519168  }
  0x2f   : > { %5397 = vmatpush.msk.msra.mxu2 %vm285_vm3, %v280_v15  ;;  %5392 = vmatpush.msk.msra.mxu0 %vm285_vm3, %v280_v15  ;;  %v6097_v32 = vld [vmem:[%s6950_s3 + $0x30] sm:$0xff]  ;;  %v6111_v34 = vld [vmem:[%s6950_s3] sm:$0xff]  ;;  %v904_v38 = vld [vmem:[%s6020_s6 + $0x9] sm:$0x1] }
  0x30   : > { %5398 = vmatmul.msk.f32.vlgmr.msra.gmra.mxu2 %vm281_vm4, %v5396_v13  ;;  %5393 = vmatmul.msk.f32.vlgmr.msra.gmra.mxu0 %vm281_vm4, %v267_v14  ;;  %v6106_v33 = vld [vmem:[%s6950_s3 + $0x10] sm:$0xff]  ;;  %v912_v41 = vrot.slane %v904_v38, 7  ;;  %v903_v42 = vld [vmem:[%s6020_s6 + $0x1] sm:$0x1]  ;;  %v906_v45 = vld [vmem:[%s6020_s6 + $0x19] sm:$0x1] }
  0x31   : > { %5407 = vmatpush.msk.msrb.mxu2 %vm285_vm3, %v280_v15  ;;  %5402 = vmatpush.msk.msrb.mxu0 %vm285_vm3, %v280_v15  ;;  %v905_v40 = vld [vmem:[%s6020_s6 + $0x11] sm:$0x1]  ;;  %v916_v50 = vrot.slane %v906_v45, 5  ;;  %v907_v59 = vld [vmem:[%s6948_s1] sm:$0xf] }
  0x32   : > { %v914_v46 = vrot.slane %v905_v40, 6  ;;  %v913_v48 = vsel %vm273_vm0, %v912_v41, %v903_v42  ;;  %v5442_v62 = vld [vmem:[%s6948_s1 + $0x8] sm:$0xf]  ;;  %v5437_v63 = vld [vmem:[%s6948_s1 + $0x4] sm:$0xf] }
  0x33   : > { %554 = vmatpush.msra.mxu2 %v6052_v18  ;;  %506 = vmatpush.msra.mxu0 %v6087_v30  ;;  %v5447_v0 = vld [vmem:[%s6948_s1 + $0xc] sm:$0xf] }
  0x34   : > { %v915_v51 = vsel %vm276_vm1, %v914_v46, %v913_v48 }
  0x35   : > { %555 = vmatpush.msra.mxu2 %v6075_v28  ;;  %507 = vmatpush.msra.mxu0 %v6106_v33  ;;  %v917_v53 = vsel %vm279_vm2, %v916_v50, %v915_v51 }
  0x38   : > { %5408 = vmatmul.msk.f32.vlgmr.msrb.gmra.mxu2 %vm281_vm4, %v5406_v16  ;;  %5403 = vmatmul.msk.f32.vlgmr.msrb.gmra.mxu0 %vm281_vm4, %v5401_v17 }
  0x39   : > { %651 = vmatpush.msrb.mxu2 %v6052_v18  ;;  %605 = vmatpush.msrb.mxu0 %v6087_v30 }
  0x3b   : > { %652 = vmatpush.msrb.mxu2 %v6075_v28  ;;  %606 = vmatpush.msrb.mxu0 %v6106_v33 }
  0xad   : > { %v305_v19 = vpop.f32.mrf.mxu0 }
  0xae   : > { %v308_v20 = vmax.f32 %v305_v19, 0.0 }
  0xb0   : > { %5394 = vmatpush.msk.msra.mxu1 %vm285_vm3, %v308_v20 }
  0xb1   : > { %5395 = vmatmul.msk.f32.vlgmr.msra.gmra.mxu1 %vm281_vm4, %v6058_v21 }
  0xb3   : > { %v357_v22 = vpop.f32.mrf.mxu2 }
  0xb4   : > { %v360_v23 = vmax.f32 %v357_v22, 0.0 }
  0xb5   : > { %v406_v24 = vpop.f32.mrf.mxu0 }
  0xb6   : > { %5399 = vmatpush.msk.msra.mxu3 %vm285_vm3, %v360_v23  ;;  %v409_v25 = vmax.f32 %v406_v24, 0.0 }
  0xb7   : > { %5400 = vmatmul.msk.f32.vlgmr.msra.gmra.mxu3 %vm281_vm4, %v6058_v21 }
  0xb8   : > { %5404 = vmatpush.msk.msrb.mxu1 %vm285_vm3, %v409_v25 }
  0xb9   : > { %5405 = vmatmul.msk.f32.vlgmr.msrb.gmra.mxu1 %vm281_vm4, %v6058_v21 }
  0xba   : > { %528 = vmatpush.msra.mxu1 %v6092_v31 }
  0xbb   : > { %v455_v26 = vpop.f32.mrf.mxu2 }
  0xbc   : > { %v458_v27 = vmax.f32 %v455_v26, 0.0  ;;  %529 = vmatpush.msra.mxu1 %v6111_v34 }
  0xbe   : > { %5409 = vmatpush.msk.msrb.mxu3 %vm285_vm3, %v458_v27  ;;  %628 = vmatpush.msrb.mxu1 %v6092_v31 }
  0xbf   : > { %5410 = vmatmul.msk.f32.vlgmr.msrb.gmra.mxu3 %vm281_vm4, %v6058_v21 }
  0xc0   : > { %581 = vmatpush.msra.mxu3 %v6080_v29  ;;  %629 = vmatpush.msrb.mxu1 %v6111_v34 }
  0xc2   : > { %582 = vmatpush.msra.mxu3 %v6097_v32 }
  0xc4   : > { %675 = vmatpush.msrb.mxu3 %v6080_v29 }
  0xc6   : > { %676 = vmatpush.msrb.mxu3 %v6097_v32 }
 0x12e   : > { %v332_v35 = vpop.f32.mrf.mxu1 }
 0x12f   : > { %v488_v36 = vrot.slane %v332_v35, 2  ;;  %5414 = vmatmul.msk.f32.vlgmr.msra.gmra.mxu1 %vm489_vm5, %v332_v35  ;;  %v611_v37 = vrot.slane %v332_v35, 4  ;;  %v588_v39 = vrot.slane %v332_v35, 6 }
 0x130   : > { %722 = vmatpush.msra.mxu1 %v6092_v31 }
 0x131   : > { %5413 = vmatmul.msk.f32.vlgmr.msra.gmra.mxu0 %vm489_vm5, %v488_v36 }
 0x132   : > { %700 = vmatpush.msra.mxu0 %v6087_v30  ;;  %723 = vmatpush.msra.mxu1 %v6111_v34 }
 0x134   : > { %701 = vmatpush.msra.mxu0 %v6106_v33 }
 0x136   : > { %v430_v44 = vpop.f32.mrf.mxu1 }
 0x137   : > { %5422 = vmatmul.msk.f32.vlgmr.msrb.gmra.mxu1 %vm489_vm5, %v611_v37  ;;  %v683_v49 = vrot.slane %v430_v44, 2  ;;  %v799_v55 = vrot.slane %v430_v44, 4  ;;  %v776_v56 = vrot.slane %v430_v44, 6 }
 0x138   : > { %816 = vmatpush.msrb.mxu1 %v6092_v31 }
 0x139   : > { %5421 = vmatmul.msk.f32.vlgmr.msrb.gmra.mxu0 %vm489_vm5, %v588_v39 }
 0x13a   : > { %v381_v43 = vpop.f32.mrf.mxu3  ;;  %793 = vmatpush.msrb.mxu0 %v6087_v30  ;;  %817 = vmatpush.msrb.mxu1 %v6111_v34 }
 0x13b   : > { %v564_v47 = vrot.slane %v381_v43, 2  ;;  %5417 = vmatmul.msk.f32.vlgmr.msra.gmra.mxu2 %vm489_vm5, %v381_v43  ;;  %v634_v52 = vrot.slane %v381_v43, 4  ;;  %v658_v54 = vrot.slane %v381_v43, 6 }
 0x13c   : > { %745 = vmatpush.msra.mxu2 %v6052_v18  ;;  %794 = vmatpush.msrb.mxu0 %v6106_v33 }
 0x13d   : > { %5420 = vmatmul.msk.f32.vlgmr.msra.gmra.mxu3 %vm489_vm5, %v564_v47 }
 0x13e   : > { %746 = vmatpush.msra.mxu2 %v6075_v28  ;;  %769 = vmatpush.msra.mxu3 %v6080_v29 }
 0x13f   : > { %5426 = vmatmul.msk.f32.vlgmr.msra.gmra.mxu1 %vm489_vm5, %v430_v44 }
 0x140   : > { %770 = vmatpush.msra.mxu3 %v6097_v32 }
 0x141   : > { %5425 = vmatmul.msk.f32.vlgmr.msra.gmra.mxu0 %vm489_vm5, %v683_v49 }
 0x142   : > { %5433 = vmatpush.msk.msra.mxu0 %vm285_vm3, %v917_v53  ;;  %v479_v57 = vpop.f32.mrf.mxu3 }
 0x143   : > { %5423 = vmatmul.msk.f32.vlgmr.msrb.gmra.mxu2 %vm489_vm5, %v634_v52  ;;  %v752_v58 = vrot.slane %v479_v57, 2  ;;  %v822_v60 = vrot.slane %v479_v57, 4  ;;  %v846_v61 = vrot.slane %v479_v57, 6 }
 0x144   : > { %839 = vmatpush.msrb.mxu2 %v6052_v18 }
 0x145   : > { %5424 = vmatmul.msk.f32.vlgmr.msrb.gmra.mxu3 %vm489_vm5, %v658_v54 }
 0x146   : > { %840 = vmatpush.msrb.mxu2 %v6075_v28  ;;  %863 = vmatpush.msrb.mxu3 %v6080_v29 }
 0x147   : > { %5430 = vmatmul.msk.f32.vlgmr.msrb.gmra.mxu1 %vm489_vm5, %v799_v55 }
 0x148   : > { %864 = vmatpush.msrb.mxu3 %v6097_v32 }
 0x149   : > { %5429 = vmatmul.msk.f32.vlgmr.msrb.gmra.mxu0 %vm489_vm5, %v776_v56 }
 0x14a   : > { %5443 = vmatpush.msk.msrb.mxu0 %vm285_vm3, %v917_v53 }
 0x14b   : > { %5427 = vmatmul.msk.f32.vlgmr.msra.gmra.mxu2 %vm489_vm5, %v479_v57 }
 0x14c   : > { %5438 = vmatpush.msk.msra.mxu2 %vm285_vm3, %v917_v53 }
 0x14d   : > { %5428 = vmatmul.msk.f32.vlgmr.msra.gmra.mxu3 %vm489_vm5, %v752_v58 }
 0x151   : > { %5434 = vmatmul.msk.f32.vlgmr.msra.gmra.mxu0 %vm281_vm4, %v907_v59 }
 0x152   : > { %1133 = vmatpush.msra.mxu0 %v6087_v30 }
 0x153   : > { %5431 = vmatmul.msk.f32.vlgmr.msrb.gmra.mxu2 %vm489_vm5, %v822_v60 }
 0x154   : > { %5448 = vmatpush.msk.msrb.mxu2 %vm285_vm3, %v917_v53  ;;  %1134 = vmatpush.msra.mxu0 %v6106_v33 }
 0x155   : > { %5432 = vmatmul.msk.f32.vlgmr.msrb.gmra.mxu3 %vm489_vm5, %v846_v61 }
 0x159   : > { %5444 = vmatmul.msk.f32.vlgmr.msrb.gmra.mxu0 %vm281_vm4, %v5442_v62 }
 0x15a   : > { %1230 = vmatpush.msrb.mxu0 %v6087_v30 }
 0x15b   : > { %5439 = vmatmul.msk.f32.vlgmr.msra.gmra.mxu2 %vm281_vm4, %v5437_v63 }
 0x15c   : > { %1180 = vmatpush.msra.mxu2 %v6052_v18  ;;  %1231 = vmatpush.msrb.mxu0 %v6106_v33 }
 0x15e   : > { %1181 = vmatpush.msra.mxu2 %v6075_v28 }
 0x163   : > { %5449 = vmatmul.msk.f32.vlgmr.msrb.gmra.mxu2 %vm281_vm4, %v5447_v0 }
 0x164   : > { %1276 = vmatpush.msrb.mxu2 %v6052_v18 }
 0x166   : > { %1277 = vmatpush.msrb.mxu2 %v6075_v28 }
 0x1ac   : > { %v531_v2 = vpop.f32.mrf.mxu1 }
 0x1ae   : > { %v509_v1 = vpop.f32.mrf.mxu0 }
 0x1af   : > { %v532_v17 = vadd.f32 %v531_v2, %v509_v1 }
 0x1b4   : > { %v631_v4 = vpop.f32.mrf.mxu1 }
 0x1b6   : > { %v608_v3 = vpop.f32.mrf.mxu0 }
 0x1b7   : > { %v632_v12 = vadd.f32 %v631_v4, %v608_v3  ;;  %v1526_v4 = vld [vmem:[%s6020_s6 + $0xa] sm:$0x1] }
 0x1bc   : > { %v725_v8 = vpop.f32.mrf.mxu1 }
 0x1be   : > { %v557_v5 = vpop.f32.mrf.mxu2  ;;  %v703_v6 = vpop.f32.mrf.mxu0 }
 0x1bf   : > { %v726_v13 = vadd.f32 %v725_v8, %v703_v6  ;;  %v560_v26 = vadd.f32 %v557_v5, %v532_v17  ;;  %v1525_v5 = vld [vmem:[%s6020_s6 + $0x2] sm:$0x1]  ;;  %v1527_v6 = vld [vmem:[%s6020_s6 + $0x12] sm:$0x1]  ;;  %v1534_v8 = vrot.slane %v1526_v4, 7 }
 0x1c0   : > { %v584_v7 = vpop.f32.mrf.mxu3 }
 0x1c1   : > { %v587_v39 = vadd.f32 %v584_v7, %v560_v26  ;;  %v1528_v7 = vld [vmem:[%s6020_s6 + $0x1a] sm:$0x1] }
 0x1c3   : > { %v871_v48 = vrot.slane %v587_v39, 1 }
 0x1c4   : > { %v819_v23 = vpop.f32.mrf.mxu1 }
 0x1c6   : > { %v654_v9 = vpop.f32.mrf.mxu2  ;;  %v796_v10 = vpop.f32.mrf.mxu0 }
 0x1c7   : > { %v657_v14 = vadd.f32 %v654_v9, %v632_v12  ;;  %v820_v27 = vadd.f32 %v819_v23, %v796_v10  ;;  %v1536_v9 = vrot.slane %v1527_v6, 6  ;;  %v1538_v10 = vrot.slane %v1528_v7, 5 }
 0x1c8   : > { %v678_v11 = vpop.f32.mrf.mxu3 }
 0x1c9   : > { %v681_v24 = vadd.f32 %v678_v11, %v657_v14  ;;  %v1535_v11 = vsel %vm273_vm0, %v1534_v8, %v1525_v5 }
 0x1cb   : > { %v874_v35 = vrot.slane %v681_v24, 1  ;;  %v879_v40 = vperm.slane %v681_v24, 0 }
 0x1cd   : > { %v880_v45 = vperm.slane %v874_v35, 0  ;;  %v892_v49 = vsel %vm891_vm6, %v587_v39, %v879_v40  ;;  %v5480_v35 = vld [vmem:[%s6948_s1 + $0x4] sm:$0xf] }
 0x1ce   : > { %v748_v15 = vpop.f32.mrf.mxu2  ;;  %v940_v16 = vpop.f32.mrf.mxu0 }
 0x1cf   : > { %v751_v19 = vadd.f32 %v748_v15, %v726_v13  ;;  %v943_v20 = vmax.f32 %v940_v16, 0.0  ;;  %v893_v53 = vsel %vm891_vm6, %v871_v48, %v880_v45  ;;  %v1537_v13 = vsel %vm276_vm1, %v1536_v9, %v1535_v11 }
 0x1d0   : > { %v772_v22 = vpop.f32.mrf.mxu3  ;;  %v1539_v15 = vsel %vm279_vm2, %v1538_v10, %v1537_v13 }
 0x1d1   : > { %5435 = vmatpush.msk.msra.mxu1 %vm285_vm3, %v943_v20  ;;  %v775_v25 = vadd.f32 %v772_v22, %v751_v19  ;;  %v1529_v22 = vld [vmem:[%s6948_s1] sm:$0xf] }
 0x1d2   : > { %5436 = vmatmul.msk.f32.vlgmr.msra.gmra.mxu1 %vm281_vm4, %v6058_v21 }
 0x1d3   : > { %v876_v36 = vrot.slane %v775_v25, 1  ;;  %v883_v43 = vperm.slane %v775_v25, 0  ;;  %v5485_v25 = vld [vmem:[%s6948_s1 + $0x8] sm:$0xf] }
 0x1d5   : > { %v884_v47 = vperm.slane %v876_v36, 0  ;;  %v895_v52 = vsel %vm894_vm7, %v892_v49, %v883_v43  ;;  %v5490_v36 = vld [vmem:[%s6948_s1 + $0xc] sm:$0xf] }
 0x1d6   : > { %v842_v37 = vpop.f32.mrf.mxu2  ;;  %v1036_v38 = vpop.f32.mrf.mxu0 }
 0x1d7   : > { %v845_v41 = vadd.f32 %v842_v37, %v820_v27  ;;  %v1039_v42 = vmax.f32 %v1036_v38, 0.0  ;;  %v896_v56 = vsel %vm894_vm7, %v893_v53, %v884_v47 }
 0x1d8   : > { %v866_v44 = vpop.f32.mrf.mxu3 }
 0x1d9   : > { %v869_v46 = vadd.f32 %v866_v44, %v845_v41  ;;  %5445 = vmatpush.msk.msrb.mxu1 %vm285_vm3, %v1039_v42 }
 0x1da   : > { %5446 = vmatmul.msk.f32.vlgmr.msrb.gmra.mxu1 %vm281_vm4, %v6058_v21 }
 0x1db   : > { %v878_v50 = vrot.slane %v869_v46, 1  ;;  %v887_v51 = vperm.slane %v869_v46, 0  ;;  %1155 = vmatpush.msra.mxu1 %v6092_v31 }
 0x1dd   : > { %v888_v54 = vperm.slane %v878_v50, 0  ;;  %v898_v55 = vsel %vm897_vm8, %v895_v52, %v887_v51  ;;  %1156 = vmatpush.msra.mxu1 %v6111_v34 }
 0x1de   : > { %901 = vst.msk [vmem:[%s6203_s10] sm:$0xf] %vm900_vm9, %v898_v55  ;;  %v988_v57 = vpop.f32.mrf.mxu2 }
 0x1df   : > { %1253 = vmatpush.msrb.mxu1 %v6092_v31  ;;  %v899_v58 = vsel %vm897_vm8, %v896_v56, %v888_v54  ;;  %v991_v59 = vmax.f32 %v988_v57, 0.0 }
 0x1e0   : > { %902 = vst.msk [vmem:[%s6203_s10 + $0x20] sm:$0xf] %vm900_vm9, %v899_v58 }
 0x1e1   : > { %1254 = vmatpush.msrb.mxu1 %v6111_v34  ;;  %5440 = vmatpush.msk.msra.mxu3 %vm285_vm3, %v991_v59 }
 0x1e2   : > { %5441 = vmatmul.msk.f32.vlgmr.msra.gmra.mxu3 %vm281_vm4, %v6058_v21 }
 0x1e6   : > { %v1084_v60 = vpop.f32.mrf.mxu2 }
 0x1e7   : > { %v1087_v61 = vmax.f32 %v1084_v60, 0.0 }
 0x1e9   : > { %5450 = vmatpush.msk.msrb.mxu3 %vm285_vm3, %v1087_v61 }
 0x1ea   : > { %5451 = vmatmul.msk.f32.vlgmr.msrb.gmra.mxu3 %vm281_vm4, %v6058_v21 }
 0x1eb   : > { %1206 = vmatpush.msra.mxu3 %v6080_v29 }
 0x1ed   : > { %1207 = vmatpush.msra.mxu3 %v6097_v32 }
 0x1ef   : > { %1300 = vmatpush.msrb.mxu3 %v6080_v29 }
 0x1f1   : > { %1301 = vmatpush.msrb.mxu3 %v6097_v32 }
 0x24f   : > { %v964_v62 = vpop.f32.mrf.mxu1 }
 0x250   : > { %v1116_v63 = vrot.slane %v964_v62, 2  ;;  %5455 = vmatmul.msk.f32.vlgmr.msra.gmra.mxu1 %vm489_vm5, %v964_v62  ;;  %v1236_v0 = vrot.slane %v964_v62, 4  ;;  %v1213_v1 = vrot.slane %v964_v62, 6 }
 0x251   : > { %1347 = vmatpush.msra.mxu1 %v6092_v31 }
 0x252   : > { %5454 = vmatmul.msk.f32.vlgmr.msra.gmra.mxu0 %vm489_vm5, %v1116_v63 }
 0x253   : > { %1325 = vmatpush.msra.mxu0 %v6087_v30  ;;  %1348 = vmatpush.msra.mxu1 %v6111_v34 }
 0x255   : > { %1326 = vmatpush.msra.mxu0 %v6106_v33 }
 0x257   : > { %v1060_v2 = vpop.f32.mrf.mxu1 }
 0x258   : > { %5463 = vmatmul.msk.f32.vlgmr.msrb.gmra.mxu1 %vm489_vm5, %v1236_v0  ;;  %v1308_v3 = vrot.slane %v1060_v2, 2  ;;  %v1424_v12 = vrot.slane %v1060_v2, 4  ;;  %v1401_v17 = vrot.slane %v1060_v2, 6 }
 0x259   : > { %1441 = vmatpush.msrb.mxu1 %v6092_v31 }
 0x25a   : > { %5462 = vmatmul.msk.f32.vlgmr.msrb.gmra.mxu0 %vm489_vm5, %v1213_v1 }
 0x25b   : > { %1418 = vmatpush.msrb.mxu0 %v6087_v30  ;;  %1442 = vmatpush.msrb.mxu1 %v6111_v34 }
 0x25d   : > { %1419 = vmatpush.msrb.mxu0 %v6106_v33 }
 0x260   : > { %5467 = vmatmul.msk.f32.vlgmr.msra.gmra.mxu1 %vm489_vm5, %v1060_v2 }
 0x262   : > { %5466 = vmatmul.msk.f32.vlgmr.msra.gmra.mxu0 %vm489_vm5, %v1308_v3 }
 0x263   : > { %5476 = vmatpush.msk.msra.mxu0 %vm285_vm3, %v1539_v15 }
 0x265   : > { %v1012_v14 = vpop.f32.mrf.mxu3 }
 0x266   : > { %v1189_v16 = vrot.slane %v1012_v14, 2  ;;  %5458 = vmatmul.msk.f32.vlgmr.msra.gmra.mxu2 %vm489_vm5, %v1012_v14  ;;  %v1259_v19 = vrot.slane %v1012_v14, 4  ;;  %v1283_v20 = vrot.slane %v1012_v14, 6 }
 0x267   : > { %1370 = vmatpush.msra.mxu2 %v6052_v18 }
 0x268   : > { %5461 = vmatmul.msk.f32.vlgmr.msra.gmra.mxu3 %vm489_vm5, %v1189_v16  ;;  %5471 = vmatmul.msk.f32.vlgmr.msrb.gmra.mxu1 %vm489_vm5, %v1424_v12 }
 0x269   : > { %1371 = vmatpush.msra.mxu2 %v6075_v28  ;;  %1394 = vmatpush.msra.mxu3 %v6080_v29 }
 0x26a   : > { %5470 = vmatmul.msk.f32.vlgmr.msrb.gmra.mxu0 %vm489_vm5, %v1401_v17 }
 0x26b   : > { %1395 = vmatpush.msra.mxu3 %v6097_v32  ;;  %5486 = vmatpush.msk.msrb.mxu0 %vm285_vm3, %v1539_v15 }
 0x26d   : > { %v1108_v23 = vpop.f32.mrf.mxu3 }
 0x26e   : > { %5464 = vmatmul.msk.f32.vlgmr.msrb.gmra.mxu2 %vm489_vm5, %v1259_v19  ;;  %v1377_v24 = vrot.slane %v1108_v23, 2  ;;  %v1447_v26 = vrot.slane %v1108_v23, 4  ;;  %v1471_v27 = vrot.slane %v1108_v23, 6 }
 0x26f   : > { %1464 = vmatpush.msrb.mxu2 %v6052_v18 }
 0x270   : > { %5465 = vmatmul.msk.f32.vlgmr.msrb.gmra.mxu3 %vm489_vm5, %v1283_v20 }
 0x271   : > { %1465 = vmatpush.msrb.mxu2 %v6075_v28  ;;  %1488 = vmatpush.msrb.mxu3 %v6080_v29 }
 0x272   : > { %5477 = vmatmul.msk.f32.vlgmr.msra.gmra.mxu0 %vm281_vm4, %v1529_v22 }
 0x273   : > { %1489 = vmatpush.msrb.mxu3 %v6097_v32  ;;  %1755 = vmatpush.msra.mxu0 %v6087_v30 }
 0x275   : > { %1756 = vmatpush.msra.mxu0 %v6106_v33 }
 0x276   : > { %5468 = vmatmul.msk.f32.vlgmr.msra.gmra.mxu2 %vm489_vm5, %v1108_v23 }
 0x277   : > { %5481 = vmatpush.msk.msra.mxu2 %vm285_vm3, %v1539_v15 }
 0x278   : > { %5469 = vmatmul.msk.f32.vlgmr.msra.gmra.mxu3 %vm489_vm5, %v1377_v24 }
 0x27a   : > { %5487 = vmatmul.msk.f32.vlgmr.msrb.gmra.mxu0 %vm281_vm4, %v5485_v25 }
 0x27b   : > { %1852 = vmatpush.msrb.mxu0 %v6087_v30 }
 0x27d   : > { %1853 = vmatpush.msrb.mxu0 %v6106_v33 }
 0x27e   : > { %5472 = vmatmul.msk.f32.vlgmr.msrb.gmra.mxu2 %vm489_vm5, %v1447_v26 }
 0x27f   : > { %5491 = vmatpush.msk.msrb.mxu2 %vm285_vm3, %v1539_v15 }
 0x280   : > { %5473 = vmatmul.msk.f32.vlgmr.msrb.gmra.mxu3 %vm489_vm5, %v1471_v27 }
 0x286   : > { %5482 = vmatmul.msk.f32.vlgmr.msra.gmra.mxu2 %vm281_vm4, %v5480_v35 }
 0x287   : > { %1802 = vmatpush.msra.mxu2 %v6052_v18 }
 0x289   : > { %1803 = vmatpush.msra.mxu2 %v6075_v28 }
 0x28e   : > { %5492 = vmatmul.msk.f32.vlgmr.msrb.gmra.mxu2 %vm281_vm4, %v5490_v36 }
 0x28f   : > { %1898 = vmatpush.msrb.mxu2 %v6052_v18 }
 0x291   : > { %1899 = vmatpush.msrb.mxu2 %v6075_v28 }
 0x2cd   : > { %v1158_v39 = vpop.f32.mrf.mxu1 }
 0x2cf   : > { %v1136_v37 = vpop.f32.mrf.mxu0 }
 0x2d0   : > { %v1159_v56 = vadd.f32 %v1158_v39, %v1136_v37 }
 0x2d5   : > { %v1256_v41 = vpop.f32.mrf.mxu1 }
 0x2d7   : > { %v1233_v38 = vpop.f32.mrf.mxu0 }
 0x2d8   : > { %v1257_v50 = vadd.f32 %v1256_v41, %v1233_v38 }
 0x2dd   : > { %v1350_v48 = vpop.f32.mrf.mxu1 }
 0x2df   : > { %v1328_v40 = vpop.f32.mrf.mxu0 }
 0x2e0   : > { %v1351_v51 = vadd.f32 %v1350_v48, %v1328_v40 }
 0x2e5   : > { %v1444_v59 = vpop.f32.mrf.mxu1 }
 0x2e7   : > { %v1421_v42 = vpop.f32.mrf.mxu0 }
 0x2e8   : > { %v1445_v63 = vadd.f32 %v1444_v59, %v1421_v42  ;;  %v2148_v42 = vld [vmem:[%s6020_s6 + $0xb] sm:$0x1] }
 0x2e9   : > { %v1183_v43 = vpop.f32.mrf.mxu2 }
 0x2ea   : > { %v1186_v62 = vadd.f32 %v1183_v43, %v1159_v56  ;;  %v2147_v43 = vld [vmem:[%s6020_s6 + $0x3] sm:$0x1] }
 0x2eb   : > { %v1209_v44 = vpop.f32.mrf.mxu3 }
 0x2ec   : > { %v1212_v3 = vadd.f32 %v1209_v44, %v1186_v62  ;;  %v2149_v44 = vld [vmem:[%s6020_s6 + $0x13] sm:$0x1]  ;;  %v5523_v62 = vld [vmem:[%s6948_s1 + $0x4] sm:$0xf] }
 0x2ee   : > { %v1496_v11 = vrot.slane %v1212_v3, 1 }
 0x2ef   : > { %v1562_v45 = vpop.f32.mrf.mxu0 }
 0x2f0   : > { %v1565_v46 = vmax.f32 %v1562_v45, 0.0  ;;  %v2150_v45 = vld [vmem:[%s6020_s6 + $0x1b] sm:$0x1] }
 0x2f1   : > { %v1279_v47 = vpop.f32.mrf.mxu2  ;;  %v2160_v48 = vrot.slane %v2150_v45, 5 }
 0x2f2   : > { %5478 = vmatpush.msk.msra.mxu1 %vm285_vm3, %v1565_v46  ;;  %v1282_v53 = vadd.f32 %v1279_v47, %v1257_v50  ;;  %v2156_v46 = vrot.slane %v2148_v42, 7  ;;  %v2158_v47 = vrot.slane %v2149_v44, 6 }
 0x2f3   : > { %v1303_v49 = vpop.f32.mrf.mxu3  ;;  %5479 = vmatmul.msk.f32.vlgmr.msra.gmra.mxu1 %vm281_vm4, %v6058_v21 }
 0x2f4   : > { %v1306_v60 = vadd.f32 %v1303_v49, %v1282_v53  ;;  %v2157_v49 = vsel %vm273_vm0, %v2156_v46, %v2147_v43 }
 0x2f5   : > { %v2159_v50 = vsel %vm276_vm1, %v2158_v47, %v2157_v49 }
 0x2f6   : > { %v1499_v0 = vrot.slane %v1306_v60, 1  ;;  %v1504_v4 = vperm.slane %v1306_v60, 0 }
 0x2f7   : > { %v1658_v52 = vpop.f32.mrf.mxu0 }
 0x2f8   : > { %v1661_v54 = vmax.f32 %v1658_v52, 0.0  ;;  %v1505_v8 = vperm.slane %v1499_v0, 0  ;;  %v1516_v12 = vsel %vm891_vm6, %v1212_v3, %v1504_v4  ;;  %v2161_v52 = vsel %vm279_vm2, %v2160_v48, %v2159_v50 }
 0x2f9   : > { %v1373_v55 = vpop.f32.mrf.mxu2 }
 0x2fa   : > { %v1376_v57 = vadd.f32 %v1373_v55, %v1351_v51  ;;  %5488 = vmatpush.msk.msrb.mxu1 %vm285_vm3, %v1661_v54  ;;  %v1517_v16 = vsel %vm891_vm6, %v1496_v11, %v1505_v8  ;;  %v2151_v54 = vld [vmem:[%s6948_s1] sm:$0xf] }
 0x2fb   : > { %v1397_v58 = vpop.f32.mrf.mxu3  ;;  %5489 = vmatmul.msk.f32.vlgmr.msrb.gmra.mxu1 %vm281_vm4, %v6058_v21 }
 0x2fc   : > { %1777 = vmatpush.msra.mxu1 %v6092_v31  ;;  %v1400_v61 = vadd.f32 %v1397_v58, %v1376_v57  ;;  %v5528_v57 = vld [vmem:[%s6948_s1 + $0x8] sm:$0xf] }
 0x2fe   : > { %1778 = vmatpush.msra.mxu1 %v6111_v34  ;;  %v1501_v1 = vrot.slane %v1400_v61, 1  ;;  %v1508_v6 = vperm.slane %v1400_v61, 0 }
 0x300   : > { %1875 = vmatpush.msrb.mxu1 %v6092_v31  ;;  %v1509_v10 = vperm.slane %v1501_v1, 0  ;;  %v1518_v15 = vsel %vm894_vm7, %v1516_v12, %v1508_v6 }
 0x301   : > { %v1467_v2 = vpop.f32.mrf.mxu2 }
 0x302   : > { %1876 = vmatpush.msrb.mxu1 %v6111_v34  ;;  %v1470_v5 = vadd.f32 %v1467_v2, %v1445_v63  ;;  %v1519_v20 = vsel %vm894_vm7, %v1517_v16, %v1509_v10  ;;  %v5533_v63 = vld [vmem:[%s6948_s1 + $0xc] sm:$0xf] }
 0x303   : > { %v1491_v7 = vpop.f32.mrf.mxu3 }
 0x304   : > { %v1494_v9 = vadd.f32 %v1491_v7, %v1470_v5 }
 0x306   : > { %v1503_v13 = vrot.slane %v1494_v9, 1  ;;  %v1512_v14 = vperm.slane %v1494_v9, 0 }
 0x308   : > { %v1513_v17 = vperm.slane %v1503_v13, 0  ;;  %v1520_v19 = vsel %vm897_vm8, %v1518_v15, %v1512_v14 }
 0x309   : > { %5474 = vst.msk [vmem:[%s6203_s10 + $0x4] sm:$0xf] %vm900_vm9, %v1520_v19  ;;  %v1610_v22 = vpop.f32.mrf.mxu2 }
 0x30a   : > { %v1521_v23 = vsel %vm897_vm8, %v1519_v20, %v1513_v17  ;;  %v1613_v24 = vmax.f32 %v1610_v22, 0.0 }
 0x30b   : > { %5475 = vst.msk [vmem:[%s6203_s10 + $0x24] sm:$0xf] %vm900_vm9, %v1521_v23 }
 0x30c   : > { %5483 = vmatpush.msk.msra.mxu3 %vm285_vm3, %v1613_v24 }
 0x30d   : > { %5484 = vmatmul.msk.f32.vlgmr.msra.gmra.mxu3 %vm281_vm4, %v6058_v21 }
 0x311   : > { %v1706_v25 = vpop.f32.mrf.mxu2 }
 0x312   : > { %v1709_v26 = vmax.f32 %v1706_v25, 0.0 }
 0x314   : > { %5493 = vmatpush.msk.msrb.mxu3 %vm285_vm3, %v1709_v26 }
 0x315   : > { %5494 = vmatmul.msk.f32.vlgmr.msrb.gmra.mxu3 %vm281_vm4, %v6058_v21 }
 0x316   : > { %1828 = vmatpush.msra.mxu3 %v6080_v29 }
 0x318   : > { %1829 = vmatpush.msra.mxu3 %v6097_v32 }
 0x31a   : > { %1922 = vmatpush.msrb.mxu3 %v6080_v29 }
 0x31c   : > { %1923 = vmatpush.msrb.mxu3 %v6097_v32 }
 0x370   : > { %v1586_v27 = vpop.f32.mrf.mxu1 }
 0x371   : > { %v1738_v35 = vrot.slane %v1586_v27, 2  ;;  %5498 = vmatmul.msk.f32.vlgmr.msra.gmra.mxu1 %vm489_vm5, %v1586_v27  ;;  %v1858_v36 = vrot.slane %v1586_v27, 4  ;;  %v1835_v37 = vrot.slane %v1586_v27, 6 }
 0x372   : > { %1969 = vmatpush.msra.mxu1 %v6092_v31 }
 0x373   : > { %5497 = vmatmul.msk.f32.vlgmr.msra.gmra.mxu0 %vm489_vm5, %v1738_v35 }
 0x374   : > { %1947 = vmatpush.msra.mxu0 %v6087_v30  ;;  %1970 = vmatpush.msra.mxu1 %v6111_v34 }
 0x376   : > { %1948 = vmatpush.msra.mxu0 %v6106_v33 }
 0x378   : > { %v1682_v38 = vpop.f32.mrf.mxu1 }
 0x379   : > { %5506 = vmatmul.msk.f32.vlgmr.msrb.gmra.mxu1 %vm489_vm5, %v1858_v36  ;;  %v1930_v39 = vrot.slane %v1682_v38, 2  ;;  %v2046_v40 = vrot.slane %v1682_v38, 4  ;;  %v2023_v41 = vrot.slane %v1682_v38, 6 }
 0x37a   : > { %2063 = vmatpush.msrb.mxu1 %v6092_v31 }
 0x37b   : > { %5505 = vmatmul.msk.f32.vlgmr.msrb.gmra.mxu0 %vm489_vm5, %v1835_v37 }
 0x37c   : > { %2040 = vmatpush.msrb.mxu0 %v6087_v30  ;;  %2064 = vmatpush.msrb.mxu1 %v6111_v34 }
 0x37e   : > { %2041 = vmatpush.msrb.mxu0 %v6106_v33 }
 0x381   : > { %5510 = vmatmul.msk.f32.vlgmr.msra.gmra.mxu1 %vm489_vm5, %v1682_v38 }
 0x383   : > { %5509 = vmatmul.msk.f32.vlgmr.msra.gmra.mxu0 %vm489_vm5, %v1930_v39 }
 0x384   : > { %5519 = vmatpush.msk.msra.mxu0 %vm285_vm3, %v2161_v52 }
 0x389   : > { %5514 = vmatmul.msk.f32.vlgmr.msrb.gmra.mxu1 %vm489_vm5, %v2046_v40 }
 0x38b   : > { %5513 = vmatmul.msk.f32.vlgmr.msrb.gmra.mxu0 %vm489_vm5, %v2023_v41 }
 0x38c   : > { %5529 = vmatpush.msk.msrb.mxu0 %vm285_vm3, %v2161_v52 }
 0x390   : > { %v1634_v51 = vpop.f32.mrf.mxu3 }
 0x391   : > { %v1811_v53 = vrot.slane %v1634_v51, 2  ;;  %5501 = vmatmul.msk.f32.vlgmr.msra.gmra.mxu2 %vm489_vm5, %v1634_v51  ;;  %v1881_v55 = vrot.slane %v1634_v51, 4  ;;  %v1905_v56 = vrot.slane %v1634_v51, 6 }
 0x392   : > { %1992 = vmatpush.msra.mxu2 %v6052_v18 }
 0x393   : > { %5504 = vmatmul.msk.f32.vlgmr.msra.gmra.mxu3 %vm489_vm5, %v1811_v53  ;;  %5520 = vmatmul.msk.f32.vlgmr.msra.gmra.mxu0 %vm281_vm4, %v2151_v54 }
 0x394   : > { %1993 = vmatpush.msra.mxu2 %v6075_v28  ;;  %2016 = vmatpush.msra.mxu3 %v6080_v29 }
 0x395   : > { %2377 = vmatpush.msra.mxu0 %v6087_v30 }
 0x396   : > { %2017 = vmatpush.msra.mxu3 %v6097_v32 }
 0x397   : > { %2378 = vmatpush.msra.mxu0 %v6106_v33 }
 0x398   : > { %v1730_v58 = vpop.f32.mrf.mxu3 }
 0x399   : > { %5507 = vmatmul.msk.f32.vlgmr.msrb.gmra.mxu2 %vm489_vm5, %v1881_v55  ;;  %v1999_v59 = vrot.slane %v1730_v58, 2  ;;  %v2069_v60 = vrot.slane %v1730_v58, 4  ;;  %v2093_v61 = vrot.slane %v1730_v58, 6 }
 0x39a   : > { %2086 = vmatpush.msrb.mxu2 %v6052_v18 }
 0x39b   : > { %5508 = vmatmul.msk.f32.vlgmr.msrb.gmra.mxu3 %vm489_vm5, %v1905_v56  ;;  %5530 = vmatmul.msk.f32.vlgmr.msrb.gmra.mxu0 %vm281_vm4, %v5528_v57 }
 0x39c   : > { %2087 = vmatpush.msrb.mxu2 %v6075_v28  ;;  %2110 = vmatpush.msrb.mxu3 %v6080_v29 }
 0x39d   : > { %2474 = vmatpush.msrb.mxu0 %v6087_v30 }
 0x39e   : > { %2111 = vmatpush.msrb.mxu3 %v6097_v32 }
 0x39f   : > { %2475 = vmatpush.msrb.mxu0 %v6106_v33 }
 0x3a1   : > { %5511 = vmatmul.msk.f32.vlgmr.msra.gmra.mxu2 %vm489_vm5, %v1730_v58 }
 0x3a2   : > { %5524 = vmatpush.msk.msra.mxu2 %vm285_vm3, %v2161_v52 }
 0x3a3   : > { %5512 = vmatmul.msk.f32.vlgmr.msra.gmra.mxu3 %vm489_vm5, %v1999_v59 }
 0x3a9   : > { %5515 = vmatmul.msk.f32.vlgmr.msrb.gmra.mxu2 %vm489_vm5, %v2069_v60 }
 0x3aa   : > { %5534 = vmatpush.msk.msrb.mxu2 %vm285_vm3, %v2161_v52 }
 0x3ab   : > { %5516 = vmatmul.msk.f32.vlgmr.msrb.gmra.mxu3 %vm489_vm5, %v2093_v61 }
 0x3b1   : > { %5525 = vmatmul.msk.f32.vlgmr.msra.gmra.mxu2 %vm281_vm4, %v5523_v62 }
 0x3b2   : > { %2424 = vmatpush.msra.mxu2 %v6052_v18 }
 0x3b4   : > { %2425 = vmatpush.msra.mxu2 %v6075_v28 }
 0x3b9   : > { %5535 = vmatmul.msk.f32.vlgmr.msrb.gmra.mxu2 %vm281_vm4, %v5533_v63 }
 0x3ba   : > { %2520 = vmatpush.msrb.mxu2 %v6052_v18 }
 0x3bc   : > { %2521 = vmatpush.msrb.mxu2 %v6075_v28 }
 0x3ee   : > { %v1780_v3 = vpop.f32.mrf.mxu1 }
 0x3f0   : > { %v1758_v0 = vpop.f32.mrf.mxu0 }
 0x3f1   : > { %v1781_v17 = vadd.f32 %v1780_v3, %v1758_v0  ;;  %v2770_v0 = vld [vmem:[%s6020_s6 + $0xc] sm:$0x1] }
 0x3f6   : > { %v1878_v5 = vpop.f32.mrf.mxu1 }
 0x3f8   : > { %v1855_v1 = vpop.f32.mrf.mxu0 }
 0x3f9   : > { %v1879_v12 = vadd.f32 %v1878_v5, %v1855_v1  ;;  %v2771_v1 = vld [vmem:[%s6020_s6 + $0x14] sm:$0x1] }
 0x3fe   : > { %v1972_v11 = vpop.f32.mrf.mxu1 }
 0x400   : > { %v1950_v2 = vpop.f32.mrf.mxu0 }
 0x401   : > { %v1973_v13 = vadd.f32 %v1972_v11, %v1950_v2  ;;  %v2772_v2 = vld [vmem:[%s6020_s6 + $0x1c] sm:$0x1] }
 0x402   : > { %v2782_v3 = vrot.slane %v2772_v2, 5  ;;  %v5826_v11 = vld [vmem:[%s6950_s3 + $0x38] sm:$0xff] }
 0x406   : > { %v2066_v22 = vpop.f32.mrf.mxu1 }
 0x408   : > { %v2043_v4 = vpop.f32.mrf.mxu0 }
 0x409   : > { %v2067_v26 = vadd.f32 %v2066_v22, %v2043_v4 }
 0x410   : > { %v2184_v8 = vpop.f32.mrf.mxu0 }
 0x411   : > { %v2187_v9 = vmax.f32 %v2184_v8, 0.0  ;;  %v5824_v8 = vld [vmem:[%s6950_s3 + $0x28] sm:$0xff] }
 0x413   : > { %5521 = vmatpush.msk.msra.mxu1 %vm285_vm3, %v2187_v9  ;;  %v2773_v9 = vld [vmem:[%s6948_s1] sm:$0xf] }
 0x414   : > { %v1805_v6 = vpop.f32.mrf.mxu2  ;;  %5522 = vmatmul.msk.f32.vlgmr.msra.gmra.mxu1 %vm281_vm4, %v6058_v21 }
 0x415   : > { %v1808_v25 = vadd.f32 %v1805_v6, %v1781_v17 }
 0x416   : > { %v1831_v7 = vpop.f32.mrf.mxu3 }
 0x417   : > { %v1834_v37 = vadd.f32 %v1831_v7, %v1808_v25 }
 0x418   : > { %v2280_v28 = vpop.f32.mrf.mxu0 }
 0x419   : > { %v2283_v14 = vmax.f32 %v2280_v28, 0.0  ;;  %v2118_v45 = vrot.slane %v1834_v37, 1 }
 0x41b   : > { %5531 = vmatpush.msk.msrb.mxu1 %vm285_vm3, %v2283_v14 }
 0x41c   : > { %v1901_v10 = vpop.f32.mrf.mxu2  ;;  %5532 = vmatmul.msk.f32.vlgmr.msrb.gmra.mxu1 %vm281_vm4, %v6058_v21 }
 0x41d   : > { %v1904_v15 = vadd.f32 %v1901_v10, %v1879_v12  ;;  %2399 = vmatpush.msra.mxu1 %v6092_v31  ;;  %v5825_v10 = vld [vmem:[%s6950_s3 + $0x20] sm:$0xff] }
 0x41e   : > { %v1925_v18 = vpop.f32.mrf.mxu3 }
 0x41f   : > { %v1928_v23 = vadd.f32 %v1925_v18, %v1904_v15  ;;  %2400 = vmatpush.msra.mxu1 %v6111_v34  ;;  %v5827_v18 = vld [vmem:[%s6950_s3 + $0x30] sm:$0xff] }
 0x421   : > { %2497 = vmatpush.msrb.mxu1 %v6092_v31  ;;  %v2121_v27 = vrot.slane %v1928_v23, 1  ;;  %v2126_v38 = vperm.slane %v1928_v23, 0 }
 0x423   : > { %2498 = vmatpush.msrb.mxu1 %v6111_v34  ;;  %v2127_v42 = vperm.slane %v2121_v27, 0  ;;  %v2138_v46 = vsel %vm891_vm6, %v1834_v37, %v2126_v38 }
 0x424   : > { %v1995_v16 = vpop.f32.mrf.mxu2 }
 0x425   : > { %v1998_v19 = vadd.f32 %v1995_v16, %v1973_v13  ;;  %v2139_v50 = vsel %vm891_vm6, %v2118_v45, %v2127_v42  ;;  %v5571_v13 = vld [vmem:[%s6948_s1 + $0x8] sm:$0xf] }
 0x426   : > { %v2019_v20 = vpop.f32.mrf.mxu3  ;;  %v6490_v45 = vld [vmem:[%s6950_s3 + $0x28] sm:$0xff] }
 0x427   : > { %v2022_v24 = vadd.f32 %v2019_v20, %v1998_v19  ;;  %v5566_v19 = vld [vmem:[%s6948_s1 + $0x4] sm:$0xf]  ;;  %v5576_v20 = vld [vmem:[%s6948_s1 + $0xc] sm:$0xf] }
 0x429   : > { %v2123_v35 = vrot.slane %v2022_v24, 1  ;;  %v2130_v40 = vperm.slane %v2022_v24, 0 }
 0x42b   : > { %v2131_v44 = vperm.slane %v2123_v35, 0  ;;  %v2140_v49 = vsel %vm894_vm7, %v2138_v46, %v2130_v40 }
 0x42c   : > { %v2089_v36 = vpop.f32.mrf.mxu2 }
 0x42d   : > { %v2092_v39 = vadd.f32 %v2089_v36, %v2067_v26  ;;  %v2141_v53 = vsel %vm894_vm7, %v2139_v50, %v2131_v44 }
 0x42e   : > { %v2113_v41 = vpop.f32.mrf.mxu3 }
 0x42f   : > { %v2116_v43 = vadd.f32 %v2113_v41, %v2092_v39  ;;  %v6483_v41 = vld [vmem:[%s6949_s2] sm:$0xff] }
 0x431   : > { %v2125_v47 = vrot.slane %v2116_v43, 1  ;;  %v2134_v48 = vperm.slane %v2116_v43, 0 }
 0x433   : > { %v2135_v51 = vperm.slane %v2125_v47, 0  ;;  %v2142_v52 = vsel %vm897_vm8, %v2140_v49, %v2134_v48 }
 0x434   : > { %5517 = vst.msk [vmem:[%s6203_s10 + $0x8] sm:$0xf] %vm900_vm9, %v2142_v52  ;;  %v2232_v54 = vpop.f32.mrf.mxu2 }
 0x435   : > { %v2143_v55 = vsel %vm897_vm8, %v2141_v53, %v2135_v51  ;;  %v2235_v56 = vmax.f32 %v2232_v54, 0.0 }
 0x436   : > { %5518 = vst.msk [vmem:[%s6203_s10 + $0x28] sm:$0xf] %vm900_vm9, %v2143_v55 }
 0x437   : > { %5526 = vmatpush.msk.msra.mxu3 %vm285_vm3, %v2235_v56 }
 0x438   : > { %5527 = vmatmul.msk.f32.vlgmr.msra.gmra.mxu3 %vm281_vm4, %v6058_v21 }
 0x43c   : > { %v2328_v57 = vpop.f32.mrf.mxu2 }
 0x43d   : > { %v2331_v58 = vmax.f32 %v2328_v57, 0.0 }
 0x43f   : > { %5536 = vmatpush.msk.msrb.mxu3 %vm285_vm3, %v2331_v58 }
 0x440   : > { %5537 = vmatmul.msk.f32.vlgmr.msrb.gmra.mxu3 %vm281_vm4, %v6058_v21 }
 0x441   : > { %2450 = vmatpush.msra.mxu3 %v6080_v29 }
 0x443   : > { %2451 = vmatpush.msra.mxu3 %v6097_v32 }
 0x445   : > { %2544 = vmatpush.msrb.mxu3 %v6080_v29 }
 0x447   : > { %2545 = vmatpush.msrb.mxu3 %v6097_v32 }
 0x491   : > { %v2208_v59 = vpop.f32.mrf.mxu1 }
 0x492   : > { %v2360_v60 = vrot.slane %v2208_v59, 2  ;;  %5541 = vmatmul.msk.f32.vlgmr.msra.gmra.mxu1 %vm489_vm5, %v2208_v59  ;;  %v2480_v21 = vrot.slane %v2208_v59, 4  ;;  %v2457_v29 = vrot.slane %v2208_v59, 6 }
 0x493   : > { %2591 = vmatpush.msra.mxu1 %v6092_v31 }
 0x494   : > { %5540 = vmatmul.msk.f32.vlgmr.msra.gmra.mxu0 %vm489_vm5, %v2360_v60 }
 0x495   : > { %2569 = vmatpush.msra.mxu0 %v6087_v30  ;;  %2592 = vmatpush.msra.mxu1 %v6111_v34 }
 0x497   : > { %2570 = vmatpush.msra.mxu0 %v6106_v33 }
 0x499   : > { %v2304_v32 = vpop.f32.mrf.mxu1 }
 0x49a   : > { %5549 = vmatmul.msk.f32.vlgmr.msrb.gmra.mxu1 %vm489_vm5, %v2480_v21  ;;  %v2552_v61 = vrot.slane %v2304_v32, 2  ;;  %v2668_v62 = vrot.slane %v2304_v32, 4  ;;  %v2645_v63 = vrot.slane %v2304_v32, 6 }
 0x49b   : > { %2685 = vmatpush.msrb.mxu1 %v6092_v31  ;;  %v2769_v31 = vld [vmem:[%s6020_s6 + $0x4] sm:$0x1] }
 0x49c   : > { %5548 = vmatmul.msk.f32.vlgmr.msrb.gmra.mxu0 %vm489_vm5, %v2457_v29 }
 0x49d   : > { %2662 = vmatpush.msrb.mxu0 %v6087_v30  ;;  %2686 = vmatpush.msrb.mxu1 %v6111_v34  ;;  %v2778_v30 = vrot.slane %v2770_v0, 7  ;;  %v2780_v34 = vrot.slane %v2771_v1, 6 }
 0x49f   : > { %2663 = vmatpush.msrb.mxu0 %v6106_v33  ;;  %v2779_v33 = vsel %vm273_vm0, %v2778_v30, %v2769_v31 }
 0x4a0   : > { %v2781_v4 = vsel %vm276_vm1, %v2780_v34, %v2779_v33 }
 0x4a1   : > { %v2783_v6 = vsel %vm279_vm2, %v2782_v3, %v2781_v4 }
 0x4a2   : > { %5553 = vmatmul.msk.f32.vlgmr.msra.gmra.mxu1 %vm489_vm5, %v2304_v32 }
 0x4a4   : > { %5552 = vmatmul.msk.f32.vlgmr.msra.gmra.mxu0 %vm489_vm5, %v2552_v61 }
 0x4a5   : > { %5562 = vmatpush.msk.msra.mxu0 %vm285_vm3, %v2783_v6 }
 0x4aa   : > { %5557 = vmatmul.msk.f32.vlgmr.msrb.gmra.mxu1 %vm489_vm5, %v2668_v62 }
 0x4ac   : > { %5556 = vmatmul.msk.f32.vlgmr.msrb.gmra.mxu0 %vm489_vm5, %v2645_v63 }
 0x4ad   : > { %5572 = vmatpush.msk.msrb.mxu0 %vm285_vm3, %v2783_v6 }
 0x4b4   : > { %5563 = vmatmul.msk.f32.vlgmr.msra.gmra.mxu0 %vm281_vm4, %v2773_v9 }
 0x4bb   : > { %v2256_v5 = vpop.f32.mrf.mxu3 }
 0x4bc   : > { %v2433_v7 = vrot.slane %v2256_v5, 2  ;;  %5544 = vmatmul.msk.f32.vlgmr.msra.gmra.mxu2 %vm489_vm5, %v2256_v5  ;;  %v2503_v12 = vrot.slane %v2256_v5, 4  ;;  %v2527_v28 = vrot.slane %v2256_v5, 6  ;;  %5573 = vmatmul.msk.f32.vlgmr.msrb.gmra.mxu0 %vm281_vm4, %v5571_v13  ;;  %v6527_v13 = vld [vmem:[%s6950_s3 + $0x18] sm:$0xff] }
 0x4bd   : > { %2614 = vmatpush.msra.mxu2 %v5824_v8  ;;  %2999 = vmatpush.msra.mxu0 %v6527_v13 }
 0x4be   : > { %5547 = vmatmul.msk.f32.vlgmr.msra.gmra.mxu3 %vm489_vm5, %v2433_v7 }
 0x4bf   : > { %2615 = vmatpush.msra.mxu2 %v5825_v10  ;;  %2638 = vmatpush.msra.mxu3 %v5826_v11 }
 0x4c1   : > { %2639 = vmatpush.msra.mxu3 %v5827_v18 }
 0x4c3   : > { %v2352_v14 = vpop.f32.mrf.mxu3 }
 0x4c4   : > { %5550 = vmatmul.msk.f32.vlgmr.msrb.gmra.mxu2 %vm489_vm5, %v2503_v12  ;;  %v2621_v15 = vrot.slane %v2352_v14, 2  ;;  %v2691_v16 = vrot.slane %v2352_v14, 4  ;;  %v2715_v17 = vrot.slane %v2352_v14, 6  ;;  %v6520_v12 = vld [vmem:[%s6950_s3 + $0x38] sm:$0xff] }
 0x4c5   : > { %2708 = vmatpush.msrb.mxu2 %v5824_v8 }
 0x4c6   : > { %5551 = vmatmul.msk.f32.vlgmr.msrb.gmra.mxu3 %vm489_vm5, %v2527_v28 }
 0x4c7   : > { %2709 = vmatpush.msrb.mxu2 %v5825_v10  ;;  %2732 = vmatpush.msrb.mxu3 %v5826_v11 }
 0x4c9   : > { %2733 = vmatpush.msrb.mxu3 %v5827_v18  ;;  %v6515_v18 = vld [vmem:[%s6950_s3 + $0x20] sm:$0xff] }
 0x4cc   : > { %5554 = vmatmul.msk.f32.vlgmr.msra.gmra.mxu2 %vm489_vm5, %v2352_v14  ;;  %v6532_v14 = vld [vmem:[%s6950_s3 + $0x8] sm:$0xff] }
 0x4cd   : > { %5567 = vmatpush.msk.msra.mxu2 %vm285_vm3, %v2783_v6 }
 0x4ce   : > { %5555 = vmatmul.msk.f32.vlgmr.msra.gmra.mxu3 %vm489_vm5, %v2621_v15  ;;  %v6537_v15 = vld [vmem:[%s6950_s3 + $0x30] sm:$0xff] }
 0x4d4   : > { %5558 = vmatmul.msk.f32.vlgmr.msrb.gmra.mxu2 %vm489_vm5, %v2691_v16 }
 0x4d5   : > { %5577 = vmatpush.msk.msrb.mxu2 %vm285_vm3, %v2783_v6 }
 0x4d6   : > { %5559 = vmatmul.msk.f32.vlgmr.msrb.gmra.mxu3 %vm489_vm5, %v2715_v17  ;;  %v6546_v17 = vld [vmem:[%s6950_s3 + $0x10] sm:$0xff] }
 0x4d7   : > { %3000 = vmatpush.msra.mxu0 %v6546_v17 }
 0x4d9   : > { %3096 = vmatpush.msrb.mxu0 %v6527_v13 }
 0x4db   : > { %3097 = vmatpush.msrb.mxu0 %v6546_v17 }
 0x4dc   : > { %5568 = vmatmul.msk.f32.vlgmr.msra.gmra.mxu2 %vm281_vm4, %v5566_v19  ;;  %v6551_v19 = vld [vmem:[%s6950_s3] sm:$0xff] }
 0x4dd   : > { %3046 = vmatpush.msra.mxu2 %v6490_v45 }
 0x4df   : > { %3047 = vmatpush.msra.mxu2 %v6515_v18 }
 0x4e4   : > { %5578 = vmatmul.msk.f32.vlgmr.msrb.gmra.mxu2 %vm281_vm4, %v5576_v20 }
 0x4e5   : > { %3142 = vmatpush.msrb.mxu2 %v6490_v45 }
 0x4e7   : > { %3143 = vmatpush.msrb.mxu2 %v6515_v18 }
 0x50f   : > { %v2402_v25 = vpop.f32.mrf.mxu1 }
 0x511   : > { %v2380_v22 = vpop.f32.mrf.mxu0 }
 0x512   : > { %v2403_v50 = vadd.f32 %v2402_v25, %v2380_v22 }
 0x517   : > { %v2500_v27 = vpop.f32.mrf.mxu1 }
 0x519   : > { %v2477_v23 = vpop.f32.mrf.mxu0 }
 0x51a   : > { %v2501_v43 = vadd.f32 %v2500_v27, %v2477_v23  ;;  %v3392_v27 = vld [vmem:[%s6020_s6 + $0xd] sm:$0x1] }
 0x51f   : > { %v2594_v40 = vpop.f32.mrf.mxu1 }
 0x521   : > { %v2572_v24 = vpop.f32.mrf.mxu0 }
 0x522   : > { %v2595_v46 = vadd.f32 %v2594_v40, %v2572_v24 }
 0x527   : > { %v2688_v53 = vpop.f32.mrf.mxu1 }
 0x529   : > { %v2665_v26 = vpop.f32.mrf.mxu0 }
 0x52a   : > { %v2689_v57 = vadd.f32 %v2688_v53, %v2665_v26 }
 0x531   : > { %v2806_v37 = vpop.f32.mrf.mxu0 }
 0x532   : > { %v2809_v38 = vmax.f32 %v2806_v37, 0.0  ;;  %v3394_v37 = vld [vmem:[%s6020_s6 + $0x1d] sm:$0x1] }
 0x533   : > { %v3404_v40 = vrot.slane %v3394_v37, 5 }
 0x534   : > { %5564 = vmatpush.msk.msra.mxu1 %vm285_vm3, %v2809_v38  ;;  %v3400_v38 = vrot.slane %v3392_v27, 7 }
 0x535   : > { %5565 = vmatmul.msk.f32.vlgmr.msra.gmra.mxu1 %vm281_vm4, %v6483_v41 }
 0x539   : > { %v2902_v44 = vpop.f32.mrf.mxu0 }
 0x53a   : > { %v2905_v47 = vmax.f32 %v2902_v44, 0.0 }
 0x53c   : > { %5574 = vmatpush.msk.msrb.mxu1 %vm285_vm3, %v2905_v47 }
 0x53d   : > { %5575 = vmatmul.msk.f32.vlgmr.msrb.gmra.mxu1 %vm281_vm4, %v6483_v41 }
 0x53e   : > { %3021 = vmatpush.msra.mxu1 %v6532_v14 }
 0x53f   : > { %v2427_v35 = vpop.f32.mrf.mxu2 }
 0x540   : > { %v2430_v56 = vadd.f32 %v2427_v35, %v2403_v50  ;;  %3022 = vmatpush.msra.mxu1 %v6551_v19  ;;  %v3391_v35 = vld [vmem:[%s6020_s6 + $0x5] sm:$0x1] }
 0x541   : > { %v2453_v36 = vpop.f32.mrf.mxu3 }
 0x542   : > { %v2456_v21 = vadd.f32 %v2453_v36, %v2430_v56  ;;  %3119 = vmatpush.msrb.mxu1 %v6532_v14  ;;  %v3393_v36 = vld [vmem:[%s6020_s6 + $0x15] sm:$0x1]  ;;  %v5609_v56 = vld [vmem:[%s6948_s1 + $0x4] sm:$0xf] }
 0x544   : > { %v2740_v1 = vrot.slane %v2456_v21, 1  ;;  %3120 = vmatpush.msrb.mxu1 %v6551_v19 }
 0x547   : > { %v2523_v39 = vpop.f32.mrf.mxu2 }
 0x548   : > { %v2526_v48 = vadd.f32 %v2523_v39, %v2501_v43  ;;  %v3402_v39 = vrot.slane %v3393_v36, 6 }
 0x549   : > { %v2547_v42 = vpop.f32.mrf.mxu3 }
 0x54a   : > { %v2550_v54 = vadd.f32 %v2547_v42, %v2526_v48  ;;  %v3401_v42 = vsel %vm273_vm0, %v3400_v38, %v3391_v35  ;;  %v3395_v48 = vld [vmem:[%s6948_s1] sm:$0xf] }
 0x54b   : > { %v3403_v43 = vsel %vm276_vm1, %v3402_v39, %v3401_v42 }
 0x54c   : > { %v2743_v58 = vrot.slane %v2550_v54, 1  ;;  %v2748_v29 = vperm.slane %v2550_v54, 0 }
 0x54e   : > { %v2749_v63 = vperm.slane %v2743_v58, 0  ;;  %v2760_v2 = vsel %vm891_vm6, %v2456_v21, %v2748_v29 }
 0x54f   : > { %v2617_v49 = vpop.f32.mrf.mxu2 }
 0x550   : > { %v2620_v51 = vadd.f32 %v2617_v49, %v2595_v46  ;;  %v2761_v33 = vsel %vm891_vm6, %v2740_v1, %v2749_v63  ;;  %v3405_v46 = vsel %vm279_vm2, %v3404_v40, %v3403_v43 }
 0x551   : > { %v2641_v52 = vpop.f32.mrf.mxu3 }
 0x552   : > { %v2644_v55 = vadd.f32 %v2641_v52, %v2620_v51  ;;  %v5614_v51 = vld [vmem:[%s6948_s1 + $0x8] sm:$0xf] }
 0x554   : > { %v2745_v59 = vrot.slane %v2644_v55, 1  ;;  %v2752_v61 = vperm.slane %v2644_v55, 0 }
 0x556   : > { %v2753_v31 = vperm.slane %v2745_v59, 0  ;;  %v2762_v3 = vsel %vm894_vm7, %v2760_v2, %v2752_v61 }
 0x557   : > { %v2711_v60 = vpop.f32.mrf.mxu2 }
 0x558   : > { %v2714_v32 = vadd.f32 %v2711_v60, %v2689_v57  ;;  %v2763_v6 = vsel %vm894_vm7, %v2761_v33, %v2753_v31  ;;  %v5619_v57 = vld [vmem:[%s6948_s1 + $0xc] sm:$0xf] }
 0x559   : > { %v2735_v62 = vpop.f32.mrf.mxu3 }
 0x55a   : > { %v2738_v0 = vadd.f32 %v2735_v62, %v2714_v32 }
 0x55c   : > { %v2747_v30 = vrot.slane %v2738_v0, 1  ;;  %v2756_v34 = vperm.slane %v2738_v0, 0 }
 0x55e   : > { %v2757_v4 = vperm.slane %v2747_v30, 0  ;;  %v2764_v5 = vsel %vm897_vm8, %v2762_v3, %v2756_v34 }
 0x55f   : > { %5560 = vst.msk [vmem:[%s6203_s10 + $0xc] sm:$0xf] %vm900_vm9, %v2764_v5  ;;  %v2854_v7 = vpop.f32.mrf.mxu2 }
 0x560   : > { %v2765_v8 = vsel %vm897_vm8, %v2763_v6, %v2757_v4  ;;  %v2857_v9 = vmax.f32 %v2854_v7, 0.0 }
 0x561   : > { %5561 = vst.msk [vmem:[%s6203_s10 + $0x2c] sm:$0xf] %vm900_vm9, %v2765_v8 }
 0x562   : > { %5569 = vmatpush.msk.msra.mxu3 %vm285_vm3, %v2857_v9 }
 0x563   : > { %5570 = vmatmul.msk.f32.vlgmr.msra.gmra.mxu3 %vm281_vm4, %v6483_v41 }
 0x567   : > { %v2950_v10 = vpop.f32.mrf.mxu2 }
 0x568   : > { %v2953_v11 = vmax.f32 %v2950_v10, 0.0 }
 0x56a   : > { %5579 = vmatpush.msk.msrb.mxu3 %vm285_vm3, %v2953_v11 }
 0x56b   : > { %5580 = vmatmul.msk.f32.vlgmr.msrb.gmra.mxu3 %vm281_vm4, %v6483_v41 }
 0x56c   : > { %3072 = vmatpush.msra.mxu3 %v6520_v12 }
 0x56e   : > { %3073 = vmatpush.msra.mxu3 %v6537_v15 }
 0x570   : > { %3166 = vmatpush.msrb.mxu3 %v6520_v12 }
 0x572   : > { %3167 = vmatpush.msrb.mxu3 %v6537_v15 }
 0x5b2   : > { %v2830_v28 = vpop.f32.mrf.mxu1 }
 0x5b3   : > { %v2982_v16 = vrot.slane %v2830_v28, 2  ;;  %5584 = vmatmul.msk.f32.vlgmr.msra.gmra.mxu1 %vm489_vm5, %v2830_v28  ;;  %v3079_v20 = vrot.slane %v2830_v28, 6  ;;  %v3102_v22 = vrot.slane %v2830_v28, 4 }
 0x5b4   : > { %3213 = vmatpush.msra.mxu1 %v6532_v14 }
 0x5b5   : > { %5583 = vmatmul.msk.f32.vlgmr.msra.gmra.mxu0 %vm489_vm5, %v2982_v16 }
 0x5b6   : > { %3191 = vmatpush.msra.mxu0 %v6527_v13  ;;  %3214 = vmatpush.msra.mxu1 %v6551_v19 }
 0x5b8   : > { %3192 = vmatpush.msra.mxu0 %v6546_v17 }
 0x5ba   : > { %v2926_v23 = vpop.f32.mrf.mxu1 }
 0x5bb   : > { %5592 = vmatmul.msk.f32.vlgmr.msrb.gmra.mxu1 %vm489_vm5, %v3102_v22  ;;  %v3174_v24 = vrot.slane %v2926_v23, 2  ;;  %v3267_v25 = vrot.slane %v2926_v23, 6  ;;  %v3290_v26 = vrot.slane %v2926_v23, 4 }
 0x5bc   : > { %3307 = vmatpush.msrb.mxu1 %v6532_v14 }
 0x5bd   : > { %5591 = vmatmul.msk.f32.vlgmr.msrb.gmra.mxu0 %vm489_vm5, %v3079_v20 }
 0x5be   : > { %3284 = vmatpush.msrb.mxu0 %v6527_v13  ;;  %3308 = vmatpush.msrb.mxu1 %v6551_v19 }
 0x5c0   : > { %3285 = vmatpush.msrb.mxu0 %v6546_v17 }
 0x5c3   : > { %5596 = vmatmul.msk.f32.vlgmr.msra.gmra.mxu1 %vm489_vm5, %v2926_v23 }
 0x5c5   : > { %5595 = vmatmul.msk.f32.vlgmr.msra.gmra.mxu0 %vm489_vm5, %v3174_v24 }
 0x5c6   : > { %5605 = vmatpush.msk.msra.mxu0 %vm285_vm3, %v3405_v46 }
 0x5cb   : > { %5600 = vmatmul.msk.f32.vlgmr.msrb.gmra.mxu1 %vm489_vm5, %v3290_v26 }
 0x5cd   : > { %5599 = vmatmul.msk.f32.vlgmr.msrb.gmra.mxu0 %vm489_vm5, %v3267_v25 }
 0x5ce   : > { %5615 = vmatpush.msk.msrb.mxu0 %vm285_vm3, %v3405_v46 }
 0x5d5   : > { %5606 = vmatmul.msk.f32.vlgmr.msra.gmra.mxu0 %vm281_vm4, %v3395_v48 }
 0x5d6   : > { %3621 = vmatpush.msra.mxu0 %v6527_v13 }
 0x5d8   : > { %3622 = vmatpush.msra.mxu0 %v6546_v17 }
 0x5dd   : > { %5616 = vmatmul.msk.f32.vlgmr.msrb.gmra.mxu0 %vm281_vm4, %v5614_v51 }
 0x5de   : > { %3718 = vmatpush.msrb.mxu0 %v6527_v13 }
 0x5e0   : > { %3719 = vmatpush.msrb.mxu0 %v6546_v17 }
 0x5e6   : > { %v2878_v44 = vpop.f32.mrf.mxu3 }
 0x5e7   : > { %v3055_v47 = vrot.slane %v2878_v44, 2  ;;  %5587 = vmatmul.msk.f32.vlgmr.msra.gmra.mxu2 %vm489_vm5, %v2878_v44  ;;  %v3125_v49 = vrot.slane %v2878_v44, 4  ;;  %v3149_v50 = vrot.slane %v2878_v44, 6 }
 0x5e8   : > { %3236 = vmatpush.msra.mxu2 %v6490_v45 }
 0x5e9   : > { %5590 = vmatmul.msk.f32.vlgmr.msra.gmra.mxu3 %vm489_vm5, %v3055_v47 }
 0x5ea   : > { %3237 = vmatpush.msra.mxu2 %v6515_v18  ;;  %3260 = vmatpush.msra.mxu3 %v6520_v12 }
 0x5ec   : > { %3261 = vmatpush.msra.mxu3 %v6537_v15 }
 0x5ee   : > { %v2974_v52 = vpop.f32.mrf.mxu3 }
 0x5ef   : > { %5593 = vmatmul.msk.f32.vlgmr.msrb.gmra.mxu2 %vm489_vm5, %v3125_v49  ;;  %v3243_v53 = vrot.slane %v2974_v52, 2  ;;  %v3313_v54 = vrot.slane %v2974_v52, 4  ;;  %v3337_v55 = vrot.slane %v2974_v52, 6 }
 0x5f0   : > { %3330 = vmatpush.msrb.mxu2 %v6490_v45 }
 0x5f1   : > { %5594 = vmatmul.msk.f32.vlgmr.msrb.gmra.mxu3 %vm489_vm5, %v3149_v50 }
 0x5f2   : > { %3331 = vmatpush.msrb.mxu2 %v6515_v18  ;;  %3354 = vmatpush.msrb.mxu3 %v6520_v12 }
 0x5f4   : > { %3355 = vmatpush.msrb.mxu3 %v6537_v15 }
 0x5f7   : > { %5597 = vmatmul.msk.f32.vlgmr.msra.gmra.mxu2 %vm489_vm5, %v2974_v52 }
 0x5f8   : > { %5610 = vmatpush.msk.msra.mxu2 %vm285_vm3, %v3405_v46 }
 0x5f9   : > { %5598 = vmatmul.msk.f32.vlgmr.msra.gmra.mxu3 %vm489_vm5, %v3243_v53 }
 0x5ff   : > { %5601 = vmatmul.msk.f32.vlgmr.msrb.gmra.mxu2 %vm489_vm5, %v3313_v54 }
 0x600   : > { %5620 = vmatpush.msk.msrb.mxu2 %vm285_vm3, %v3405_v46 }
 0x601   : > { %5602 = vmatmul.msk.f32.vlgmr.msrb.gmra.mxu3 %vm489_vm5, %v3337_v55 }
 0x607   : > { %5611 = vmatmul.msk.f32.vlgmr.msra.gmra.mxu2 %vm281_vm4, %v5609_v56 }
 0x608   : > { %3668 = vmatpush.msra.mxu2 %v6490_v45 }
 0x60a   : > { %3669 = vmatpush.msra.mxu2 %v6515_v18 }
 0x60f   : > { %5621 = vmatmul.msk.f32.vlgmr.msrb.gmra.mxu2 %vm281_vm4, %v5619_v57 }
 0x610   : > { %3764 = vmatpush.msrb.mxu2 %v6490_v45 }
 0x612   : > { %3765 = vmatpush.msrb.mxu2 %v6515_v18 }
 0x630   : > { %v3024_v21 = vpop.f32.mrf.mxu1 }
 0x632   : > { %v3002_v58 = vpop.f32.mrf.mxu0 }
 0x633   : > { %v3025_v6 = vadd.f32 %v3024_v21, %v3002_v58 }
 0x638   : > { %v3122_v32 = vpop.f32.mrf.mxu1 }
 0x63a   : > { %v3099_v59 = vpop.f32.mrf.mxu0 }
 0x63b   : > { %v3123_v30 = vadd.f32 %v3122_v32, %v3099_v59  ;;  %v4014_v32 = vld [vmem:[%s6020_s6 + $0xe] sm:$0x1] }
 0x640   : > { %v3216_v1 = vpop.f32.mrf.mxu1 }
 0x642   : > { %v3194_v60 = vpop.f32.mrf.mxu0 }
 0x643   : > { %v3217_v3 = vadd.f32 %v3216_v1, %v3194_v60 }
 0x648   : > { %v3310_v9 = vpop.f32.mrf.mxu1 }
 0x64a   : > { %v3287_v29 = vpop.f32.mrf.mxu0 }
 0x64b   : > { %v3311_v16 = vadd.f32 %v3310_v9, %v3287_v29 }
 0x652   : > { %v3428_v63 = vpop.f32.mrf.mxu0 }
 0x653   : > { %v3431_v0 = vmax.f32 %v3428_v63, 0.0  ;;  %v4016_v63 = vld [vmem:[%s6020_s6 + $0x1e] sm:$0x1] }
 0x654   : > { %v4026_v1 = vrot.slane %v4016_v63, 5 }
 0x655   : > { %5607 = vmatpush.msk.msra.mxu1 %vm285_vm3, %v3431_v0  ;;  %v4022_v0 = vrot.slane %v4014_v32, 7 }
 0x656   : > { %5608 = vmatmul.msk.f32.vlgmr.msra.gmra.mxu1 %vm281_vm4, %v6483_v41 }
 0x65a   : > { %v3524_v34 = vpop.f32.mrf.mxu0 }
 0x65b   : > { %v3527_v33 = vmax.f32 %v3524_v34, 0.0 }
 0x65d   : > { %5617 = vmatpush.msk.msrb.mxu1 %vm285_vm3, %v3527_v33 }
 0x65e   : > { %5618 = vmatmul.msk.f32.vlgmr.msrb.gmra.mxu1 %vm281_vm4, %v6483_v41 }
 0x65f   : > { %3643 = vmatpush.msra.mxu1 %v6532_v14 }
 0x661   : > { %3644 = vmatpush.msra.mxu1 %v6551_v19 }
 0x663   : > { %3741 = vmatpush.msrb.mxu1 %v6532_v14 }
 0x665   : > { %3742 = vmatpush.msrb.mxu1 %v6551_v19 }
 0x66a   : > { %v3049_v61 = vpop.f32.mrf.mxu2 }
 0x66b   : > { %v3052_v28 = vadd.f32 %v3049_v61, %v3025_v6  ;;  %v4013_v61 = vld [vmem:[%s6020_s6 + $0x6] sm:$0x1] }
 0x66c   : > { %v3075_v62 = vpop.f32.mrf.mxu3 }
 0x66d   : > { %v3078_v24 = vadd.f32 %v3075_v62, %v3052_v28  ;;  %v4015_v62 = vld [vmem:[%s6020_s6 + $0x16] sm:$0x1]  ;;  %v5652_v28 = vld [vmem:[%s6948_s1 + $0x4] sm:$0xf] }
 0x66f   : > { %v3362_v39 = vrot.slane %v3078_v24, 1 }
 0x672   : > { %v3145_v31 = vpop.f32.mrf.mxu2 }
 0x673   : > { %v3148_v4 = vadd.f32 %v3145_v31, %v3123_v30  ;;  %v4024_v31 = vrot.slane %v4015_v62, 6 }
 0x674   : > { %v3169_v2 = vpop.f32.mrf.mxu3 }
 0x675   : > { %v3172_v10 = vadd.f32 %v3169_v2, %v3148_v4  ;;  %v4023_v2 = vsel %vm273_vm0, %v4022_v0, %v4013_v61  ;;  %v4017_v4 = vld [vmem:[%s6948_s1] sm:$0xf] }
 0x676   : > { %v4025_v30 = vsel %vm276_vm1, %v4024_v31, %v4023_v2 }
 0x677   : > { %v3365_v20 = vrot.slane %v3172_v10, 1  ;;  %v3370_v25 = vperm.slane %v3172_v10, 0 }
 0x679   : > { %v3371_v36 = vperm.slane %v3365_v20, 0  ;;  %v3382_v40 = vsel %vm891_vm6, %v3078_v24, %v3370_v25 }
 0x67a   : > { %v3239_v5 = vpop.f32.mrf.mxu2 }
 0x67b   : > { %v3242_v7 = vadd.f32 %v3239_v5, %v3217_v3  ;;  %v3383_v46 = vsel %vm891_vm6, %v3362_v39, %v3371_v36  ;;  %v4027_v3 = vsel %vm279_vm2, %v4026_v1, %v4025_v30 }
 0x67c   : > { %v3263_v8 = vpop.f32.mrf.mxu3 }
 0x67d   : > { %v3266_v11 = vadd.f32 %v3263_v8, %v3242_v7  ;;  %v5657_v7 = vld [vmem:[%s6948_s1 + $0x8] sm:$0xf] }
 0x67f   : > { %v3367_v22 = vrot.slane %v3266_v11, 1  ;;  %v3374_v27 = vperm.slane %v3266_v11, 0 }
 0x681   : > { %v3375_v38 = vperm.slane %v3367_v22, 0  ;;  %v3384_v44 = vsel %vm894_vm7, %v3382_v40, %v3374_v27 }
 0x682   : > { %v3333_v23 = vpop.f32.mrf.mxu2 }
 0x683   : > { %v3336_v26 = vadd.f32 %v3333_v23, %v3311_v16  ;;  %v3385_v49 = vsel %vm894_vm7, %v3383_v46, %v3375_v38  ;;  %v5662_v16 = vld [vmem:[%s6948_s1 + $0xc] sm:$0xf] }
 0x684   : > { %v3357_v35 = vpop.f32.mrf.mxu3 }
 0x685   : > { %v3360_v37 = vadd.f32 %v3357_v35, %v3336_v26 }
 0x687   : > { %v3369_v42 = vrot.slane %v3360_v37, 1  ;;  %v3378_v43 = vperm.slane %v3360_v37, 0 }
 0x689   : > { %v3379_v47 = vperm.slane %v3369_v42, 0  ;;  %v3386_v48 = vsel %vm897_vm8, %v3384_v44, %v3378_v43 }
 0x68a   : > { %5603 = vst.msk [vmem:[%s6203_s10 + $0x10] sm:$0xf] %vm900_vm9, %v3386_v48  ;;  %v3476_v50 = vpop.f32.mrf.mxu2 }
 0x68b   : > { %v3387_v51 = vsel %vm897_vm8, %v3385_v49, %v3379_v47  ;;  %v3479_v52 = vmax.f32 %v3476_v50, 0.0 }
 0x68c   : > { %5604 = vst.msk [vmem:[%s6203_s10 + $0x30] sm:$0xf] %vm900_vm9, %v3387_v51 }
 0x68d   : > { %5612 = vmatpush.msk.msra.mxu3 %vm285_vm3, %v3479_v52 }
 0x68e   : > { %5613 = vmatmul.msk.f32.vlgmr.msra.gmra.mxu3 %vm281_vm4, %v6483_v41 }
 0x692   : > { %v3572_v53 = vpop.f32.mrf.mxu2 }
 0x693   : > { %v3575_v54 = vmax.f32 %v3572_v53, 0.0 }
 0x695   : > { %5622 = vmatpush.msk.msrb.mxu3 %vm285_vm3, %v3575_v54 }
 0x696   : > { %5623 = vmatmul.msk.f32.vlgmr.msrb.gmra.mxu3 %vm281_vm4, %v6483_v41 }
 0x697   : > { %3694 = vmatpush.msra.mxu3 %v6520_v12 }
 0x699   : > { %3695 = vmatpush.msra.mxu3 %v6537_v15 }
 0x69b   : > { %3788 = vmatpush.msrb.mxu3 %v6520_v12 }
 0x69d   : > { %3789 = vmatpush.msrb.mxu3 %v6537_v15 }
 0x6d3   : > { %v3452_v55 = vpop.f32.mrf.mxu1 }
 0x6d4   : > { %v3604_v56 = vrot.slane %v3452_v55, 2  ;;  %5627 = vmatmul.msk.f32.vlgmr.msra.gmra.mxu1 %vm489_vm5, %v3452_v55  ;;  %v3724_v57 = vrot.slane %v3452_v55, 4  ;;  %v3701_v58 = vrot.slane %v3452_v55, 6 }
 0x6d5   : > { %3835 = vmatpush.msra.mxu1 %v6532_v14 }
 0x6d6   : > { %5626 = vmatmul.msk.f32.vlgmr.msra.gmra.mxu0 %vm489_vm5, %v3604_v56 }
 0x6d7   : > { %3813 = vmatpush.msra.mxu0 %v6527_v13  ;;  %3836 = vmatpush.msra.mxu1 %v6551_v19 }
 0x6d9   : > { %3814 = vmatpush.msra.mxu0 %v6546_v17 }
 0x6db   : > { %v3548_v59 = vpop.f32.mrf.mxu1 }
 0x6dc   : > { %5635 = vmatmul.msk.f32.vlgmr.msrb.gmra.mxu1 %vm489_vm5, %v3724_v57  ;;  %v3796_v60 = vrot.slane %v3548_v59, 2  ;;  %v3912_v21 = vrot.slane %v3548_v59, 4  ;;  %v3889_v29 = vrot.slane %v3548_v59, 6 }
 0x6dd   : > { %3929 = vmatpush.msrb.mxu1 %v6532_v14 }
 0x6de   : > { %5634 = vmatmul.msk.f32.vlgmr.msrb.gmra.mxu0 %vm489_vm5, %v3701_v58 }
 0x6df   : > { %3906 = vmatpush.msrb.mxu0 %v6527_v13  ;;  %3930 = vmatpush.msrb.mxu1 %v6551_v19 }
 0x6e1   : > { %3907 = vmatpush.msrb.mxu0 %v6546_v17 }
 0x6e4   : > { %5639 = vmatmul.msk.f32.vlgmr.msra.gmra.mxu1 %vm489_vm5, %v3548_v59 }
 0x6e6   : > { %5638 = vmatmul.msk.f32.vlgmr.msra.gmra.mxu0 %vm489_vm5, %v3796_v60 }
 0x6e7   : > { %5648 = vmatpush.msk.msra.mxu0 %vm285_vm3, %v4027_v3 }
 0x6ec   : > { %5643 = vmatmul.msk.f32.vlgmr.msrb.gmra.mxu1 %vm489_vm5, %v3912_v21 }
 0x6ee   : > { %5642 = vmatmul.msk.f32.vlgmr.msrb.gmra.mxu0 %vm489_vm5, %v3889_v29 }
 0x6ef   : > { %5658 = vmatpush.msk.msrb.mxu0 %vm285_vm3, %v4027_v3 }
 0x6f6   : > { %5649 = vmatmul.msk.f32.vlgmr.msra.gmra.mxu0 %vm281_vm4, %v4017_v4 }
 0x6f7   : > { %4243 = vmatpush.msra.mxu0 %v6527_v13 }
 0x6f9   : > { %4244 = vmatpush.msra.mxu0 %v6546_v17 }
 0x6fe   : > { %5659 = vmatmul.msk.f32.vlgmr.msrb.gmra.mxu0 %vm281_vm4, %v5657_v7 }
 0x6ff   : > { %4340 = vmatpush.msrb.mxu0 %v6527_v13 }
 0x701   : > { %4341 = vmatpush.msrb.mxu0 %v6546_v17 }
 0x711   : > { %v3500_v34 = vpop.f32.mrf.mxu3 }
 0x712   : > { %v3677_v33 = vrot.slane %v3500_v34, 2  ;;  %5630 = vmatmul.msk.f32.vlgmr.msra.gmra.mxu2 %vm489_vm5, %v3500_v34  ;;  %v3747_v5 = vrot.slane %v3500_v34, 4  ;;  %v3771_v6 = vrot.slane %v3500_v34, 6 }
 0x713   : > { %3858 = vmatpush.msra.mxu2 %v6490_v45 }
 0x714   : > { %5633 = vmatmul.msk.f32.vlgmr.msra.gmra.mxu3 %vm489_vm5, %v3677_v33 }
 0x715   : > { %3859 = vmatpush.msra.mxu2 %v6515_v18  ;;  %3882 = vmatpush.msra.mxu3 %v6520_v12 }
 0x717   : > { %3883 = vmatpush.msra.mxu3 %v6537_v15 }
 0x719   : > { %v3596_v8 = vpop.f32.mrf.mxu3 }
 0x71a   : > { %5636 = vmatmul.msk.f32.vlgmr.msrb.gmra.mxu2 %vm489_vm5, %v3747_v5  ;;  %v3865_v9 = vrot.slane %v3596_v8, 2  ;;  %v3935_v10 = vrot.slane %v3596_v8, 4  ;;  %v3959_v11 = vrot.slane %v3596_v8, 6 }
 0x71b   : > { %3952 = vmatpush.msrb.mxu2 %v6490_v45 }
 0x71c   : > { %5637 = vmatmul.msk.f32.vlgmr.msrb.gmra.mxu3 %vm489_vm5, %v3771_v6 }
 0x71d   : > { %3953 = vmatpush.msrb.mxu2 %v6515_v18  ;;  %3976 = vmatpush.msrb.mxu3 %v6520_v12 }
 0x71f   : > { %3977 = vmatpush.msrb.mxu3 %v6537_v15 }
 0x722   : > { %5640 = vmatmul.msk.f32.vlgmr.msra.gmra.mxu2 %vm489_vm5, %v3596_v8 }
 0x723   : > { %5653 = vmatpush.msk.msra.mxu2 %vm285_vm3, %v4027_v3 }
 0x724   : > { %5641 = vmatmul.msk.f32.vlgmr.msra.gmra.mxu3 %vm489_vm5, %v3865_v9 }
 0x72a   : > { %5644 = vmatmul.msk.f32.vlgmr.msrb.gmra.mxu2 %vm489_vm5, %v3935_v10 }
 0x72b   : > { %5663 = vmatpush.msk.msrb.mxu2 %vm285_vm3, %v4027_v3 }
 0x72c   : > { %5645 = vmatmul.msk.f32.vlgmr.msrb.gmra.mxu3 %vm489_vm5, %v3959_v11 }
 0x732   : > { %5654 = vmatmul.msk.f32.vlgmr.msra.gmra.mxu2 %vm281_vm4, %v5652_v28 }
 0x733   : > { %4290 = vmatpush.msra.mxu2 %v6490_v45 }
 0x735   : > { %4291 = vmatpush.msra.mxu2 %v6515_v18 }
 0x73a   : > { %5664 = vmatmul.msk.f32.vlgmr.msrb.gmra.mxu2 %vm281_vm4, %v5662_v16 }
 0x73b   : > { %4386 = vmatpush.msrb.mxu2 %v6490_v45 }
 0x73d   : > { %4387 = vmatpush.msrb.mxu2 %v6515_v18 }
 0x751   : > { %v3646_v24 = vpop.f32.mrf.mxu1 }
 0x753   : > { %v3624_v20 = vpop.f32.mrf.mxu0 }
 0x754   : > { %v3647_v49 = vadd.f32 %v3646_v24, %v3624_v20 }
 0x759   : > { %v3744_v26 = vpop.f32.mrf.mxu1 }
 0x75b   : > { %v3721_v22 = vpop.f32.mrf.mxu0 }
 0x75c   : > { %v3745_v42 = vadd.f32 %v3744_v26, %v3721_v22  ;;  %v4636_v26 = vld [vmem:[%s6020_s6 + $0xf] sm:$0x1] }
 0x761   : > { %v3838_v39 = vpop.f32.mrf.mxu1 }
 0x763   : > { %v3816_v23 = vpop.f32.mrf.mxu0 }
 0x764   : > { %v3839_v44 = vadd.f32 %v3838_v39, %v3816_v23 }
 0x769   : > { %v3932_v52 = vpop.f32.mrf.mxu1 }
 0x76b   : > { %v3909_v25 = vpop.f32.mrf.mxu0 }
 0x76c   : > { %v3933_v56 = vadd.f32 %v3932_v52, %v3909_v25 }
 0x773   : > { %v4050_v36 = vpop.f32.mrf.mxu0 }
 0x774   : > { %v4053_v37 = vmax.f32 %v4050_v36, 0.0  ;;  %v4638_v36 = vld [vmem:[%s6020_s6 + $0x1f] sm:$0x1] }
 0x775   : > { %v4648_v39 = vrot.slane %v4638_v36, 5 }
 0x776   : > { %5650 = vmatpush.msk.msra.mxu1 %vm285_vm3, %v4053_v37  ;;  %v4644_v37 = vrot.slane %v4636_v26, 7 }
 0x777   : > { %5651 = vmatmul.msk.f32.vlgmr.msra.gmra.mxu1 %vm281_vm4, %v6483_v41 }
 0x77b   : > { %v4146_v43 = vpop.f32.mrf.mxu0 }
 0x77c   : > { %v4149_v46 = vmax.f32 %v4146_v43, 0.0 }
 0x77e   : > { %5660 = vmatpush.msk.msrb.mxu1 %vm285_vm3, %v4149_v46 }
 0x77f   : > { %5661 = vmatmul.msk.f32.vlgmr.msrb.gmra.mxu1 %vm281_vm4, %v6483_v41 }
 0x780   : > { %4265 = vmatpush.msra.mxu1 %v6532_v14 }
 0x782   : > { %4266 = vmatpush.msra.mxu1 %v6551_v19 }
 0x784   : > { %4363 = vmatpush.msrb.mxu1 %v6532_v14 }
 0x786   : > { %4364 = vmatpush.msrb.mxu1 %v6551_v19 }
 0x795   : > { %v3671_v27 = vpop.f32.mrf.mxu2 }
 0x796   : > { %v3674_v55 = vadd.f32 %v3671_v27, %v3647_v49  ;;  %v4635_v27 = vld [vmem:[%s6020_s6 + $0x7] sm:$0x1] }
 0x797   : > { %v3697_v35 = vpop.f32.mrf.mxu3 }
 0x798   : > { %v3700_v60 = vadd.f32 %v3697_v35, %v3674_v55  ;;  %v4637_v35 = vld [vmem:[%s6020_s6 + $0x17] sm:$0x1]  ;;  %v5695_v55 = vld [vmem:[%s6948_s1 + $0x4] sm:$0xf] }
 0x79a   : > { %v3984_v31 = vrot.slane %v3700_v60, 1 }
 0x79d   : > { %v3767_v38 = vpop.f32.mrf.mxu2 }
 0x79e   : > { %v3770_v47 = vadd.f32 %v3767_v38, %v3745_v42  ;;  %v4646_v38 = vrot.slane %v4637_v35, 6 }
 0x79f   : > { %v3791_v40 = vpop.f32.mrf.mxu3 }
 0x7a0   : > { %v3794_v53 = vadd.f32 %v3791_v40, %v3770_v47  ;;  %v4645_v40 = vsel %vm273_vm0, %v4644_v37, %v4635_v27  ;;  %v4639_v47 = vld [vmem:[%s6948_s1] sm:$0xf] }
 0x7a1   : > { %v4647_v42 = vsel %vm276_vm1, %v4646_v38, %v4645_v40 }
 0x7a2   : > { %v3987_v57 = vrot.slane %v3794_v53, 1  ;;  %v3992_v21 = vperm.slane %v3794_v53, 0 }
 0x7a4   : > { %v3993_v62 = vperm.slane %v3987_v57, 0  ;;  %v4004_v1 = vsel %vm891_vm6, %v3700_v60, %v3992_v21 }
 0x7a5   : > { %v3861_v48 = vpop.f32.mrf.mxu2 }
 0x7a6   : > { %v3864_v50 = vadd.f32 %v3861_v48, %v3839_v44  ;;  %v4005_v3 = vsel %vm891_vm6, %v3984_v31, %v3993_v62  ;;  %v4649_v44 = vsel %vm279_vm2, %v4648_v39, %v4647_v42 }
 0x7a7   : > { %v3885_v51 = vpop.f32.mrf.mxu3 }
 0x7a8   : > { %v3888_v54 = vadd.f32 %v3885_v51, %v3864_v50  ;;  %v5700_v50 = vld [vmem:[%s6948_s1 + $0x8] sm:$0xf] }
 0x7aa   : > { %v3989_v58 = vrot.slane %v3888_v54, 1  ;;  %v3996_v32 = vperm.slane %v3888_v54, 0 }
 0x7ac   : > { %v3997_v0 = vperm.slane %v3989_v58, 0  ;;  %v4006_v34 = vsel %vm894_vm7, %v4004_v1, %v3996_v32 }
 0x7ad   : > { %v3955_v59 = vpop.f32.mrf.mxu2 }
 0x7ae   : > { %v3958_v29 = vadd.f32 %v3955_v59, %v3933_v56  ;;  %v4007_v5 = vsel %vm894_vm7, %v4005_v3, %v3997_v0  ;;  %v5705_v56 = vld [vmem:[%s6948_s1 + $0xc] sm:$0xf] }
 0x7af   : > { %v3979_v61 = vpop.f32.mrf.mxu3 }
 0x7b0   : > { %v3982_v63 = vadd.f32 %v3979_v61, %v3958_v29 }
 0x7b2   : > { %v3991_v2 = vrot.slane %v3982_v63, 1  ;;  %v4000_v30 = vperm.slane %v3982_v63, 0 }
 0x7b4   : > { %v4001_v33 = vperm.slane %v3991_v2, 0  ;;  %v4008_v4 = vsel %vm897_vm8, %v4006_v34, %v4000_v30 }
 0x7b5   : > { %5646 = vst.msk [vmem:[%s6203_s10 + $0x14] sm:$0xf] %vm900_vm9, %v4008_v4  ;;  %v4098_v6 = vpop.f32.mrf.mxu2 }
 0x7b6   : > { %v4009_v7 = vsel %vm897_vm8, %v4007_v5, %v4001_v33  ;;  %v4101_v8 = vmax.f32 %v4098_v6, 0.0 }
 0x7b7   : > { %5647 = vst.msk [vmem:[%s6203_s10 + $0x34] sm:$0xf] %vm900_vm9, %v4009_v7 }
 0x7b8   : > { %5655 = vmatpush.msk.msra.mxu3 %vm285_vm3, %v4101_v8 }
 0x7b9   : > { %5656 = vmatmul.msk.f32.vlgmr.msra.gmra.mxu3 %vm281_vm4, %v6483_v41 }
 0x7bd   : > { %v4194_v9 = vpop.f32.mrf.mxu2 }
 0x7be   : > { %v4197_v10 = vmax.f32 %v4194_v9, 0.0 }
 0x7c0   : > { %5665 = vmatpush.msk.msrb.mxu3 %vm285_vm3, %v4197_v10 }
 0x7c1   : > { %5666 = vmatmul.msk.f32.vlgmr.msrb.gmra.mxu3 %vm281_vm4, %v6483_v41 }
 0x7c2   : > { %4316 = vmatpush.msra.mxu3 %v6520_v12 }
 0x7c4   : > { %4317 = vmatpush.msra.mxu3 %v6537_v15 }
 0x7c6   : > { %4410 = vmatpush.msrb.mxu3 %v6520_v12 }
 0x7c8   : > { %4411 = vmatpush.msrb.mxu3 %v6537_v15 }
 0x7f4   : > { %v4074_v11 = vpop.f32.mrf.mxu1 }
 0x7f5   : > { %v4226_v28 = vrot.slane %v4074_v11, 2  ;;  %5670 = vmatmul.msk.f32.vlgmr.msra.gmra.mxu1 %vm489_vm5, %v4074_v11  ;;  %v4346_v16 = vrot.slane %v4074_v11, 4  ;;  %v4323_v20 = vrot.slane %v4074_v11, 6 }
 0x7f6   : > { %4457 = vmatpush.msra.mxu1 %v6532_v14 }
 0x7f7   : > { %5669 = vmatmul.msk.f32.vlgmr.msra.gmra.mxu0 %vm489_vm5, %v4226_v28 }
 0x7f8   : > { %4435 = vmatpush.msra.mxu0 %v6527_v13  ;;  %4458 = vmatpush.msra.mxu1 %v6551_v19 }
 0x7fa   : > { %4436 = vmatpush.msra.mxu0 %v6546_v17 }
 0x7fc   : > { %v4170_v22 = vpop.f32.mrf.mxu1 }
 0x7fd   : > { %5678 = vmatmul.msk.f32.vlgmr.msrb.gmra.mxu1 %vm489_vm5, %v4346_v16  ;;  %v4418_v23 = vrot.slane %v4170_v22, 2  ;;  %v4534_v24 = vrot.slane %v4170_v22, 4  ;;  %v4511_v25 = vrot.slane %v4170_v22, 6 }
 0x7fe   : > { %4551 = vmatpush.msrb.mxu1 %v6532_v14 }
 0x7ff   : > { %5677 = vmatmul.msk.f32.vlgmr.msrb.gmra.mxu0 %vm489_vm5, %v4323_v20 }
 0x800   : > { %4528 = vmatpush.msrb.mxu0 %v6527_v13  ;;  %4552 = vmatpush.msrb.mxu1 %v6551_v19 }
 0x802   : > { %4529 = vmatpush.msrb.mxu0 %v6546_v17 }
 0x805   : > { %5682 = vmatmul.msk.f32.vlgmr.msra.gmra.mxu1 %vm489_vm5, %v4170_v22 }
 0x807   : > { %5681 = vmatmul.msk.f32.vlgmr.msra.gmra.mxu0 %vm489_vm5, %v4418_v23 }
 0x808   : > { %5691 = vmatpush.msk.msra.mxu0 %vm285_vm3, %v4649_v44 }
 0x80d   : > { %5686 = vmatmul.msk.f32.vlgmr.msrb.gmra.mxu1 %vm489_vm5, %v4534_v24 }
 0x80f   : > { %5685 = vmatmul.msk.f32.vlgmr.msrb.gmra.mxu0 %vm489_vm5, %v4511_v25 }
 0x810   : > { %5701 = vmatpush.msk.msrb.mxu0 %vm285_vm3, %v4649_v44 }
 0x817   : > { %5692 = vmatmul.msk.f32.vlgmr.msra.gmra.mxu0 %vm281_vm4, %v4639_v47 }
 0x818   : > { %4865 = vmatpush.msra.mxu0 %v6527_v13 }
 0x81a   : > { %4866 = vmatpush.msra.mxu0 %v6546_v17 }
 0x81f   : > { %5702 = vmatmul.msk.f32.vlgmr.msrb.gmra.mxu0 %vm281_vm4, %v5700_v50 }
 0x820   : > { %4962 = vmatpush.msrb.mxu0 %v6527_v13 }
 0x822   : > { %4963 = vmatpush.msrb.mxu0 %v6546_v17 }
 0x83c   : > { %v4122_v43 = vpop.f32.mrf.mxu3 }
 0x83d   : > { %v4299_v46 = vrot.slane %v4122_v43, 2  ;;  %5673 = vmatmul.msk.f32.vlgmr.msra.gmra.mxu2 %vm489_vm5, %v4122_v43  ;;  %v4369_v48 = vrot.slane %v4122_v43, 4  ;;  %v4393_v49 = vrot.slane %v4122_v43, 6 }
 0x83e   : > { %4480 = vmatpush.msra.mxu2 %v6490_v45 }
 0x83f   : > { %5676 = vmatmul.msk.f32.vlgmr.msra.gmra.mxu3 %vm489_vm5, %v4299_v46 }
 0x840   : > { %4481 = vmatpush.msra.mxu2 %v6515_v18  ;;  %4504 = vmatpush.msra.mxu3 %v6520_v12 }
 0x842   : > { %4505 = vmatpush.msra.mxu3 %v6537_v15 }
 0x844   : > { %v4218_v51 = vpop.f32.mrf.mxu3 }
 0x845   : > { %5679 = vmatmul.msk.f32.vlgmr.msrb.gmra.mxu2 %vm489_vm5, %v4369_v48  ;;  %v4487_v52 = vrot.slane %v4218_v51, 2  ;;  %v4557_v53 = vrot.slane %v4218_v51, 4  ;;  %v4581_v54 = vrot.slane %v4218_v51, 6 }
 0x846   : > { %4574 = vmatpush.msrb.mxu2 %v6490_v45 }
 0x847   : > { %5680 = vmatmul.msk.f32.vlgmr.msrb.gmra.mxu3 %vm489_vm5, %v4393_v49 }
 0x848   : > { %4575 = vmatpush.msrb.mxu2 %v6515_v18  ;;  %4598 = vmatpush.msrb.mxu3 %v6520_v12 }
 0x84a   : > { %4599 = vmatpush.msrb.mxu3 %v6537_v15 }
 0x84d   : > { %5683 = vmatmul.msk.f32.vlgmr.msra.gmra.mxu2 %vm489_vm5, %v4218_v51 }
 0x84e   : > { %5696 = vmatpush.msk.msra.mxu2 %vm285_vm3, %v4649_v44 }
 0x84f   : > { %5684 = vmatmul.msk.f32.vlgmr.msra.gmra.mxu3 %vm489_vm5, %v4487_v52 }
 0x855   : > { %5687 = vmatmul.msk.f32.vlgmr.msrb.gmra.mxu2 %vm489_vm5, %v4557_v53  ;;  %v5829_v53 = vld [vmem:[%s6949_s2] sm:$0xff] }
 0x856   : > { %5706 = vmatpush.msk.msrb.mxu2 %vm285_vm3, %v4649_v44 }
 0x857   : > { %5688 = vmatmul.msk.f32.vlgmr.msrb.gmra.mxu3 %vm489_vm5, %v4581_v54 }
 0x85d   : > { %5697 = vmatmul.msk.f32.vlgmr.msra.gmra.mxu2 %vm281_vm4, %v5695_v55 }
 0x85e   : > { %4912 = vmatpush.msra.mxu2 %v6490_v45 }
 0x860   : > { %4913 = vmatpush.msra.mxu2 %v6515_v18 }
 0x865   : > { %5707 = vmatmul.msk.f32.vlgmr.msrb.gmra.mxu2 %vm281_vm4, %v5705_v56 }
 0x866   : > { %5008 = vmatpush.msrb.mxu2 %v6490_v45 }
 0x868   : > { %5009 = vmatpush.msrb.mxu2 %v6515_v18 }
 0x872   : > { %v4268_v60 = vpop.f32.mrf.mxu1 }
 0x874   : > { %v4246_v57 = vpop.f32.mrf.mxu0 }
 0x875   : > { %v4269_v4 = vadd.f32 %v4268_v60, %v4246_v57 }
 0x87a   : > { %v4366_v29 = vpop.f32.mrf.mxu1 }
 0x87c   : > { %v4343_v58 = vpop.f32.mrf.mxu0 }
 0x87d   : > { %v4367_v1 = vadd.f32 %v4366_v29, %v4343_v58 }
 0x882   : > { %v4460_v31 = vpop.f32.mrf.mxu1 }
 0x884   : > { %v4438_v59 = vpop.f32.mrf.mxu0 }
 0x885   : > { %v4461_v30 = vadd.f32 %v4460_v31, %v4438_v59 }
 0x88a   : > { %v4554_v7 = vpop.f32.mrf.mxu1 }
 0x88c   : > { %v4531_v21 = vpop.f32.mrf.mxu0 }
 0x88d   : > { %v4555_v11 = vadd.f32 %v4554_v7, %v4531_v21 }
 0x894   : > { %v4672_v61 = vpop.f32.mrf.mxu0 }
 0x895   : > { %v4675_v62 = vmax.f32 %v4672_v61, 0.0 }
 0x897   : > { %5693 = vmatpush.msk.msra.mxu1 %vm285_vm3, %v4675_v62 }
 0x898   : > { %5694 = vmatmul.msk.f32.vlgmr.msra.gmra.mxu1 %vm281_vm4, %v6483_v41 }
 0x89c   : > { %v4768_v2 = vpop.f32.mrf.mxu0 }
 0x89d   : > { %v4771_v34 = vmax.f32 %v4768_v2, 0.0 }
 0x89f   : > { %5703 = vmatpush.msk.msrb.mxu1 %vm285_vm3, %v4771_v34 }
 0x8a0   : > { %5704 = vmatmul.msk.f32.vlgmr.msrb.gmra.mxu1 %vm281_vm4, %v6483_v41 }
 0x8a1   : > { %4887 = vmatpush.msra.mxu1 %v6532_v14 }
 0x8a3   : > { %4888 = vmatpush.msra.mxu1 %v6551_v19 }
 0x8a5   : > { %4985 = vmatpush.msrb.mxu1 %v6532_v14 }
 0x8a7   : > { %4986 = vmatpush.msrb.mxu1 %v6551_v19 }
 0x8c0   : > { %v4293_v32 = vpop.f32.mrf.mxu2 }
 0x8c1   : > { %v4296_v10 = vadd.f32 %v4293_v32, %v4269_v4 }
 0x8c2   : > { %v4319_v63 = vpop.f32.mrf.mxu3 }
 0x8c3   : > { %v4322_v22 = vadd.f32 %v4319_v63, %v4296_v10 }
 0x8c5   : > { %v4606_v37 = vrot.slane %v4322_v22, 1 }
 0x8c8   : > { %v4389_v0 = vpop.f32.mrf.mxu2 }
 0x8c9   : > { %v4392_v3 = vadd.f32 %v4389_v0, %v4367_v1 }
 0x8ca   : > { %v4413_v45 = vpop.f32.mrf.mxu3 }
 0x8cb   : > { %v4416_v8 = vadd.f32 %v4413_v45, %v4392_v3 }
 0x8cd   : > { %v4609_v28 = vrot.slane %v4416_v8, 1  ;;  %v4614_v23 = vperm.slane %v4416_v8, 0 }
 0x8cf   : > { %v4615_v27 = vperm.slane %v4609_v28, 0  ;;  %v4626_v38 = vsel %vm891_vm6, %v4322_v22, %v4614_v23 }
 0x8d0   : > { %v4483_v33 = vpop.f32.mrf.mxu2 }
 0x8d1   : > { %v4486_v5 = vadd.f32 %v4483_v33, %v4461_v30  ;;  %v4627_v43 = vsel %vm891_vm6, %v4606_v37, %v4615_v27 }
 0x8d2   : > { %v4507_v6 = vpop.f32.mrf.mxu3 }
 0x8d3   : > { %v4510_v9 = vadd.f32 %v4507_v6, %v4486_v5 }
 0x8d5   : > { %v4611_v16 = vrot.slane %v4510_v9, 1  ;;  %v4618_v25 = vperm.slane %v4510_v9, 0 }
 0x8d7   : > { %v4619_v36 = vperm.slane %v4611_v16, 0  ;;  %v4628_v42 = vsel %vm894_vm7, %v4626_v38, %v4618_v25 }
 0x8d8   : > { %v4577_v20 = vpop.f32.mrf.mxu2 }
 0x8d9   : > { %v4580_v24 = vadd.f32 %v4577_v20, %v4555_v11  ;;  %v4629_v47 = vsel %vm894_vm7, %v4627_v43, %v4619_v36 }
 0x8da   : > { %v4601_v26 = vpop.f32.mrf.mxu3 }
 0x8db   : > { %v4604_v35 = vadd.f32 %v4601_v26, %v4580_v24 }
 0x8dd   : > { %v4613_v39 = vrot.slane %v4604_v35, 1  ;;  %v4622_v40 = vperm.slane %v4604_v35, 0 }
 0x8df   : > { %v4623_v44 = vperm.slane %v4613_v39, 0  ;;  %v4630_v46 = vsel %vm897_vm8, %v4628_v42, %v4622_v40 }
 0x8e0   : > { %5689 = vst.msk [vmem:[%s6203_s10 + $0x18] sm:$0xf] %vm900_vm9, %v4630_v46  ;;  %v4720_v48 = vpop.f32.mrf.mxu2 }
 0x8e1   : > { %v4631_v49 = vsel %vm897_vm8, %v4629_v47, %v4623_v44  ;;  %v4723_v50 = vmax.f32 %v4720_v48, 0.0 }
 0x8e2   : > { %5690 = vst.msk [vmem:[%s6203_s10 + $0x38] sm:$0xf] %vm900_vm9, %v4631_v49 }
 0x8e3   : > { %5698 = vmatpush.msk.msra.mxu3 %vm285_vm3, %v4723_v50 }
 0x8e4   : > { %5699 = vmatmul.msk.f32.vlgmr.msra.gmra.mxu3 %vm281_vm4, %v6483_v41 }
 0x8e8   : > { %v4816_v51 = vpop.f32.mrf.mxu2 }
 0x8e9   : > { %v4819_v52 = vmax.f32 %v4816_v51, 0.0 }
 0x8eb   : > { %5708 = vmatpush.msk.msrb.mxu3 %vm285_vm3, %v4819_v52 }
 0x8ec   : > { %5709 = vmatmul.msk.f32.vlgmr.msrb.gmra.mxu3 %vm281_vm4, %v5829_v53 }
 0x8ed   : > { %4938 = vmatpush.msra.mxu3 %v6520_v12 }
 0x8ef   : > { %4939 = vmatpush.msra.mxu3 %v6537_v15 }
 0x8f1   : > { %5032 = vmatpush.msrb.mxu3 %v6520_v12 }
 0x8f3   : > { %5033 = vmatpush.msrb.mxu3 %v6537_v15 }
 0x915   : > { %v4696_v54 = vpop.f32.mrf.mxu1 }
 0x916   : > { %v4848_v41 = vrot.slane %v4696_v54, 2  ;;  %5713 = vmatmul.msk.f32.vlgmr.msra.gmra.mxu1 %vm489_vm5, %v4696_v54  ;;  %v4945_v55 = vrot.slane %v4696_v54, 6  ;;  %v4968_v56 = vrot.slane %v4696_v54, 4 }
 0x917   : > { %5079 = vmatpush.msra.mxu1 %v6532_v14 }
 0x918   : > { %5712 = vmatmul.msk.f32.vlgmr.msra.gmra.mxu0 %vm489_vm5, %v4848_v41 }
 0x919   : > { %5057 = vmatpush.msra.mxu0 %v6527_v13  ;;  %5080 = vmatpush.msra.mxu1 %v6551_v19 }
 0x91b   : > { %5058 = vmatpush.msra.mxu0 %v6546_v17 }
 0x91d   : > { %v4792_v57 = vpop.f32.mrf.mxu1 }
 0x91e   : > { %5721 = vmatmul.msk.f32.vlgmr.msrb.gmra.mxu1 %vm489_vm5, %v4968_v56  ;;  %v5040_v58 = vrot.slane %v4792_v57, 2  ;;  %v5156_v59 = vrot.slane %v4792_v57, 4  ;;  %v5133_v60 = vrot.slane %v4792_v57, 6 }
 0x91f   : > { %5173 = vmatpush.msrb.mxu1 %v6532_v14 }
 0x920   : > { %5720 = vmatmul.msk.f32.vlgmr.msrb.gmra.mxu0 %vm489_vm5, %v4945_v55 }
 0x921   : > { %5150 = vmatpush.msrb.mxu0 %v6527_v13  ;;  %5174 = vmatpush.msrb.mxu1 %v6551_v19  ;;  %v5830_v13 = vld [vmem:[%s6950_s3 + $0x28] sm:$0xff] }
 0x923   : > { %5151 = vmatpush.msrb.mxu0 %v6546_v17 }
 0x926   : > { %5725 = vmatmul.msk.f32.vlgmr.msra.gmra.mxu1 %vm489_vm5, %v4792_v57 }
 0x928   : > { %5724 = vmatmul.msk.f32.vlgmr.msra.gmra.mxu0 %vm489_vm5, %v5040_v58 }
 0x92e   : > { %5729 = vmatmul.msk.f32.vlgmr.msrb.gmra.mxu1 %vm489_vm5, %v5156_v59 }
 0x930   : > { %5728 = vmatmul.msk.f32.vlgmr.msrb.gmra.mxu0 %vm489_vm5, %v5133_v60 }
 0x967   : > { %v4744_v14 = vpop.f32.mrf.mxu3 }
 0x968   : > { %v4921_v21 = vrot.slane %v4744_v14, 2  ;;  %5716 = vmatmul.msk.f32.vlgmr.msra.gmra.mxu2 %vm489_vm5, %v4744_v14  ;;  %v4991_v17 = vrot.slane %v4744_v14, 4  ;;  %v5015_v19 = vrot.slane %v4744_v14, 6 }
 0x969   : > { %5102 = vmatpush.msra.mxu2 %v5830_v13 }
 0x96a   : > { %5719 = vmatmul.msk.f32.vlgmr.msra.gmra.mxu3 %vm489_vm5, %v4921_v21 }
 0x96b   : > { %5103 = vmatpush.msra.mxu2 %v6515_v18  ;;  %5126 = vmatpush.msra.mxu3 %v6520_v12 }
 0x96d   : > { %5127 = vmatpush.msra.mxu3 %v6537_v15 }
 0x96f   : > { %v4840_v29 = vpop.f32.mrf.mxu3 }
 0x970   : > { %5722 = vmatmul.msk.f32.vlgmr.msrb.gmra.mxu2 %vm489_vm5, %v4991_v17  ;;  %v5109_v32 = vrot.slane %v4840_v29, 2  ;;  %v5179_v61 = vrot.slane %v4840_v29, 4  ;;  %v5203_v62 = vrot.slane %v4840_v29, 6 }
 0x971   : > { %5196 = vmatpush.msrb.mxu2 %v5830_v13 }
 0x972   : > { %5723 = vmatmul.msk.f32.vlgmr.msrb.gmra.mxu3 %vm489_vm5, %v5015_v19 }
 0x973   : > { %5197 = vmatpush.msrb.mxu2 %v6515_v18  ;;  %5220 = vmatpush.msrb.mxu3 %v6520_v12 }
 0x975   : > { %5221 = vmatpush.msrb.mxu3 %v6537_v15 }
 0x978   : > { %5726 = vmatmul.msk.f32.vlgmr.msra.gmra.mxu2 %vm489_vm5, %v4840_v29 }
 0x97a   : > { %5727 = vmatmul.msk.f32.vlgmr.msra.gmra.mxu3 %vm489_vm5, %v5109_v32 }
 0x980   : > { %5730 = vmatmul.msk.f32.vlgmr.msrb.gmra.mxu2 %vm489_vm5, %v5179_v61 }
 0x982   : > { %5731 = vmatmul.msk.f32.vlgmr.msrb.gmra.mxu3 %vm489_vm5, %v5203_v62 }
 0x993   : > { %v4890_v0 = vpop.f32.mrf.mxu1 }
 0x995   : > { %v4868_v63 = vpop.f32.mrf.mxu0 }
 0x996   : > { %v4891_v7 = vadd.f32 %v4890_v0, %v4868_v63 }
 0x99b   : > { %v4988_v18 = vpop.f32.mrf.mxu1 }
 0x99d   : > { %v4965_v31 = vpop.f32.mrf.mxu0 }
 0x99e   : > { %v4989_v34 = vadd.f32 %v4988_v18, %v4965_v31 }
 0x9a3   : > { %v5082_v30 = vpop.f32.mrf.mxu1 }
 0x9a5   : > { %v5060_v2 = vpop.f32.mrf.mxu0 }
 0x9a6   : > { %v5083_v33 = vadd.f32 %v5082_v30, %v5060_v2 }
 0x9ab   : > { %v5176_v11 = vpop.f32.mrf.mxu1 }
 0x9ad   : > { %v5153_v10 = vpop.f32.mrf.mxu0 }
 0x9ae   : > { %v5177_v20 = vadd.f32 %v5176_v11, %v5153_v10 }
 0x9eb   : > { %v4915_v45 = vpop.f32.mrf.mxu2 }
 0x9ec   : > { %v4918_v28 = vadd.f32 %v4915_v45, %v4891_v7 }
 0x9ed   : > { %v4941_v1 = vpop.f32.mrf.mxu3 }
 0x9ee   : > { %v4944_v24 = vadd.f32 %v4941_v1, %v4918_v28 }
 0x9f0   : > { %v5228_v39 = vrot.slane %v4944_v24, 1 }
 0x9f3   : > { %v5011_v12 = vpop.f32.mrf.mxu2 }
 0x9f4   : > { %v5014_v3 = vadd.f32 %v5011_v12, %v4989_v34 }
 0x9f5   : > { %v5035_v15 = vpop.f32.mrf.mxu3 }
 0x9f6   : > { %v5038_v8 = vadd.f32 %v5035_v15, %v5014_v3 }
 0x9f8   : > { %v5231_v16 = vrot.slane %v5038_v8, 1  ;;  %v5236_v25 = vperm.slane %v5038_v8, 0 }
 0x9fa   : > { %v5237_v36 = vperm.slane %v5231_v16, 0  ;;  %v5248_v40 = vsel %vm891_vm6, %v4944_v24, %v5236_v25 }
 0x9fb   : > { %v5105_v4 = vpop.f32.mrf.mxu2 }
 0x9fc   : > { %v5108_v5 = vadd.f32 %v5105_v4, %v5083_v33  ;;  %v5249_v46 = vsel %vm891_vm6, %v5228_v39, %v5237_v36 }
 0x9fd   : > { %v5129_v6 = vpop.f32.mrf.mxu3 }
 0x9fe   : > { %v5132_v9 = vadd.f32 %v5129_v6, %v5108_v5 }
 0xa00   : > { %v5233_v22 = vrot.slane %v5132_v9, 1  ;;  %v5240_v27 = vperm.slane %v5132_v9, 0 }
 0xa02   : > { %v5241_v38 = vperm.slane %v5233_v22, 0  ;;  %v5250_v44 = vsel %vm894_vm7, %v5248_v40, %v5240_v27 }
 0xa03   : > { %v5199_v23 = vpop.f32.mrf.mxu2 }
 0xa04   : > { %v5202_v26 = vadd.f32 %v5199_v23, %v5177_v20  ;;  %v5251_v49 = vsel %vm894_vm7, %v5249_v46, %v5241_v38 }
 0xa05   : > { %v5223_v35 = vpop.f32.mrf.mxu3 }
 0xa06   : > { %v5226_v37 = vadd.f32 %v5223_v35, %v5202_v26 }
 0xa08   : > { %v5235_v42 = vrot.slane %v5226_v37, 1  ;;  %v5244_v43 = vperm.slane %v5226_v37, 0 }
 0xa0a   : > { %v5245_v47 = vperm.slane %v5235_v42, 0  ;;  %v5252_v48 = vsel %vm897_vm8, %v5250_v44, %v5244_v43 }
 0xa0b   : > { %5732 = vst.msk [vmem:[%s6203_s10 + $0x1c] sm:$0xf] %vm900_vm9, %v5252_v48 }
 0xa0c   : > { %v5253_v50 = vsel %vm897_vm8, %v5251_v49, %v5245_v47 }
 0xa0d   : > { %5733 = vst.msk [vmem:[%s6203_s10 + $0x3c] sm:$0xf] %vm900_vm9, %v5253_v50 }
 0xa0e   : > { %s5735_s5 = sshll.u32 %s5881_s18, 3  ;;  %s5736_s7 = sshll.u32 %s5885_s19, 5 }
 0xa0f   : > { %s5269_s9 = sadd.s32 %s5736_s7, %s5735_s5  ;;  %s5282_s11 = sshll.u32 %s6203_s10, 4  ;;  %s5283_s11 = int_to_ptr.vmem [resolvable:$true] %s5282_s11 }
 0xa10   : > { %s5737_s12 = sshll.u32 %s5269_s9, 2  ;;  %s5899_s24 = smov 512  }
 0xa11   : > { %s5271_s23 = scalar_lea.hbm %s6951_s4, %s5737_s12  ;;  %5740 = sst [smem:[#allocation6]] (%p5991_p8), %s5899_s24 }
 0xa12   : > { %s5284_s28 = sshll.u32 %s5271_s23, 4  ;;  %s5900_s6 = smov 1024   ;;  %s5285_s28 = int_to_ptr.hbm [resolvable:$true] %s5284_s28 }
 0xa13   : > { %5741 = sst [smem:[#allocation6 + $0x1]] (%p5991_p8), %s5900_s6  ;;  %s5901_s18 = smov 8  }
 0xa14   : > { %5742 = sst [smem:[#allocation6 + $0x2]] (%p5991_p8), %s5901_s18  ;;  %s5902_s19 = smov 64  }
 0xa15   : > { %5743 = sst [smem:[#allocation6 + $0x3]] (%p5991_p8), %s5902_s19  ;;  %s5903_s10 = smov 4  }
 0xa16   : > { %5744 = sst [smem:[#allocation6 + $0x4]] (%p5991_p8), %s5902_s19  ;;  %s5904_s5 = smov [#allocation5]  }
 0xa17   : > { %5745 = sst [smem:[#allocation6 + $0x5]] (%p5991_p8), %s5903_s10  ;;  %s5905_s7 = smov 0  }
 0xa18   : > { %5746 = dma.general (%p5991_p8), %s5283_s11, 1024, %s5285_s28, %s5258_s27, %s5904_s5, [#allocation6], %s5905_s7, 0  }
 0xa19 PF: > { %p5752_p1 = scmp.ge.s32.totalorder %s5897_s22, 2  ;;  %s5312_s9 = sand.u32 1, %s5869_s15  }
 0xa1a   : > { %s5313_s12 = scalar_lea.sflag [#allocation4], %s5312_s9 }
 0xa1b   : > { %p5749_p2 = pnand %p5752_p1, %p5995_p9 }
 0xa1d   : > { %p5750_p3 = pneg %p5749_p2 }
 0xa1f   : > { %5864 = dma.done.wait (%p5750_p3), %s5313_s12, 1024  }
 0xa20   : > { %5866 = vsyncadd (%p5750_p3), %s5313_s12, 4294966272  ;;  %s17_s22 = sadd.s32 1, %s5897_s22   ;;  %s6955_s15 = smov %s5873_s16 }
 0xa21   : > { %p14_p4 = scmp.ge.s32.totalorder %s17_s22, 6   ;;  %s6956_s16 = smov %s5877_s17 }
 0xa22   : > { %s6957_s17 = smov %s6003_s8  ;;  %s6958_s18 = smov %s5889_s20 }
 0xa23   : > { %s6959_s19 = smov %s5893_s21  ;;  %s6960_s20 = smov %s6963_s25 }
 0xa24   : > { %s6961_s21 = smov %s6967_s26  ;;  %16 = sbr.rel (!%p14_p4) target bundleno = 5 (0x5), region = 132 }
 0xa29   :  { %5319 = vsyncpa [#allocation4], 1 }
 0xa2a   :  { %5321 = vsyncpa [#allocation4 + $0x1], 1 }

</bundles_post_ra>
